<compile_context>
chip_gen: v7x
topology: tpu7x:2x2x1
jax: 0.10.0
libtpu: 0.0.40
codegen_flags: <defaults>
</compile_context>

<pallas_src>
import math

import jax
import jax.numpy as jnp
from jax import lax
from jax.experimental import pallas as pl
from jax.experimental.pallas import tpu as pltpu

# ------------------------------- configuration -------------------------------

IMG_SIZE = (16, 16)
PATCH = 4
IN_CH = 4
EMBED_DIM = 128                     # d_model (lane-aligned)
NUM_HEADS = 4
NUM_LAYERS = 2
HEAD_DIM = EMBED_DIM // NUM_HEADS
NUM_PATCHES = (IMG_SIZE[0] // PATCH) * (IMG_SIZE[1] // PATCH)
SEQ = NUM_PATCHES + 1               # +1 cls token
SEQ_PAD = ((SEQ + 7) // 8) * 8      # pad sequence to a sublane multiple
PATCH_DIM = IN_CH * PATCH * PATCH
LN_EPS = 1e-5

MXU_DTYPE = jnp.bfloat16            # matmul-operand dtype (accumulation stays f32)
NEG_INF = -1e30


def _mx(x):
    """Cast a matmul operand (activation) to the MXU input dtype."""
    return x.astype(MXU_DTYPE)


# ----------------------------- shared math helpers ------------------------------

def _layernorm(x, w, b):
    mu = jnp.mean(x, axis=-1, keepdims=True)
    xc = x - mu
    var = jnp.mean(xc * xc, axis=-1, keepdims=True)
    return xc * lax.rsqrt(var + LN_EPS) * w + b


def _softmax(s):
    # Exact softmax (f32 divide).  Intentionally NOT pl.reciprocal(approx=True):
    # the approx reciprocal's ~2^-12 relative error exceeded the test tolerance.
    m = jnp.max(s, axis=-1, keepdims=True)
    e = jnp.exp(s - m)
    return e / jnp.sum(e, axis=-1, keepdims=True)


# -------------------------------- Pallas kernel --------------------------------
#
# lvec_ref rows (per layer, all width E, f32):
#   0: q bias   1: k bias   2: v bias   3: out_b   4: ff_b2
#   5: ln1_w    6: ln1_b    7: ln2_w    8: ln2_b

def vit_encoder_kernel(patches_ref, pos_ref, patch_w_ref,
                       in_w_ref, out_w_ref, ff_w1_ref, ff_w2_ref,
                       lvec_ref, ff_b1_ref, final_ln_ref,
                       out_ref):
    E = EMBED_DIM
    Dh = HEAD_DIM
    s_pad = SEQ_PAD
    batch = out_ref.shape[0]
    M = batch * s_pad
    n_layers = in_w_ref.shape[0]
    inv_sqrt_dh = 1.0 / math.sqrt(Dh)

    # Block-diagonal attention bias (batch isolation + key-padding), built in-kernel
    # from iota compares — no O(M^2) HBM tensor, no integer div/mod.
    # Added to the f32 scores AFTER the bf16 matmul; never cast to bf16.
    row = lax.broadcasted_iota(jnp.int32, (M, M), 0)
    col = lax.broadcasted_iota(jnp.int32, (M, M), 1)
    allowed = jnp.zeros((M, M), jnp.bool_)
    for b in range(batch):
        r_in = (row >= b * s_pad) & (row < (b + 1) * s_pad)
        c_in = (col >= b * s_pad) & (col < b * s_pad + SEQ)   # same image & valid key
        allowed = allowed | (r_in & c_in)
    attn_bias = jnp.where(allowed, 0.0, NEG_INF)

    # Patch embedding: one (M, Cpp) x (Cpp, E) matmul; cls token / pos embed / conv
    # bias are pre-folded into the batch-tiled additive term `pos_ref`.
    x = jnp.dot(_mx(patches_ref[...]), patch_w_ref[...],
                preferred_element_type=jnp.float32) + pos_ref[...]

    # Transformer encoder layers (unrolled; weights indexed statically from stacks).
    for l in range(n_layers):
        vec = lvec_ref[l]                                    # (9, E) f32

        # ---- self-attention (post-LN, fused QKV projection) ----
        qkv = jnp.dot(_mx(x), in_w_ref[l], preferred_element_type=jnp.float32)
        q = (qkv[:, 0:E] + vec[0:1, :]) * inv_sqrt_dh
        k = qkv[:, E:2 * E] + vec[1:2, :]
        v = qkv[:, 2 * E:3 * E] + vec[2:3, :]

        sa = jnp.zeros((M, E), jnp.float32)
        for h in range(NUM_HEADS):
            lo, hi = h * Dh, (h + 1) * Dh
            s = lax.dot_general(_mx(q[:, lo:hi]), _mx(k[:, lo:hi]),
                                (((1,), (1,)), ((), ())),
                                preferred_element_type=jnp.float32)
            p = _softmax(s + attn_bias)
            ctx = jnp.dot(_mx(p), _mx(v[:, lo:hi]),
                          preferred_element_type=jnp.float32)
            # Out-projection accumulated per head against a sublane slice of the
            # weight ref — no lane-concat of head outputs.
            sa = sa + jnp.dot(_mx(ctx), out_w_ref[l, lo:hi, :],
                              preferred_element_type=jnp.float32)
        sa = sa + vec[3:4, :]
        x = _layernorm(x + sa, vec[5:6, :], vec[6:7, :])

        # ---- feed-forward (ReLU) ----
        h1 = jnp.dot(_mx(x), ff_w1_ref[l],
                     preferred_element_type=jnp.float32) + ff_b1_ref[l]
        h1 = jnp.maximum(h1, 0.0)
        ff = jnp.dot(_mx(h1), ff_w2_ref[l],
                     preferred_element_type=jnp.float32) + vec[4:5, :]
        x = _layernorm(x + ff, vec[7:8, :], vec[8:9, :])

    # Gather the cls row of every batch element (sublane-aligned static slices),
    # final LayerNorm, single lane-dense (B, 128) store.
    cls_rows = jnp.concatenate(
        [x[b * s_pad:b * s_pad + 1, :] for b in range(batch)], axis=0)
    out_ref[...] = _layernorm(cls_rows, final_ln_ref[0:1, :], final_ln_ref[1:2, :])


# ---------------------------------- wrapper ------------------------------------

def _patchify(x, patch):
    """(B, C, H, W) -> (B, N, C*patch*patch), matching Conv2d(k=s=patch) + flatten(2).T."""
    B, C, H, W = x.shape
    hp, wp = H // patch, W // patch
    p = x.reshape(B, C, hp, patch, wp, patch)
    p = p.transpose(0, 2, 4, 1, 3, 5)                 # (B, hp, wp, C, patch, patch)
    return p.reshape(B, hp * wp, C * patch * patch)


def vit_encoder_forward(x, params):
    B = x.shape[0]
    E, S, S_pad, L = EMBED_DIM, SEQ, SEQ_PAD, NUM_LAYERS

    # im2col (pure layout), then pad to S_pad rows per batch:
    # row 0 = cls slot (zeros), rows 1..N = patches, rows N+1.. = padding (zeros).
    patches = _patchify(x, PATCH)                                     # (B, N, Cpp)
    patches = jnp.pad(patches, ((0, 0), (1, S_pad - S), (0, 0)))      # (B, S_pad, Cpp)
    patches_flat = patches.reshape(B * S_pad, PATCH_DIM)

    # Per-position additive term (cls token + pos embed + conv bias), pre-tiled over
    # the batch (24 KB) so the kernel has no in-kernel concatenate.
    pos_add = jnp.zeros((S_pad, E), jnp.float32)
    pos_add = pos_add.at[0].set(params["cls_token"] + params["pos_embed"][0])
    pos_add = pos_add.at[1:S].set(params["pos_embed"][1:] + params["patch_b"])
    pos_tiled = jnp.tile(pos_add, (B, 1))                             # (B*S_pad, E)

    # Pack the many tiny parameter vectors: 18 -> 10 kernel inputs.
    ib = params["in_b"]
    lvec = jnp.stack([ib[:, 0:E], ib[:, E:2 * E], ib[:, 2 * E:3 * E],
                      params["out_b"], params["ff_b2"],
                      params["ln1_w"], params["ln1_b"],
                      params["ln2_w"], params["ln2_b"]], axis=1)      # (L, 9, E)
    ff_b1 = params["ff_b1"][:, None, :]                               # (L, 1, 4E)
    final_ln = jnp.stack([params["norm_w"], params["norm_b"]], axis=0)  # (2, E)

    vmem = pl.BlockSpec(memory_space=pltpu.MemorySpace.VMEM)
    return pl.pallas_call(
        vit_encoder_kernel,
        out_shape=jax.ShapeDtypeStruct((B, E), jnp.float32),
        in_specs=[vmem] * 10,
        out_specs=vmem,
    )(patches_flat, pos_tiled, params["patch_w"],
      params["in_w"], params["out_w"], params["ff_w1"], params["ff_w2"],
      lvec, ff_b1, final_ln)


# --------------------------- pure-JAX reference --------------------------------

def reference_forward(x, params):
    """Plain-JAX forward with the same MXU input-precision policy (no Pallas)."""
    B = x.shape[0]
    E, NH, Dh = EMBED_DIM, NUM_HEADS, HEAD_DIM

    def mm(a, w):
        return jnp.einsum("...k,kn->...n", a.astype(MXU_DTYPE), w,
                          preferred_element_type=jnp.float32)

    patches = _patchify(x, PATCH)
    emb = mm(patches, params["patch_w"]) + params["patch_b"]
    cls = jnp.broadcast_to(params["cls_token"], (B, 1, E))
    h = jnp.concatenate([cls, emb], axis=1) + params["pos_embed"][None]

    for l in range(NUM_LAYERS):
        S = h.shape[1]
        qkv = mm(h, params["in_w"][l]) + params["in_b"][l]
        q = qkv[..., 0:E] * (1.0 / math.sqrt(Dh))
        k = qkv[..., E:2 * E]
        v = qkv[..., 2 * E:3 * E]
        qh = q.reshape(B, S, NH, Dh).transpose(0, 2, 1, 3)
        kh = k.reshape(B, S, NH, Dh).transpose(0, 2, 1, 3)
        vh = v.reshape(B, S, NH, Dh).transpose(0, 2, 1, 3)
        sc = jnp.einsum("bhqd,bhkd->bhqk", qh.astype(MXU_DTYPE), kh.astype(MXU_DTYPE),
                        preferred_element_type=jnp.float32)
        m = jnp.max(sc, axis=-1, keepdims=True)
        e = jnp.exp(sc - m)
        p = e / jnp.sum(e, axis=-1, keepdims=True)
        ctx = jnp.einsum("bhqk,bhkd->bhqd", p.astype(MXU_DTYPE), vh.astype(MXU_DTYPE),
                         preferred_element_type=jnp.float32)
        ctx = ctx.transpose(0, 2, 1, 3).reshape(B, S, E)
        sa = mm(ctx, params["out_w"][l]) + params["out_b"][l]
        h = _layernorm(h + sa, params["ln1_w"][l], params["ln1_b"][l])
        f = jnp.maximum(mm(h, params["ff_w1"][l]) + params["ff_b1"][l], 0.0)
        f = mm(f, params["ff_w2"][l]) + params["ff_b2"][l]
        h = _layernorm(h + f, params["ln2_w"][l], params["ln2_b"][l])

    return _layernorm(h[:, 0], params["norm_w"], params["norm_b"])


# ----------------------------- deterministic init ------------------------------
# Weight layout note: weight matrices are stored pre-transposed in (in, out) layout
# (PyTorch nn.Linear / nn.MultiheadAttention store (out, in)); transpose when porting
# checkpoints.  Weights are bf16; biases / LayerNorm params are f32.

def init_params(key):
    E, L = EMBED_DIM, NUM_LAYERS
    keys = iter(jax.random.split(key, 20))

    def w(shape, scale=0.05):
        return (jax.random.normal(next(keys), shape, jnp.float32) * scale).astype(MXU_DTYPE)

    def v(shape, scale=0.02):
        return jax.random.normal(next(keys), shape, jnp.float32) * scale

    return {
        "patch_w": w((PATCH_DIM, E)),                 # Conv2d weight, (in, out) layout
        "patch_b": v((E,)),
        # torch inits cls/pos to zeros; small random values exercise the path non-trivially
        "cls_token": v((E,)),
        "pos_embed": v((SEQ, E)),
        "in_w":  w((L, E, 3 * E)), "in_b":  v((L, 3 * E)),
        "out_w": w((L, E, E)),     "out_b": v((L, E)),
        "ff_w1": w((L, E, 4 * E)), "ff_b1": v((L, 4 * E)),
        "ff_w2": w((L, 4 * E, E)), "ff_b2": v((L, E)),
        "ln1_w": 1.0 + v((L, E)),  "ln1_b": v((L, E)),
        "ln2_w": 1.0 + v((L, E)),  "ln2_b": v((L, E)),
        "norm_w": 1.0 + v((E,)),   "norm_b": v((E,)),
    }


if __name__ == "__main__":
    key = jax.random.PRNGKey(0)
    pkey, xkey = jax.random.split(key)
    params = init_params(pkey)

    batch = 2
    x = jax.random.normal(xkey, (batch, IN_CH, IMG_SIZE[0], IMG_SIZE[1]), jnp.float32)

    out = jax.jit(vit_encoder_forward)(x, params)
    jax.block_until_ready(out)

    ref = jax.jit(reference_forward)(x, params)
    jax.block_until_ready(ref)

    assert out.shape == (batch, EMBED_DIM), out.shape
    assert out.dtype == jnp.float32
    assert bool(jnp.all(jnp.isfinite(out)))
    max_err = float(jnp.max(jnp.abs(out - ref)))
    assert max_err < 1e-2, f"kernel/reference mismatch: {max_err}"
    print("KERNEL_OK")
</pallas_src>

<mosaic_0001>
module attributes {stable_mosaic.version = 11 : i64} {
  func.func @vit_encoder_kernel(%arg0: memref<48x64xf32, #tpu.memory_space<vmem>>, %arg1: memref<48x128xf32, #tpu.memory_space<vmem>>, %arg2: memref<64x128xbf16, #tpu.memory_space<vmem>>, %arg3: memref<2x128x384xbf16, #tpu.memory_space<vmem>>, %arg4: memref<2x128x128xbf16, #tpu.memory_space<vmem>>, %arg5: memref<2x128x512xbf16, #tpu.memory_space<vmem>>, %arg6: memref<2x512x128xbf16, #tpu.memory_space<vmem>>, %arg7: memref<2x9x128xf32, #tpu.memory_space<vmem>>, %arg8: memref<2x1x512xf32, #tpu.memory_space<vmem>>, %arg9: memref<2x128xf32, #tpu.memory_space<vmem>>, %arg10: memref<2x128xf32, #tpu.memory_space<vmem>>) attributes {dimension_semantics = [], scalar_prefetch = 0 : i64, scratch_operands = 0 : i64, tpu.core_type = #tpu.core_type<tc>} {
    %0 = tpu.iota {dimensions = array<i32: 0>} : vector<48x48xi32>
    %1 = tpu.iota {dimensions = array<i32: 1>} : vector<48x48xi32>
    %false = arith.constant false
    %2 = vector.broadcast %false : i1 to vector<48x48xi1>
    %c0_i32 = arith.constant 0 : i32
    %3 = vector.broadcast %c0_i32 : i32 to vector<48x48xi32>
    %4 = arith.cmpi sge, %0, %3 : vector<48x48xi32>
    %c24_i32 = arith.constant 24 : i32
    %5 = vector.broadcast %c24_i32 : i32 to vector<48x48xi32>
    %6 = arith.cmpi slt, %0, %5 : vector<48x48xi32>
    %7 = arith.andi %4, %6 : vector<48x48xi1>
    %c0_i32_0 = arith.constant 0 : i32
    %8 = vector.broadcast %c0_i32_0 : i32 to vector<48x48xi32>
    %9 = arith.cmpi sge, %1, %8 : vector<48x48xi32>
    %c17_i32 = arith.constant 17 : i32
    %10 = vector.broadcast %c17_i32 : i32 to vector<48x48xi32>
    %11 = arith.cmpi slt, %1, %10 : vector<48x48xi32>
    %12 = arith.andi %9, %11 : vector<48x48xi1>
    %13 = arith.andi %7, %12 : vector<48x48xi1>
    %14 = arith.ori %2, %13 : vector<48x48xi1>
    %c24_i32_1 = arith.constant 24 : i32
    %15 = vector.broadcast %c24_i32_1 : i32 to vector<48x48xi32>
    %16 = arith.cmpi sge, %0, %15 : vector<48x48xi32>
    %c48_i32 = arith.constant 48 : i32
    %17 = vector.broadcast %c48_i32 : i32 to vector<48x48xi32>
    %18 = arith.cmpi slt, %0, %17 : vector<48x48xi32>
    %19 = arith.andi %16, %18 : vector<48x48xi1>
    %c24_i32_2 = arith.constant 24 : i32
    %20 = vector.broadcast %c24_i32_2 : i32 to vector<48x48xi32>
    %21 = arith.cmpi sge, %1, %20 : vector<48x48xi32>
    %c41_i32 = arith.constant 41 : i32
    %22 = vector.broadcast %c41_i32 : i32 to vector<48x48xi32>
    %23 = arith.cmpi slt, %1, %22 : vector<48x48xi32>
    %24 = arith.andi %21, %23 : vector<48x48xi1>
    %25 = arith.andi %19, %24 : vector<48x48xi1>
    %26 = arith.ori %14, %25 : vector<48x48xi1>
    %cst = arith.constant 0.000000e+00 : f32
    %cst_3 = arith.constant -1.000000e+30 : f32
    %27 = vector.broadcast %cst : f32 to vector<48x48xf32>
    %28 = vector.broadcast %cst_3 : f32 to vector<48x48xf32>
    %29 = arith.select %26, %27, %28 : vector<48x48xi1>, vector<48x48xf32>
    %c0 = arith.constant 0 : index
    %c0_4 = arith.constant 0 : index
    %30 = vector.load %arg0[%c0, %c0_4] : memref<48x64xf32, #tpu.memory_space<vmem>>, vector<48x64xf32>
    %31 = arith.truncf %30 : vector<48x64xf32> to vector<48x64xbf16>
    %c0_5 = arith.constant 0 : index
    %c0_6 = arith.constant 0 : index
    %32 = vector.load %arg2[%c0_5, %c0_6] : memref<64x128xbf16, #tpu.memory_space<vmem>>, vector<64x128xbf16>
    %cst_7 = arith.constant dense<0.000000e+00> : vector<48x128xf32>
    %33 = tpu.matmul %31, %32, %cst_7 {dimension_numbers = #tpu.dot_dimension_numbers<[1], [0], [0], [1], [0, 0, 1, 1], [], []>} : vector<48x64xbf16>, vector<64x128xbf16>, vector<48x128xf32> -> vector<48x128xf32>
    %c0_8 = arith.constant 0 : index
    %c0_9 = arith.constant 0 : index
    %34 = vector.load %arg1[%c0_8, %c0_9] : memref<48x128xf32, #tpu.memory_space<vmem>>, vector<48x128xf32>
    %35 = arith.addf %33, %34 : vector<48x128xf32>
    %c0_10 = arith.constant 0 : index
    %c0_11 = arith.constant 0 : index
    %c0_12 = arith.constant 0 : index
    %36 = vector.load %arg7[%c0_10, %c0_11, %c0_12] : memref<2x9x128xf32, #tpu.memory_space<vmem>>, vector<1x9x128xf32>
    %37 = vector.shape_cast %36 : vector<1x9x128xf32> to vector<9x128xf32>
    %38 = arith.truncf %35 : vector<48x128xf32> to vector<48x128xbf16>
    %c0_13 = arith.constant 0 : index
    %c0_14 = arith.constant 0 : index
    %c0_15 = arith.constant 0 : index
    %39 = vector.load %arg3[%c0_13, %c0_14, %c0_15] : memref<2x128x384xbf16, #tpu.memory_space<vmem>>, vector<1x128x384xbf16>
    %40 = vector.shape_cast %39 : vector<1x128x384xbf16> to vector<128x384xbf16>
    %cst_16 = arith.constant dense<0.000000e+00> : vector<48x384xf32>
    %41 = tpu.matmul %38, %40, %cst_16 {dimension_numbers = #tpu.dot_dimension_numbers<[1], [0], [0], [1], [0, 0, 1, 1], [], []>} : vector<48x128xbf16>, vector<128x384xbf16>, vector<48x384xf32> -> vector<48x384xf32>
    %42 = vector.extract_strided_slice %41 {offsets = [0, 0], sizes = [48, 128], strides = [1, 1]} : vector<48x384xf32> to vector<48x128xf32>
    %43 = vector.extract_strided_slice %37 {offsets = [0, 0], sizes = [1, 128], strides = [1, 1]} : vector<9x128xf32> to vector<1x128xf32>
    %44 = vector.broadcast %43 : vector<1x128xf32> to vector<48x128xf32>
    %45 = arith.addf %42, %44 : vector<48x128xf32>
    %cst_17 = arith.constant 0.176776692 : f32
    %46 = vector.broadcast %cst_17 : f32 to vector<48x128xf32>
    %47 = arith.mulf %45, %46 : vector<48x128xf32>
    %48 = vector.extract_strided_slice %41 {offsets = [0, 128], sizes = [48, 128], strides = [1, 1]} : vector<48x384xf32> to vector<48x128xf32>
    %49 = vector.extract_strided_slice %37 {offsets = [1, 0], sizes = [1, 128], strides = [1, 1]} : vector<9x128xf32> to vector<1x128xf32>
    %50 = vector.broadcast %49 : vector<1x128xf32> to vector<48x128xf32>
    %51 = arith.addf %48, %50 : vector<48x128xf32>
    %52 = vector.extract_strided_slice %41 {offsets = [0, 256], sizes = [48, 128], strides = [1, 1]} : vector<48x384xf32> to vector<48x128xf32>
    %53 = vector.extract_strided_slice %37 {offsets = [2, 0], sizes = [1, 128], strides = [1, 1]} : vector<9x128xf32> to vector<1x128xf32>
    %54 = vector.broadcast %53 : vector<1x128xf32> to vector<48x128xf32>
    %55 = arith.addf %52, %54 : vector<48x128xf32>
    %cst_18 = arith.constant 0.000000e+00 : f32
    %56 = vector.broadcast %cst_18 : f32 to vector<48x128xf32>
    %57 = vector.extract_strided_slice %47 {offsets = [0, 0], sizes = [48, 32], strides = [1, 1]} : vector<48x128xf32> to vector<48x32xf32>
    %58 = arith.truncf %57 : vector<48x32xf32> to vector<48x32xbf16>
    %59 = vector.extract_strided_slice %51 {offsets = [0, 0], sizes = [48, 32], strides = [1, 1]} : vector<48x128xf32> to vector<48x32xf32>
    %60 = arith.truncf %59 : vector<48x32xf32> to vector<48x32xbf16>
    %cst_19 = arith.constant dense<0.000000e+00> : vector<48x48xf32>
    %61 = tpu.matmul %58, %60, %cst_19 {dimension_numbers = #tpu.dot_dimension_numbers<[1], [1], [0], [0], [0, 0, 1, 0], [], []>} : vector<48x32xbf16>, vector<48x32xbf16>, vector<48x48xf32> -> vector<48x48xf32>
    %62 = arith.addf %61, %29 : vector<48x48xf32>
    %cst_20 = arith.constant dense<0xFF800000> : vector<48xf32>
    %63 = vector.multi_reduction <maximumf>, %62, %cst_20 [1] : vector<48x48xf32> to vector<48xf32>
    %64 = vector.shape_cast %63 : vector<48xf32> to vector<48x1xf32>
    %65 = vector.broadcast %64 : vector<48x1xf32> to vector<48x48xf32>
    %66 = arith.subf %62, %65 : vector<48x48xf32>
    %67 = math.exp %66 : vector<48x48xf32>
    %cst_21 = arith.constant dense<0.000000e+00> : vector<48xf32>
    %68 = vector.multi_reduction <add>, %67, %cst_21 [1] : vector<48x48xf32> to vector<48xf32>
    %69 = vector.shape_cast %68 : vector<48xf32> to vector<48x1xf32>
    %70 = vector.broadcast %69 : vector<48x1xf32> to vector<48x48xf32>
    %71 = arith.divf %67, %70 : vector<48x48xf32>
    %72 = arith.truncf %71 : vector<48x48xf32> to vector<48x48xbf16>
    %73 = vector.extract_strided_slice %55 {offsets = [0, 0], sizes = [48, 32], strides = [1, 1]} : vector<48x128xf32> to vector<48x32xf32>
    %74 = arith.truncf %73 : vector<48x32xf32> to vector<48x32xbf16>
    %cst_22 = arith.constant dense<0.000000e+00> : vector<48x32xf32>
    %75 = tpu.matmul %72, %74, %cst_22 {dimension_numbers = #tpu.dot_dimension_numbers<[1], [0], [0], [1], [0, 0, 1, 1], [], []>} : vector<48x48xbf16>, vector<48x32xbf16>, vector<48x32xf32> -> vector<48x32xf32>
    %76 = arith.truncf %75 : vector<48x32xf32> to vector<48x32xbf16>
    %c0_23 = arith.constant 0 : index
    %c0_24 = arith.constant 0 : index
    %c0_25 = arith.constant 0 : index
    %77 = vector.load %arg4[%c0_23, %c0_24, %c0_25] : memref<2x128x128xbf16, #tpu.memory_space<vmem>>, vector<1x32x128xbf16>
    %78 = vector.shape_cast %77 : vector<1x32x128xbf16> to vector<32x128xbf16>
    %cst_26 = arith.constant dense<0.000000e+00> : vector<48x128xf32>
    %79 = tpu.matmul %76, %78, %cst_26 {dimension_numbers = #tpu.dot_dimension_numbers<[1], [0], [0], [1], [0, 0, 1, 1], [], []>} : vector<48x32xbf16>, vector<32x128xbf16>, vector<48x128xf32> -> vector<48x128xf32>
    %80 = arith.addf %56, %79 : vector<48x128xf32>
    %81 = vector.extract_strided_slice %47 {offsets = [0, 32], sizes = [48, 32], strides = [1, 1]} : vector<48x128xf32> to vector<48x32xf32>
    %82 = arith.truncf %81 : vector<48x32xf32> to vector<48x32xbf16>
    %83 = vector.extract_strided_slice %51 {offsets = [0, 32], sizes = [48, 32], strides = [1, 1]} : vector<48x128xf32> to vector<48x32xf32>
    %84 = arith.truncf %83 : vector<48x32xf32> to vector<48x32xbf16>
    %cst_27 = arith.constant dense<0.000000e+00> : vector<48x48xf32>
    %85 = tpu.matmul %82, %84, %cst_27 {dimension_numbers = #tpu.dot_dimension_numbers<[1], [1], [0], [0], [0, 0, 1, 0], [], []>} : vector<48x32xbf16>, vector<48x32xbf16>, vector<48x48xf32> -> vector<48x48xf32>
    %86 = arith.addf %85, %29 : vector<48x48xf32>
    %cst_28 = arith.constant dense<0xFF800000> : vector<48xf32>
    %87 = vector.multi_reduction <maximumf>, %86, %cst_28 [1] : vector<48x48xf32> to vector<48xf32>
    %88 = vector.shape_cast %87 : vector<48xf32> to vector<48x1xf32>
    %89 = vector.broadcast %88 : vector<48x1xf32> to vector<48x48xf32>
    %90 = arith.subf %86, %89 : vector<48x48xf32>
    %91 = math.exp %90 : vector<48x48xf32>
    %cst_29 = arith.constant dense<0.000000e+00> : vector<48xf32>
    %92 = vector.multi_reduction <add>, %91, %cst_29 [1] : vector<48x48xf32> to vector<48xf32>
    %93 = vector.shape_cast %92 : vector<48xf32> to vector<48x1xf32>
    %94 = vector.broadcast %93 : vector<48x1xf32> to vector<48x48xf32>
    %95 = arith.divf %91, %94 : vector<48x48xf32>
    %96 = arith.truncf %95 : vector<48x48xf32> to vector<48x48xbf16>
    %97 = vector.extract_strided_slice %55 {offsets = [0, 32], sizes = [48, 32], strides = [1, 1]} : vector<48x128xf32> to vector<48x32xf32>
    %98 = arith.truncf %97 : vector<48x32xf32> to vector<48x32xbf16>
    %cst_30 = arith.constant dense<0.000000e+00> : vector<48x32xf32>
    %99 = tpu.matmul %96, %98, %cst_30 {dimension_numbers = #tpu.dot_dimension_numbers<[1], [0], [0], [1], [0, 0, 1, 1], [], []>} : vector<48x48xbf16>, vector<48x32xbf16>, vector<48x32xf32> -> vector<48x32xf32>
    %100 = arith.truncf %99 : vector<48x32xf32> to vector<48x32xbf16>
    %c0_31 = arith.constant 0 : index
    %c32 = arith.constant 32 : index
    %c0_32 = arith.constant 0 : index
    %101 = vector.load %arg4[%c0_31, %c32, %c0_32] : memref<2x128x128xbf16, #tpu.memory_space<vmem>>, vector<1x32x128xbf16>
    %102 = vector.shape_cast %101 : vector<1x32x128xbf16> to vector<32x128xbf16>
    %cst_33 = arith.constant dense<0.000000e+00> : vector<48x128xf32>
    %103 = tpu.matmul %100, %102, %cst_33 {dimension_numbers = #tpu.dot_dimension_numbers<[1], [0], [0], [1], [0, 0, 1, 1], [], []>} : vector<48x32xbf16>, vector<32x128xbf16>, vector<48x128xf32> -> vector<48x128xf32>
    %104 = arith.addf %80, %103 : vector<48x128xf32>
    %105 = vector.extract_strided_slice %47 {offsets = [0, 64], sizes = [48, 32], strides = [1, 1]} : vector<48x128xf32> to vector<48x32xf32>
    %106 = arith.truncf %105 : vector<48x32xf32> to vector<48x32xbf16>
    %107 = vector.extract_strided_slice %51 {offsets = [0, 64], sizes = [48, 32], strides = [1, 1]} : vector<48x128xf32> to vector<48x32xf32>
    %108 = arith.truncf %107 : vector<48x32xf32> to vector<48x32xbf16>
    %cst_34 = arith.constant dense<0.000000e+00> : vector<48x48xf32>
    %109 = tpu.matmul %106, %108, %cst_34 {dimension_numbers = #tpu.dot_dimension_numbers<[1], [1], [0], [0], [0, 0, 1, 0], [], []>} : vector<48x32xbf16>, vector<48x32xbf16>, vector<48x48xf32> -> vector<48x48xf32>
    %110 = arith.addf %109, %29 : vector<48x48xf32>
    %cst_35 = arith.constant dense<0xFF800000> : vector<48xf32>
    %111 = vector.multi_reduction <maximumf>, %110, %cst_35 [1] : vector<48x48xf32> to vector<48xf32>
    %112 = vector.shape_cast %111 : vector<48xf32> to vector<48x1xf32>
    %113 = vector.broadcast %112 : vector<48x1xf32> to vector<48x48xf32>
    %114 = arith.subf %110, %113 : vector<48x48xf32>
    %115 = math.exp %114 : vector<48x48xf32>
    %cst_36 = arith.constant dense<0.000000e+00> : vector<48xf32>
    %116 = vector.multi_reduction <add>, %115, %cst_36 [1] : vector<48x48xf32> to vector<48xf32>
    %117 = vector.shape_cast %116 : vector<48xf32> to vector<48x1xf32>
    %118 = vector.broadcast %117 : vector<48x1xf32> to vector<48x48xf32>
    %119 = arith.divf %115, %118 : vector<48x48xf32>
    %120 = arith.truncf %119 : vector<48x48xf32> to vector<48x48xbf16>
    %121 = vector.extract_strided_slice %55 {offsets = [0, 64], sizes = [48, 32], strides = [1, 1]} : vector<48x128xf32> to vector<48x32xf32>
    %122 = arith.truncf %121 : vector<48x32xf32> to vector<48x32xbf16>
    %cst_37 = arith.constant dense<0.000000e+00> : vector<48x32xf32>
    %123 = tpu.matmul %120, %122, %cst_37 {dimension_numbers = #tpu.dot_dimension_numbers<[1], [0], [0], [1], [0, 0, 1, 1], [], []>} : vector<48x48xbf16>, vector<48x32xbf16>, vector<48x32xf32> -> vector<48x32xf32>
    %124 = arith.truncf %123 : vector<48x32xf32> to vector<48x32xbf16>
    %c0_38 = arith.constant 0 : index
    %c64 = arith.constant 64 : index
    %c0_39 = arith.constant 0 : index
    %125 = vector.load %arg4[%c0_38, %c64, %c0_39] : memref<2x128x128xbf16, #tpu.memory_space<vmem>>, vector<1x32x128xbf16>
    %126 = vector.shape_cast %125 : vector<1x32x128xbf16> to vector<32x128xbf16>
    %cst_40 = arith.constant dense<0.000000e+00> : vector<48x128xf32>
    %127 = tpu.matmul %124, %126, %cst_40 {dimension_numbers = #tpu.dot_dimension_numbers<[1], [0], [0], [1], [0, 0, 1, 1], [], []>} : vector<48x32xbf16>, vector<32x128xbf16>, vector<48x128xf32> -> vector<48x128xf32>
    %128 = arith.addf %104, %127 : vector<48x128xf32>
    %129 = vector.extract_strided_slice %47 {offsets = [0, 96], sizes = [48, 32], strides = [1, 1]} : vector<48x128xf32> to vector<48x32xf32>
    %130 = arith.truncf %129 : vector<48x32xf32> to vector<48x32xbf16>
    %131 = vector.extract_strided_slice %51 {offsets = [0, 96], sizes = [48, 32], strides = [1, 1]} : vector<48x128xf32> to vector<48x32xf32>
    %132 = arith.truncf %131 : vector<48x32xf32> to vector<48x32xbf16>
    %cst_41 = arith.constant dense<0.000000e+00> : vector<48x48xf32>
    %133 = tpu.matmul %130, %132, %cst_41 {dimension_numbers = #tpu.dot_dimension_numbers<[1], [1], [0], [0], [0, 0, 1, 0], [], []>} : vector<48x32xbf16>, vector<48x32xbf16>, vector<48x48xf32> -> vector<48x48xf32>
    %134 = arith.addf %133, %29 : vector<48x48xf32>
    %cst_42 = arith.constant dense<0xFF800000> : vector<48xf32>
    %135 = vector.multi_reduction <maximumf>, %134, %cst_42 [1] : vector<48x48xf32> to vector<48xf32>
    %136 = vector.shape_cast %135 : vector<48xf32> to vector<48x1xf32>
    %137 = vector.broadcast %136 : vector<48x1xf32> to vector<48x48xf32>
    %138 = arith.subf %134, %137 : vector<48x48xf32>
    %139 = math.exp %138 : vector<48x48xf32>
    %cst_43 = arith.constant dense<0.000000e+00> : vector<48xf32>
    %140 = vector.multi_reduction <add>, %139, %cst_43 [1] : vector<48x48xf32> to vector<48xf32>
    %141 = vector.shape_cast %140 : vector<48xf32> to vector<48x1xf32>
    %142 = vector.broadcast %141 : vector<48x1xf32> to vector<48x48xf32>
    %143 = arith.divf %139, %142 : vector<48x48xf32>
    %144 = arith.truncf %143 : vector<48x48xf32> to vector<48x48xbf16>
    %145 = vector.extract_strided_slice %55 {offsets = [0, 96], sizes = [48, 32], strides = [1, 1]} : vector<48x128xf32> to vector<48x32xf32>
    %146 = arith.truncf %145 : vector<48x32xf32> to vector<48x32xbf16>
    %cst_44 = arith.constant dense<0.000000e+00> : vector<48x32xf32>
    %147 = tpu.matmul %144, %146, %cst_44 {dimension_numbers = #tpu.dot_dimension_numbers<[1], [0], [0], [1], [0, 0, 1, 1], [], []>} : vector<48x48xbf16>, vector<48x32xbf16>, vector<48x32xf32> -> vector<48x32xf32>
    %148 = arith.truncf %147 : vector<48x32xf32> to vector<48x32xbf16>
    %c0_45 = arith.constant 0 : index
    %c96 = arith.constant 96 : index
    %c0_46 = arith.constant 0 : index
    %149 = vector.load %arg4[%c0_45, %c96, %c0_46] : memref<2x128x128xbf16, #tpu.memory_space<vmem>>, vector<1x32x128xbf16>
    %150 = vector.shape_cast %149 : vector<1x32x128xbf16> to vector<32x128xbf16>
    %cst_47 = arith.constant dense<0.000000e+00> : vector<48x128xf32>
    %151 = tpu.matmul %148, %150, %cst_47 {dimension_numbers = #tpu.dot_dimension_numbers<[1], [0], [0], [1], [0, 0, 1, 1], [], []>} : vector<48x32xbf16>, vector<32x128xbf16>, vector<48x128xf32> -> vector<48x128xf32>
    %152 = arith.addf %128, %151 : vector<48x128xf32>
    %153 = vector.extract_strided_slice %37 {offsets = [3, 0], sizes = [1, 128], strides = [1, 1]} : vector<9x128xf32> to vector<1x128xf32>
    %154 = vector.broadcast %153 : vector<1x128xf32> to vector<48x128xf32>
    %155 = arith.addf %152, %154 : vector<48x128xf32>
    %156 = arith.addf %35, %155 : vector<48x128xf32>
    %157 = vector.extract_strided_slice %37 {offsets = [5, 0], sizes = [1, 128], strides = [1, 1]} : vector<9x128xf32> to vector<1x128xf32>
    %158 = vector.extract_strided_slice %37 {offsets = [6, 0], sizes = [1, 128], strides = [1, 1]} : vector<9x128xf32> to vector<1x128xf32>
    %cst_48 = arith.constant dense<0.000000e+00> : vector<48xf32>
    %159 = vector.multi_reduction <add>, %156, %cst_48 [1] : vector<48x128xf32> to vector<48xf32>
    %160 = vector.shape_cast %159 : vector<48xf32> to vector<48x1xf32>
    %cst_49 = arith.constant 1.280000e+02 : f32
    %161 = vector.broadcast %cst_49 : f32 to vector<48x1xf32>
    %162 = arith.divf %160, %161 : vector<48x1xf32>
    %163 = vector.broadcast %162 : vector<48x1xf32> to vector<48x128xf32>
    %164 = arith.subf %156, %163 : vector<48x128xf32>
    %165 = arith.mulf %164, %164 : vector<48x128xf32>
    %cst_50 = arith.constant dense<0.000000e+00> : vector<48xf32>
    %166 = vector.multi_reduction <add>, %165, %cst_50 [1] : vector<48x128xf32> to vector<48xf32>
    %167 = vector.shape_cast %166 : vector<48xf32> to vector<48x1xf32>
    %cst_51 = arith.constant 1.280000e+02 : f32
    %168 = vector.broadcast %cst_51 : f32 to vector<48x1xf32>
    %169 = arith.divf %167, %168 : vector<48x1xf32>
    %cst_52 = arith.constant 9.99999974E-6 : f32
    %170 = vector.broadcast %cst_52 : f32 to vector<48x1xf32>
    %171 = arith.addf %169, %170 : vector<48x1xf32>
    %172 = math.rsqrt %171 : vector<48x1xf32>
    %173 = vector.broadcast %172 : vector<48x1xf32> to vector<48x128xf32>
    %174 = arith.mulf %164, %173 : vector<48x128xf32>
    %175 = vector.broadcast %157 : vector<1x128xf32> to vector<48x128xf32>
    %176 = arith.mulf %174, %175 : vector<48x128xf32>
    %177 = vector.broadcast %158 : vector<1x128xf32> to vector<48x128xf32>
    %178 = arith.addf %176, %177 : vector<48x128xf32>
    %179 = arith.truncf %178 : vector<48x128xf32> to vector<48x128xbf16>
    %c0_53 = arith.constant 0 : index
    %c0_54 = arith.constant 0 : index
    %c0_55 = arith.constant 0 : index
    %180 = vector.load %arg5[%c0_53, %c0_54, %c0_55] : memref<2x128x512xbf16, #tpu.memory_space<vmem>>, vector<1x128x512xbf16>
    %181 = vector.shape_cast %180 : vector<1x128x512xbf16> to vector<128x512xbf16>
    %cst_56 = arith.constant dense<0.000000e+00> : vector<48x512xf32>
    %182 = tpu.matmul %179, %181, %cst_56 {dimension_numbers = #tpu.dot_dimension_numbers<[1], [0], [0], [1], [0, 0, 1, 1], [], []>} : vector<48x128xbf16>, vector<128x512xbf16>, vector<48x512xf32> -> vector<48x512xf32>
    %c0_57 = arith.constant 0 : index
    %c0_58 = arith.constant 0 : index
    %c0_59 = arith.constant 0 : index
    %183 = vector.load %arg8[%c0_57, %c0_58, %c0_59] : memref<2x1x512xf32, #tpu.memory_space<vmem>>, vector<1x1x512xf32>
    %184 = vector.shape_cast %183 : vector<1x1x512xf32> to vector<1x512xf32>
    %185 = vector.broadcast %184 : vector<1x512xf32> to vector<48x512xf32>
    %186 = arith.addf %182, %185 : vector<48x512xf32>
    %cst_60 = arith.constant 0.000000e+00 : f32
    %187 = vector.broadcast %cst_60 : f32 to vector<48x512xf32>
    %188 = arith.maximumf %186, %187 : vector<48x512xf32>
    %189 = arith.truncf %188 : vector<48x512xf32> to vector<48x512xbf16>
    %c0_61 = arith.constant 0 : index
    %c0_62 = arith.constant 0 : index
    %c0_63 = arith.constant 0 : index
    %190 = vector.load %arg6[%c0_61, %c0_62, %c0_63] : memref<2x512x128xbf16, #tpu.memory_space<vmem>>, vector<1x512x128xbf16>
    %191 = vector.shape_cast %190 : vector<1x512x128xbf16> to vector<512x128xbf16>
    %cst_64 = arith.constant dense<0.000000e+00> : vector<48x128xf32>
    %192 = tpu.matmul %189, %191, %cst_64 {dimension_numbers = #tpu.dot_dimension_numbers<[1], [0], [0], [1], [0, 0, 1, 1], [], []>} : vector<48x512xbf16>, vector<512x128xbf16>, vector<48x128xf32> -> vector<48x128xf32>
    %193 = vector.extract_strided_slice %37 {offsets = [4, 0], sizes = [1, 128], strides = [1, 1]} : vector<9x128xf32> to vector<1x128xf32>
    %194 = vector.broadcast %193 : vector<1x128xf32> to vector<48x128xf32>
    %195 = arith.addf %192, %194 : vector<48x128xf32>
    %196 = arith.addf %178, %195 : vector<48x128xf32>
    %197 = vector.extract_strided_slice %37 {offsets = [7, 0], sizes = [1, 128], strides = [1, 1]} : vector<9x128xf32> to vector<1x128xf32>
    %198 = vector.extract_strided_slice %37 {offsets = [8, 0], sizes = [1, 128], strides = [1, 1]} : vector<9x128xf32> to vector<1x128xf32>
    %cst_65 = arith.constant dense<0.000000e+00> : vector<48xf32>
    %199 = vector.multi_reduction <add>, %196, %cst_65 [1] : vector<48x128xf32> to vector<48xf32>
    %200 = vector.shape_cast %199 : vector<48xf32> to vector<48x1xf32>
    %cst_66 = arith.constant 1.280000e+02 : f32
    %201 = vector.broadcast %cst_66 : f32 to vector<48x1xf32>
    %202 = arith.divf %200, %201 : vector<48x1xf32>
    %203 = vector.broadcast %202 : vector<48x1xf32> to vector<48x128xf32>
    %204 = arith.subf %196, %203 : vector<48x128xf32>
    %205 = arith.mulf %204, %204 : vector<48x128xf32>
    %cst_67 = arith.constant dense<0.000000e+00> : vector<48xf32>
    %206 = vector.multi_reduction <add>, %205, %cst_67 [1] : vector<48x128xf32> to vector<48xf32>
    %207 = vector.shape_cast %206 : vector<48xf32> to vector<48x1xf32>
    %cst_68 = arith.constant 1.280000e+02 : f32
    %208 = vector.broadcast %cst_68 : f32 to vector<48x1xf32>
    %209 = arith.divf %207, %208 : vector<48x1xf32>
    %cst_69 = arith.constant 9.99999974E-6 : f32
    %210 = vector.broadcast %cst_69 : f32 to vector<48x1xf32>
    %211 = arith.addf %209, %210 : vector<48x1xf32>
    %212 = math.rsqrt %211 : vector<48x1xf32>
    %213 = vector.broadcast %212 : vector<48x1xf32> to vector<48x128xf32>
    %214 = arith.mulf %204, %213 : vector<48x128xf32>
    %215 = vector.broadcast %197 : vector<1x128xf32> to vector<48x128xf32>
    %216 = arith.mulf %214, %215 : vector<48x128xf32>
    %217 = vector.broadcast %198 : vector<1x128xf32> to vector<48x128xf32>
    %218 = arith.addf %216, %217 : vector<48x128xf32>
    %c1 = arith.constant 1 : index
    %c0_70 = arith.constant 0 : index
    %c0_71 = arith.constant 0 : index
    %219 = vector.load %arg7[%c1, %c0_70, %c0_71] : memref<2x9x128xf32, #tpu.memory_space<vmem>>, vector<1x9x128xf32>
    %220 = vector.shape_cast %219 : vector<1x9x128xf32> to vector<9x128xf32>
    %221 = arith.truncf %218 : vector<48x128xf32> to vector<48x128xbf16>
    %c1_72 = arith.constant 1 : index
    %c0_73 = arith.constant 0 : index
    %c0_74 = arith.constant 0 : index
    %222 = vector.load %arg3[%c1_72, %c0_73, %c0_74] : memref<2x128x384xbf16, #tpu.memory_space<vmem>>, vector<1x128x384xbf16>
    %223 = vector.shape_cast %222 : vector<1x128x384xbf16> to vector<128x384xbf16>
    %cst_75 = arith.constant dense<0.000000e+00> : vector<48x384xf32>
    %224 = tpu.matmul %221, %223, %cst_75 {dimension_numbers = #tpu.dot_dimension_numbers<[1], [0], [0], [1], [0, 0, 1, 1], [], []>} : vector<48x128xbf16>, vector<128x384xbf16>, vector<48x384xf32> -> vector<48x384xf32>
    %225 = vector.extract_strided_slice %224 {offsets = [0, 0], sizes = [48, 128], strides = [1, 1]} : vector<48x384xf32> to vector<48x128xf32>
    %226 = vector.extract_strided_slice %220 {offsets = [0, 0], sizes = [1, 128], strides = [1, 1]} : vector<9x128xf32> to vector<1x128xf32>
    %227 = vector.broadcast %226 : vector<1x128xf32> to vector<48x128xf32>
    %228 = arith.addf %225, %227 : vector<48x128xf32>
    %cst_76 = arith.constant 0.176776692 : f32
    %229 = vector.broadcast %cst_76 : f32 to vector<48x128xf32>
    %230 = arith.mulf %228, %229 : vector<48x128xf32>
    %231 = vector.extract_strided_slice %224 {offsets = [0, 128], sizes = [48, 128], strides = [1, 1]} : vector<48x384xf32> to vector<48x128xf32>
    %232 = vector.extract_strided_slice %220 {offsets = [1, 0], sizes = [1, 128], strides = [1, 1]} : vector<9x128xf32> to vector<1x128xf32>
    %233 = vector.broadcast %232 : vector<1x128xf32> to vector<48x128xf32>
    %234 = arith.addf %231, %233 : vector<48x128xf32>
    %235 = vector.extract_strided_slice %224 {offsets = [0, 256], sizes = [48, 128], strides = [1, 1]} : vector<48x384xf32> to vector<48x128xf32>
    %236 = vector.extract_strided_slice %220 {offsets = [2, 0], sizes = [1, 128], strides = [1, 1]} : vector<9x128xf32> to vector<1x128xf32>
    %237 = vector.broadcast %236 : vector<1x128xf32> to vector<48x128xf32>
    %238 = arith.addf %235, %237 : vector<48x128xf32>
    %cst_77 = arith.constant 0.000000e+00 : f32
    %239 = vector.broadcast %cst_77 : f32 to vector<48x128xf32>
    %240 = vector.extract_strided_slice %230 {offsets = [0, 0], sizes = [48, 32], strides = [1, 1]} : vector<48x128xf32> to vector<48x32xf32>
    %241 = arith.truncf %240 : vector<48x32xf32> to vector<48x32xbf16>
    %242 = vector.extract_strided_slice %234 {offsets = [0, 0], sizes = [48, 32], strides = [1, 1]} : vector<48x128xf32> to vector<48x32xf32>
    %243 = arith.truncf %242 : vector<48x32xf32> to vector<48x32xbf16>
    %cst_78 = arith.constant dense<0.000000e+00> : vector<48x48xf32>
    %244 = tpu.matmul %241, %243, %cst_78 {dimension_numbers = #tpu.dot_dimension_numbers<[1], [1], [0], [0], [0, 0, 1, 0], [], []>} : vector<48x32xbf16>, vector<48x32xbf16>, vector<48x48xf32> -> vector<48x48xf32>
    %245 = arith.addf %244, %29 : vector<48x48xf32>
    %cst_79 = arith.constant dense<0xFF800000> : vector<48xf32>
    %246 = vector.multi_reduction <maximumf>, %245, %cst_79 [1] : vector<48x48xf32> to vector<48xf32>
    %247 = vector.shape_cast %246 : vector<48xf32> to vector<48x1xf32>
    %248 = vector.broadcast %247 : vector<48x1xf32> to vector<48x48xf32>
    %249 = arith.subf %245, %248 : vector<48x48xf32>
    %250 = math.exp %249 : vector<48x48xf32>
    %cst_80 = arith.constant dense<0.000000e+00> : vector<48xf32>
    %251 = vector.multi_reduction <add>, %250, %cst_80 [1] : vector<48x48xf32> to vector<48xf32>
    %252 = vector.shape_cast %251 : vector<48xf32> to vector<48x1xf32>
    %253 = vector.broadcast %252 : vector<48x1xf32> to vector<48x48xf32>
    %254 = arith.divf %250, %253 : vector<48x48xf32>
    %255 = arith.truncf %254 : vector<48x48xf32> to vector<48x48xbf16>
    %256 = vector.extract_strided_slice %238 {offsets = [0, 0], sizes = [48, 32], strides = [1, 1]} : vector<48x128xf32> to vector<48x32xf32>
    %257 = arith.truncf %256 : vector<48x32xf32> to vector<48x32xbf16>
    %cst_81 = arith.constant dense<0.000000e+00> : vector<48x32xf32>
    %258 = tpu.matmul %255, %257, %cst_81 {dimension_numbers = #tpu.dot_dimension_numbers<[1], [0], [0], [1], [0, 0, 1, 1], [], []>} : vector<48x48xbf16>, vector<48x32xbf16>, vector<48x32xf32> -> vector<48x32xf32>
    %259 = arith.truncf %258 : vector<48x32xf32> to vector<48x32xbf16>
    %c1_82 = arith.constant 1 : index
    %c0_83 = arith.constant 0 : index
    %c0_84 = arith.constant 0 : index
    %260 = vector.load %arg4[%c1_82, %c0_83, %c0_84] : memref<2x128x128xbf16, #tpu.memory_space<vmem>>, vector<1x32x128xbf16>
    %261 = vector.shape_cast %260 : vector<1x32x128xbf16> to vector<32x128xbf16>
    %cst_85 = arith.constant dense<0.000000e+00> : vector<48x128xf32>
    %262 = tpu.matmul %259, %261, %cst_85 {dimension_numbers = #tpu.dot_dimension_numbers<[1], [0], [0], [1], [0, 0, 1, 1], [], []>} : vector<48x32xbf16>, vector<32x128xbf16>, vector<48x128xf32> -> vector<48x128xf32>
    %263 = arith.addf %239, %262 : vector<48x128xf32>
    %264 = vector.extract_strided_slice %230 {offsets = [0, 32], sizes = [48, 32], strides = [1, 1]} : vector<48x128xf32> to vector<48x32xf32>
    %265 = arith.truncf %264 : vector<48x32xf32> to vector<48x32xbf16>
    %266 = vector.extract_strided_slice %234 {offsets = [0, 32], sizes = [48, 32], strides = [1, 1]} : vector<48x128xf32> to vector<48x32xf32>
    %267 = arith.truncf %266 : vector<48x32xf32> to vector<48x32xbf16>
    %cst_86 = arith.constant dense<0.000000e+00> : vector<48x48xf32>
    %268 = tpu.matmul %265, %267, %cst_86 {dimension_numbers = #tpu.dot_dimension_numbers<[1], [1], [0], [0], [0, 0, 1, 0], [], []>} : vector<48x32xbf16>, vector<48x32xbf16>, vector<48x48xf32> -> vector<48x48xf32>
    %269 = arith.addf %268, %29 : vector<48x48xf32>
    %cst_87 = arith.constant dense<0xFF800000> : vector<48xf32>
    %270 = vector.multi_reduction <maximumf>, %269, %cst_87 [1] : vector<48x48xf32> to vector<48xf32>
    %271 = vector.shape_cast %270 : vector<48xf32> to vector<48x1xf32>
    %272 = vector.broadcast %271 : vector<48x1xf32> to vector<48x48xf32>
    %273 = arith.subf %269, %272 : vector<48x48xf32>
    %274 = math.exp %273 : vector<48x48xf32>
    %cst_88 = arith.constant dense<0.000000e+00> : vector<48xf32>
    %275 = vector.multi_reduction <add>, %274, %cst_88 [1] : vector<48x48xf32> to vector<48xf32>
    %276 = vector.shape_cast %275 : vector<48xf32> to vector<48x1xf32>
    %277 = vector.broadcast %276 : vector<48x1xf32> to vector<48x48xf32>
    %278 = arith.divf %274, %277 : vector<48x48xf32>
    %279 = arith.truncf %278 : vector<48x48xf32> to vector<48x48xbf16>
    %280 = vector.extract_strided_slice %238 {offsets = [0, 32], sizes = [48, 32], strides = [1, 1]} : vector<48x128xf32> to vector<48x32xf32>
    %281 = arith.truncf %280 : vector<48x32xf32> to vector<48x32xbf16>
    %cst_89 = arith.constant dense<0.000000e+00> : vector<48x32xf32>
    %282 = tpu.matmul %279, %281, %cst_89 {dimension_numbers = #tpu.dot_dimension_numbers<[1], [0], [0], [1], [0, 0, 1, 1], [], []>} : vector<48x48xbf16>, vector<48x32xbf16>, vector<48x32xf32> -> vector<48x32xf32>
    %283 = arith.truncf %282 : vector<48x32xf32> to vector<48x32xbf16>
    %c1_90 = arith.constant 1 : index
    %c32_91 = arith.constant 32 : index
    %c0_92 = arith.constant 0 : index
    %284 = vector.load %arg4[%c1_90, %c32_91, %c0_92] : memref<2x128x128xbf16, #tpu.memory_space<vmem>>, vector<1x32x128xbf16>
    %285 = vector.shape_cast %284 : vector<1x32x128xbf16> to vector<32x128xbf16>
    %cst_93 = arith.constant dense<0.000000e+00> : vector<48x128xf32>
    %286 = tpu.matmul %283, %285, %cst_93 {dimension_numbers = #tpu.dot_dimension_numbers<[1], [0], [0], [1], [0, 0, 1, 1], [], []>} : vector<48x32xbf16>, vector<32x128xbf16>, vector<48x128xf32> -> vector<48x128xf32>
    %287 = arith.addf %263, %286 : vector<48x128xf32>
    %288 = vector.extract_strided_slice %230 {offsets = [0, 64], sizes = [48, 32], strides = [1, 1]} : vector<48x128xf32> to vector<48x32xf32>
    %289 = arith.truncf %288 : vector<48x32xf32> to vector<48x32xbf16>
    %290 = vector.extract_strided_slice %234 {offsets = [0, 64], sizes = [48, 32], strides = [1, 1]} : vector<48x128xf32> to vector<48x32xf32>
    %291 = arith.truncf %290 : vector<48x32xf32> to vector<48x32xbf16>
    %cst_94 = arith.constant dense<0.000000e+00> : vector<48x48xf32>
    %292 = tpu.matmul %289, %291, %cst_94 {dimension_numbers = #tpu.dot_dimension_numbers<[1], [1], [0], [0], [0, 0, 1, 0], [], []>} : vector<48x32xbf16>, vector<48x32xbf16>, vector<48x48xf32> -> vector<48x48xf32>
    %293 = arith.addf %292, %29 : vector<48x48xf32>
    %cst_95 = arith.constant dense<0xFF800000> : vector<48xf32>
    %294 = vector.multi_reduction <maximumf>, %293, %cst_95 [1] : vector<48x48xf32> to vector<48xf32>
    %295 = vector.shape_cast %294 : vector<48xf32> to vector<48x1xf32>
    %296 = vector.broadcast %295 : vector<48x1xf32> to vector<48x48xf32>
    %297 = arith.subf %293, %296 : vector<48x48xf32>
    %298 = math.exp %297 : vector<48x48xf32>
    %cst_96 = arith.constant dense<0.000000e+00> : vector<48xf32>
    %299 = vector.multi_reduction <add>, %298, %cst_96 [1] : vector<48x48xf32> to vector<48xf32>
    %300 = vector.shape_cast %299 : vector<48xf32> to vector<48x1xf32>
    %301 = vector.broadcast %300 : vector<48x1xf32> to vector<48x48xf32>
    %302 = arith.divf %298, %301 : vector<48x48xf32>
    %303 = arith.truncf %302 : vector<48x48xf32> to vector<48x48xbf16>
    %304 = vector.extract_strided_slice %238 {offsets = [0, 64], sizes = [48, 32], strides = [1, 1]} : vector<48x128xf32> to vector<48x32xf32>
    %305 = arith.truncf %304 : vector<48x32xf32> to vector<48x32xbf16>
    %cst_97 = arith.constant dense<0.000000e+00> : vector<48x32xf32>
    %306 = tpu.matmul %303, %305, %cst_97 {dimension_numbers = #tpu.dot_dimension_numbers<[1], [0], [0], [1], [0, 0, 1, 1], [], []>} : vector<48x48xbf16>, vector<48x32xbf16>, vector<48x32xf32> -> vector<48x32xf32>
    %307 = arith.truncf %306 : vector<48x32xf32> to vector<48x32xbf16>
    %c1_98 = arith.constant 1 : index
    %c64_99 = arith.constant 64 : index
    %c0_100 = arith.constant 0 : index
    %308 = vector.load %arg4[%c1_98, %c64_99, %c0_100] : memref<2x128x128xbf16, #tpu.memory_space<vmem>>, vector<1x32x128xbf16>
    %309 = vector.shape_cast %308 : vector<1x32x128xbf16> to vector<32x128xbf16>
    %cst_101 = arith.constant dense<0.000000e+00> : vector<48x128xf32>
    %310 = tpu.matmul %307, %309, %cst_101 {dimension_numbers = #tpu.dot_dimension_numbers<[1], [0], [0], [1], [0, 0, 1, 1], [], []>} : vector<48x32xbf16>, vector<32x128xbf16>, vector<48x128xf32> -> vector<48x128xf32>
    %311 = arith.addf %287, %310 : vector<48x128xf32>
    %312 = vector.extract_strided_slice %230 {offsets = [0, 96], sizes = [48, 32], strides = [1, 1]} : vector<48x128xf32> to vector<48x32xf32>
    %313 = arith.truncf %312 : vector<48x32xf32> to vector<48x32xbf16>
    %314 = vector.extract_strided_slice %234 {offsets = [0, 96], sizes = [48, 32], strides = [1, 1]} : vector<48x128xf32> to vector<48x32xf32>
    %315 = arith.truncf %314 : vector<48x32xf32> to vector<48x32xbf16>
    %cst_102 = arith.constant dense<0.000000e+00> : vector<48x48xf32>
    %316 = tpu.matmul %313, %315, %cst_102 {dimension_numbers = #tpu.dot_dimension_numbers<[1], [1], [0], [0], [0, 0, 1, 0], [], []>} : vector<48x32xbf16>, vector<48x32xbf16>, vector<48x48xf32> -> vector<48x48xf32>
    %317 = arith.addf %316, %29 : vector<48x48xf32>
    %cst_103 = arith.constant dense<0xFF800000> : vector<48xf32>
    %318 = vector.multi_reduction <maximumf>, %317, %cst_103 [1] : vector<48x48xf32> to vector<48xf32>
    %319 = vector.shape_cast %318 : vector<48xf32> to vector<48x1xf32>
    %320 = vector.broadcast %319 : vector<48x1xf32> to vector<48x48xf32>
    %321 = arith.subf %317, %320 : vector<48x48xf32>
    %322 = math.exp %321 : vector<48x48xf32>
    %cst_104 = arith.constant dense<0.000000e+00> : vector<48xf32>
    %323 = vector.multi_reduction <add>, %322, %cst_104 [1] : vector<48x48xf32> to vector<48xf32>
    %324 = vector.shape_cast %323 : vector<48xf32> to vector<48x1xf32>
    %325 = vector.broadcast %324 : vector<48x1xf32> to vector<48x48xf32>
    %326 = arith.divf %322, %325 : vector<48x48xf32>
    %327 = arith.truncf %326 : vector<48x48xf32> to vector<48x48xbf16>
    %328 = vector.extract_strided_slice %238 {offsets = [0, 96], sizes = [48, 32], strides = [1, 1]} : vector<48x128xf32> to vector<48x32xf32>
    %329 = arith.truncf %328 : vector<48x32xf32> to vector<48x32xbf16>
    %cst_105 = arith.constant dense<0.000000e+00> : vector<48x32xf32>
    %330 = tpu.matmul %327, %329, %cst_105 {dimension_numbers = #tpu.dot_dimension_numbers<[1], [0], [0], [1], [0, 0, 1, 1], [], []>} : vector<48x48xbf16>, vector<48x32xbf16>, vector<48x32xf32> -> vector<48x32xf32>
    %331 = arith.truncf %330 : vector<48x32xf32> to vector<48x32xbf16>
    %c1_106 = arith.constant 1 : index
    %c96_107 = arith.constant 96 : index
    %c0_108 = arith.constant 0 : index
    %332 = vector.load %arg4[%c1_106, %c96_107, %c0_108] : memref<2x128x128xbf16, #tpu.memory_space<vmem>>, vector<1x32x128xbf16>
    %333 = vector.shape_cast %332 : vector<1x32x128xbf16> to vector<32x128xbf16>
    %cst_109 = arith.constant dense<0.000000e+00> : vector<48x128xf32>
    %334 = tpu.matmul %331, %333, %cst_109 {dimension_numbers = #tpu.dot_dimension_numbers<[1], [0], [0], [1], [0, 0, 1, 1], [], []>} : vector<48x32xbf16>, vector<32x128xbf16>, vector<48x128xf32> -> vector<48x128xf32>
    %335 = arith.addf %311, %334 : vector<48x128xf32>
    %336 = vector.extract_strided_slice %220 {offsets = [3, 0], sizes = [1, 128], strides = [1, 1]} : vector<9x128xf32> to vector<1x128xf32>
    %337 = vector.broadcast %336 : vector<1x128xf32> to vector<48x128xf32>
    %338 = arith.addf %335, %337 : vector<48x128xf32>
    %339 = arith.addf %218, %338 : vector<48x128xf32>
    %340 = vector.extract_strided_slice %220 {offsets = [5, 0], sizes = [1, 128], strides = [1, 1]} : vector<9x128xf32> to vector<1x128xf32>
    %341 = vector.extract_strided_slice %220 {offsets = [6, 0], sizes = [1, 128], strides = [1, 1]} : vector<9x128xf32> to vector<1x128xf32>
    %cst_110 = arith.constant dense<0.000000e+00> : vector<48xf32>
    %342 = vector.multi_reduction <add>, %339, %cst_110 [1] : vector<48x128xf32> to vector<48xf32>
    %343 = vector.shape_cast %342 : vector<48xf32> to vector<48x1xf32>
    %cst_111 = arith.constant 1.280000e+02 : f32
    %344 = vector.broadcast %cst_111 : f32 to vector<48x1xf32>
    %345 = arith.divf %343, %344 : vector<48x1xf32>
    %346 = vector.broadcast %345 : vector<48x1xf32> to vector<48x128xf32>
    %347 = arith.subf %339, %346 : vector<48x128xf32>
    %348 = arith.mulf %347, %347 : vector<48x128xf32>
    %cst_112 = arith.constant dense<0.000000e+00> : vector<48xf32>
    %349 = vector.multi_reduction <add>, %348, %cst_112 [1] : vector<48x128xf32> to vector<48xf32>
    %350 = vector.shape_cast %349 : vector<48xf32> to vector<48x1xf32>
    %cst_113 = arith.constant 1.280000e+02 : f32
    %351 = vector.broadcast %cst_113 : f32 to vector<48x1xf32>
    %352 = arith.divf %350, %351 : vector<48x1xf32>
    %cst_114 = arith.constant 9.99999974E-6 : f32
    %353 = vector.broadcast %cst_114 : f32 to vector<48x1xf32>
    %354 = arith.addf %352, %353 : vector<48x1xf32>
    %355 = math.rsqrt %354 : vector<48x1xf32>
    %356 = vector.broadcast %355 : vector<48x1xf32> to vector<48x128xf32>
    %357 = arith.mulf %347, %356 : vector<48x128xf32>
    %358 = vector.broadcast %340 : vector<1x128xf32> to vector<48x128xf32>
    %359 = arith.mulf %357, %358 : vector<48x128xf32>
    %360 = vector.broadcast %341 : vector<1x128xf32> to vector<48x128xf32>
    %361 = arith.addf %359, %360 : vector<48x128xf32>
    %362 = arith.truncf %361 : vector<48x128xf32> to vector<48x128xbf16>
    %c1_115 = arith.constant 1 : index
    %c0_116 = arith.constant 0 : index
    %c0_117 = arith.constant 0 : index
    %363 = vector.load %arg5[%c1_115, %c0_116, %c0_117] : memref<2x128x512xbf16, #tpu.memory_space<vmem>>, vector<1x128x512xbf16>
    %364 = vector.shape_cast %363 : vector<1x128x512xbf16> to vector<128x512xbf16>
    %cst_118 = arith.constant dense<0.000000e+00> : vector<48x512xf32>
    %365 = tpu.matmul %362, %364, %cst_118 {dimension_numbers = #tpu.dot_dimension_numbers<[1], [0], [0], [1], [0, 0, 1, 1], [], []>} : vector<48x128xbf16>, vector<128x512xbf16>, vector<48x512xf32> -> vector<48x512xf32>
    %c1_119 = arith.constant 1 : index
    %c0_120 = arith.constant 0 : index
    %c0_121 = arith.constant 0 : index
    %366 = vector.load %arg8[%c1_119, %c0_120, %c0_121] : memref<2x1x512xf32, #tpu.memory_space<vmem>>, vector<1x1x512xf32>
    %367 = vector.shape_cast %366 : vector<1x1x512xf32> to vector<1x512xf32>
    %368 = vector.broadcast %367 : vector<1x512xf32> to vector<48x512xf32>
    %369 = arith.addf %365, %368 : vector<48x512xf32>
    %cst_122 = arith.constant 0.000000e+00 : f32
    %370 = vector.broadcast %cst_122 : f32 to vector<48x512xf32>
    %371 = arith.maximumf %369, %370 : vector<48x512xf32>
    %372 = arith.truncf %371 : vector<48x512xf32> to vector<48x512xbf16>
    %c1_123 = arith.constant 1 : index
    %c0_124 = arith.constant 0 : index
    %c0_125 = arith.constant 0 : index
    %373 = vector.load %arg6[%c1_123, %c0_124, %c0_125] : memref<2x512x128xbf16, #tpu.memory_space<vmem>>, vector<1x512x128xbf16>
    %374 = vector.shape_cast %373 : vector<1x512x128xbf16> to vector<512x128xbf16>
    %cst_126 = arith.constant dense<0.000000e+00> : vector<48x128xf32>
    %375 = tpu.matmul %372, %374, %cst_126 {dimension_numbers = #tpu.dot_dimension_numbers<[1], [0], [0], [1], [0, 0, 1, 1], [], []>} : vector<48x512xbf16>, vector<512x128xbf16>, vector<48x128xf32> -> vector<48x128xf32>
    %376 = vector.extract_strided_slice %220 {offsets = [4, 0], sizes = [1, 128], strides = [1, 1]} : vector<9x128xf32> to vector<1x128xf32>
    %377 = vector.broadcast %376 : vector<1x128xf32> to vector<48x128xf32>
    %378 = arith.addf %375, %377 : vector<48x128xf32>
    %379 = arith.addf %361, %378 : vector<48x128xf32>
    %380 = vector.extract_strided_slice %220 {offsets = [7, 0], sizes = [1, 128], strides = [1, 1]} : vector<9x128xf32> to vector<1x128xf32>
    %381 = vector.extract_strided_slice %220 {offsets = [8, 0], sizes = [1, 128], strides = [1, 1]} : vector<9x128xf32> to vector<1x128xf32>
    %cst_127 = arith.constant dense<0.000000e+00> : vector<48xf32>
    %382 = vector.multi_reduction <add>, %379, %cst_127 [1] : vector<48x128xf32> to vector<48xf32>
    %383 = vector.shape_cast %382 : vector<48xf32> to vector<48x1xf32>
    %cst_128 = arith.constant 1.280000e+02 : f32
    %384 = vector.broadcast %cst_128 : f32 to vector<48x1xf32>
    %385 = arith.divf %383, %384 : vector<48x1xf32>
    %386 = vector.broadcast %385 : vector<48x1xf32> to vector<48x128xf32>
    %387 = arith.subf %379, %386 : vector<48x128xf32>
    %388 = arith.mulf %387, %387 : vector<48x128xf32>
    %cst_129 = arith.constant dense<0.000000e+00> : vector<48xf32>
    %389 = vector.multi_reduction <add>, %388, %cst_129 [1] : vector<48x128xf32> to vector<48xf32>
    %390 = vector.shape_cast %389 : vector<48xf32> to vector<48x1xf32>
    %cst_130 = arith.constant 1.280000e+02 : f32
    %391 = vector.broadcast %cst_130 : f32 to vector<48x1xf32>
    %392 = arith.divf %390, %391 : vector<48x1xf32>
    %cst_131 = arith.constant 9.99999974E-6 : f32
    %393 = vector.broadcast %cst_131 : f32 to vector<48x1xf32>
    %394 = arith.addf %392, %393 : vector<48x1xf32>
    %395 = math.rsqrt %394 : vector<48x1xf32>
    %396 = vector.broadcast %395 : vector<48x1xf32> to vector<48x128xf32>
    %397 = arith.mulf %387, %396 : vector<48x128xf32>
    %398 = vector.broadcast %380 : vector<1x128xf32> to vector<48x128xf32>
    %399 = arith.mulf %397, %398 : vector<48x128xf32>
    %400 = vector.broadcast %381 : vector<1x128xf32> to vector<48x128xf32>
    %401 = arith.addf %399, %400 : vector<48x128xf32>
    %402 = vector.extract_strided_slice %401 {offsets = [0, 0], sizes = [1, 128], strides = [1, 1]} : vector<48x128xf32> to vector<1x128xf32>
    %403 = vector.extract_strided_slice %401 {offsets = [24, 0], sizes = [1, 128], strides = [1, 1]} : vector<48x128xf32> to vector<1x128xf32>
    %404 = tpu.concatenate %402, %403 in 0 : vector<1x128xf32>, vector<1x128xf32> -> vector<2x128xf32>
    %c0_132 = arith.constant 0 : index
    %c0_133 = arith.constant 0 : index
    %405 = vector.load %arg9[%c0_132, %c0_133] : memref<2x128xf32, #tpu.memory_space<vmem>>, vector<1x128xf32>
    %c1_134 = arith.constant 1 : index
    %c0_135 = arith.constant 0 : index
    %406 = vector.load %arg9[%c1_134, %c0_135] : memref<2x128xf32, #tpu.memory_space<vmem>>, vector<1x128xf32>
    %cst_136 = arith.constant dense<0.000000e+00> : vector<2xf32>
    %407 = vector.multi_reduction <add>, %404, %cst_136 [1] : vector<2x128xf32> to vector<2xf32>
    %408 = vector.shape_cast %407 : vector<2xf32> to vector<2x1xf32>
    %cst_137 = arith.constant 1.280000e+02 : f32
    %409 = vector.broadcast %cst_137 : f32 to vector<2x1xf32>
    %410 = arith.divf %408, %409 : vector<2x1xf32>
    %411 = vector.broadcast %410 : vector<2x1xf32> to vector<2x128xf32>
    %412 = arith.subf %404, %411 : vector<2x128xf32>
    %413 = arith.mulf %412, %412 : vector<2x128xf32>
    %cst_138 = arith.constant dense<0.000000e+00> : vector<2xf32>
    %414 = vector.multi_reduction <add>, %413, %cst_138 [1] : vector<2x128xf32> to vector<2xf32>
    %415 = vector.shape_cast %414 : vector<2xf32> to vector<2x1xf32>
    %cst_139 = arith.constant 1.280000e+02 : f32
    %416 = vector.broadcast %cst_139 : f32 to vector<2x1xf32>
    %417 = arith.divf %415, %416 : vector<2x1xf32>
    %cst_140 = arith.constant 9.99999974E-6 : f32
    %418 = vector.broadcast %cst_140 : f32 to vector<2x1xf32>
    %419 = arith.addf %417, %418 : vector<2x1xf32>
    %420 = math.rsqrt %419 : vector<2x1xf32>
    %421 = vector.broadcast %420 : vector<2x1xf32> to vector<2x128xf32>
    %422 = arith.mulf %412, %421 : vector<2x128xf32>
    %423 = vector.broadcast %405 : vector<1x128xf32> to vector<2x128xf32>
    %424 = arith.mulf %422, %423 : vector<2x128xf32>
    %425 = vector.broadcast %406 : vector<1x128xf32> to vector<2x128xf32>
    %426 = arith.addf %424, %425 : vector<2x128xf32>
    %c0_141 = arith.constant 0 : index
    %c0_142 = arith.constant 0 : index
    %427 = vector.load %arg10[%c0_141, %c0_142] : memref<2x128xf32, #tpu.memory_space<vmem>>, vector<2x128xf32>
    tpu.vector_store %arg10[%c0_141, %c0_142], %426 {strides = array<i32>} : memref<2x128xf32, #tpu.memory_space<vmem>>, vector<2x128xf32>,
    return
  }
}

</mosaic_0001>

<bundles_post_ra>
// kernel: vit_encoder_forward.1
= control target key start
LH: loop header
LB: loop body
LE: loop exit
PB: predicated region body
PF: predicated region fallthrough
CT: control target
= control target key end

     0   :  { %v7033_v1 = vmov 0.0   ;;  %vm7034_vm0 = vmmov 0   ;;  %vm159_vm1 = vcmask 523264   ;;  %v7035_v38 = vmov 0   ;;  %s9056_s0 = inlined_call_operand.vmem [shape: f32[48,64], index: 0, kind: input, shape index: {}]   ;;  %s9057_s1 = inlined_call_operand.vmem [shape: f32[48,128], index: 1, kind: input, shape index: {}]   ;;  %s9058_s2 = inlined_call_operand.vmem [shape: bf16[64,128], index: 2, kind: input, shape index: {}]   ;;  %s9059_s3 = inlined_call_operand.vmem [shape: bf16[2,128,384], index: 3, kind: input, shape index: {}]   ;;  %s9060_s4 = inlined_call_operand.vmem [shape: bf16[2,128,128], index: 4, kind: input, shape index: {}]   ;;  %s9061_s5 = inlined_call_operand.vmem [shape: bf16[2,128,512], index: 5, kind: input, shape index: {}]   ;;  %s9062_s6 = inlined_call_operand.vmem [shape: bf16[2,512,128], index: 6, kind: input, shape index: {}]   ;;  %s9063_s7 = inlined_call_operand.vmem [shape: f32[2,9,128], index: 7, kind: input, shape index: {}]   ;;  %s9064_s8 = inlined_call_operand.vmem [shape: f32[2,1,512], index: 8, kind: input, shape index: {}]   ;;  %s9065_s9 = inlined_call_operand.vmem [shape: f32[2,128], index: 9, kind: input, shape index: {}]   ;;  %s9066_s10 = inlined_call_operand.hbm [shape: f32[2,128], index: 10, kind: output, shape index: {}]  }
   0x1   :  { %v6528_v0 = vld [vmem:[%s9058_s2] sm:$0xff]   ;;  %6022 = vmatprep.subr.bf16.mxu0 %v7033_v1  ;;  %v6529_v2 = vld [vmem:[%s9058_s2 + $0x8] sm:$0xff]   ;;  %6030 = vmatprep.mubr.msk.bf16.mxu0 %vm7034_vm0, %v7033_v1  ;;  %v6530_v3 = vld [vmem:[%s9058_s2 + $0x10] sm:$0xff]  }
   0x2   :  { %6023 = vmatpush3.bf16.msra.mxu0 %v6528_v0  ;;  %v6532_v4 = vld [vmem:[%s9059_s3 + $0x4] ss:$12 sps:$4 sm:$0xff]   ;;  %v6534_v5 = vld [vmem:[%s9059_s3] ss:$12 sps:$4 sm:$0xff]   ;;  %v6531_v6 = vld [vmem:[%s9058_s2 + $0x18] sm:$0xff]   ;;  %423 = vmatprep.mubr.bf16.mxu1 %v7035_v38 }
   0x3   :  { %6024 = vmatprep.subr.bf16.mxu0 %v7033_v1  ;;  %v112_v7 = vld [vmem:[%s9056_s0] sm:$0xff]  ;;  %391 = vmatprep.subr.bf16.mxu1 %v6532_v4  ;;  %v6536_v8 = vld [vmem:[%s9059_s3 + $0x1c] ss:$12 sps:$4 sm:$0xff]   ;;  %v6544_v15 = vld [vmem:[%s9059_s3 + $0x4c] ss:$12 sps:$4 sm:$0xff]  }
   0x4   :  { %392 = vmatpush1.bf16.msra.mxu1 %v6534_v5  ;;  %v6538_v9 = vld [vmem:[%s9059_s3 + $0x18] ss:$12 sps:$4 sm:$0xff]   ;;  %v113_v10 = vld [vmem:[%s9056_s0 + $0x8] sm:$0xff]  ;;  %v6540_v11 = vld [vmem:[%s9059_s3 + $0x34] ss:$12 sps:$4 sm:$0xff]  }
   0x5   :  { %393 = vmatprep.subr.bf16.mxu1 %v6536_v8  ;;  %v118_v12 = vpack.c.bf16 %v113_v10, %v112_v7  ;;  %v6542_v13 = vld [vmem:[%s9059_s3 + $0x30] ss:$12 sps:$4 sm:$0xff]   ;;  %v6535_v14 = vld [vmem:[%s9059_s3 + $0x8] ss:$12 sps:$4 sm:$0xff]   ;;  %v6539_v19 = vld [vmem:[%s9059_s3 + $0x20] ss:$12 sps:$4 sm:$0xff]  }
   0x6   :  { %6025 = vmatpush3.bf16.msra.mxu0 %v6529_v2  ;;  %v114_v16 = vld [vmem:[%s9056_s0 + $0x10] sm:$0xff]  ;;  %v115_v17 = vld [vmem:[%s9056_s0 + $0x18] sm:$0xff]  ;;  %v6550_v22 = vld [vmem:[%s9059_s3 + $0x60] ss:$12 sps:$4 sm:$0xff]  }
   0x7   :  { %6026 = vmatprep.subr.bf16.mxu0 %v7033_v1  ;;  %v6546_v18 = vld [vmem:[%s9059_s3 + $0x48] ss:$12 sps:$4 sm:$0xff]   ;;  %v6548_v20 = vld [vmem:[%s9059_s3 + $0x64] ss:$12 sps:$4 sm:$0xff]   ;;  %v119_v23 = vpack.c.bf16 %v115_v17, %v114_v16  ;;  %v6555_v32 = vld [vmem:[%s9059_s3 + $0x80] ss:$12 sps:$4 sm:$0xff]  }
   0x8   :  { %394 = vmatpush1.bf16.msra.mxu1 %v6538_v9  ;;  %v6543_v21 = vld [vmem:[%s9059_s3 + $0x38] ss:$12 sps:$4 sm:$0xff]   ;;  %v6552_v24 = vld [vmem:[%s9059_s3 + $0x7c] ss:$12 sps:$4 sm:$0xff]   ;;  %v6556_v29 = vld [vmem:[%s9059_s3 + $0x94] ss:$12 sps:$4 sm:$0xff]  }
   0x9   :  { %395 = vmatprep.subr.bf16.mxu1 %v6540_v11  ;;  %v6554_v25 = vld [vmem:[%s9059_s3 + $0x78] ss:$12 sps:$4 sm:$0xff]   ;;  %v117_v27 = vld [vmem:[%s9056_s0 + $0x28] sm:$0xff]  ;;  %v6547_v28 = vld [vmem:[%s9059_s3 + $0x50] ss:$12 sps:$4 sm:$0xff]  }
   0xa   :  { %6027 = vmatpush3.bf16.msra.mxu0 %v6530_v3  ;;  %v116_v26 = vld [vmem:[%s9056_s0 + $0x20] sm:$0xff]  ;;  %v6551_v30 = vld [vmem:[%s9059_s3 + $0x68] ss:$12 sps:$4 sm:$0xff]   ;;  %v6558_v33 = vld [vmem:[%s9059_s3 + $0x90] ss:$12 sps:$4 sm:$0xff]  }
   0xb   :  { %6028 = vmatprep.subr.bf16.mxu0 %v7033_v1  ;;  %v120_v31 = vpack.c.bf16 %v117_v27, %v116_v26  ;;  %v6559_v34 = vld [vmem:[%s9059_s3 + $0x98] ss:$12 sps:$4 sm:$0xff]   ;;  %v6562_v36 = vld [vmem:[%s9059_s3 + $0xa8] ss:$12 sps:$4 sm:$0xff]   ;;  %v6563_v37 = vld [vmem:[%s9059_s3 + $0xb0] ss:$12 sps:$4 sm:$0xff]  }
   0xc   :  { %396 = vmatpush1.bf16.msra.mxu1 %v6542_v13  ;;  %v6560_v35 = vld [vmem:[%s9059_s3 + $0xac] ss:$12 sps:$4 sm:$0xff]  }
   0xd   :  { %397 = vmatprep.subr.bf16.mxu1 %v6544_v15 }
   0xe   :  { %6029 = vmatpush3.bf16.msra.mxu0 %v6531_v6 }
   0xf   :  { %6042 = vmatprep.subr.bf16.mxu0 %v7033_v1 }
  0x10   :  { %398 = vmatpush1.bf16.msra.mxu1 %v6546_v18 }
  0x11   :  { %6031 = vmatmul.mubr.msk.bf16.vlgmr.msra.gmra.mrb[0].mxu0 %vm159_vm1, %v118_v12  ;;  %399 = vmatprep.subr.bf16.mxu1 %v6548_v20 }
  0x12   :  { %6034 = vmatprep.mubr.msk.bf16.mxu0 %vm7034_vm0, %v7033_v1  ;;  %6043 = vmatpush3.bf16.msra.mxu0 %v6535_v14 }
  0x13   :  { %6044 = vmatprep.subr.bf16.mxu0 %v7033_v1 }
  0x14   :  { %400 = vmatpush1.bf16.msra.mxu1 %v6550_v22 }
  0x15   :  { %401 = vmatprep.subr.bf16.mxu1 %v6552_v24 }
  0x16   :  { %6045 = vmatpush3.bf16.msra.mxu0 %v6539_v19 }
  0x17   :  { %6046 = vmatprep.subr.bf16.mxu0 %v7033_v1 }
  0x18   :  { %402 = vmatpush1.bf16.msra.mxu1 %v6554_v25 }
  0x19   :  { %6035 = vmatmul.mubr.msk.bf16.gmra.mrb[4].mxu0 %vm159_vm1, %v119_v23  ;;  %403 = vmatprep.subr.bf16.mxu1 %v6556_v29 }
  0x1a   :  { %6038 = vmatprep.mubr.msk.bf16.mxu0 %vm7034_vm0, %v7033_v1  ;;  %6047 = vmatpush3.bf16.msra.mxu0 %v6543_v21 }
  0x1b   :  { %6048 = vmatprep.subr.bf16.mxu0 %v7033_v1 }
  0x1c   :  { %404 = vmatpush1.bf16.msra.mxu1 %v6558_v33 }
  0x1d   :  { %405 = vmatprep.subr.bf16.mxu1 %v6560_v35 }
  0x1e   :  { %6049 = vmatpush3.bf16.msra.mxu0 %v6547_v28 }
  0x1f   :  { %6050 = vmatprep.subr.bf16.mxu0 %v7033_v1 }
  0x20   :  { %406 = vmatpush1.bf16.msra.mxu1 %v6562_v36 }
  0x21   :  { %6039 = vmatmul.mubr.msk.bf16.gmra.mrb[8].mxu0 %vm159_vm1, %v120_v31  ;;  %6070 = vmatprep.subr.bf16.mxu1 %v7033_v1 }
  0x22   :  { %6051 = vmatpush3.bf16.msra.mxu0 %v6551_v30  ;;  %6058 = vmatprep.mubr.msk.bf16.mxu0 %vm7034_vm0, %v7033_v1 }
  0x23   :  { %6052 = vmatprep.subr.bf16.mxu0 %v7033_v1 }
  0x26   :  { %6053 = vmatpush3.bf16.msra.mxu0 %v6555_v32 }
  0x27   :  { %6054 = vmatprep.subr.bf16.mxu0 %v7033_v1 }
  0x2a   :  { %6055 = vmatpush3.bf16.msra.mxu0 %v6559_v34 }
  0x2b   :  { %6056 = vmatprep.subr.bf16.mxu0 %v7033_v1 }
  0x2e   :  { %6057 = vmatpush3.bf16.msra.mxu0 %v6563_v37 }
  0x2f   :  { %6088 = vmatprep.subr.bf16.mxu0 %v7033_v1 }
  0x30   :  { %15 = vsyncpa [#allocation3], 0  ;;  %v129_v39 = vld [vmem:[%s9057_s1] sm:$0xff]  ;;  %v130_v41 = vld [vmem:[%s9057_s1 + $0x8] sm:$0xff]  ;;  %v44_v3 = vlaneseq  ;;  %vm553_vm2 = vcmask 261120   ;;  %s7036_s29 = smov 96  }
  0x31   :  { %v131_v48 = vld [vmem:[%s9057_s1 + $0x10] sm:$0xff]  ;;  %v132_v50 = vld [vmem:[%s9057_s1 + $0x18] sm:$0xff]  ;;  %v133_v57 = vld [vmem:[%s9057_s1 + $0x20] sm:$0xff]  ;;  %vm629_vm4 = vcmask 392192   ;;  %s7038_s30 = smov 64   ;;  %s7039_s18 = smov 32  }
  0x32   :  { %v134_v59 = vld [vmem:[%s9057_s1 + $0x28] sm:$0xff]  ;;  %v7271_v4 = vshrl.u32 %v44_v3, 7  ;;  %v226_v6 = vld [vmem:[%s9063_s7] sm:$0xff]  ;;  %vm5256_vm8 = vcmask 1040384   ;;  %vm5260_vm9 = vcmask 1041408   ;;  %s7040_s28 = smov [#allocation2]  }
  0x33   :  { %s5291_s11 = sshll.u32 %s7040_s28, 4  ;;  %s5292_s11 = int_to_ptr.vmem [resolvable:$true] %s5291_s11 }
  0x34   :  { %v7274_v5 = vsub.s32 0, %v7271_v4  ;;  %v7280_v7 = vsub.s32 2, %v7271_v4  ;;  %v7283_v8 = vsub.s32 1, %v7271_v4  ;;  %s7009_s12 = scalar_lea.vmem %s5292_s11, 32  ;;  %p7014_p1 = scmp.lt.s32.totalorder %s5292_s11, %s5292_s11 }
  0x35   :  { %p7010_p0 = scmp.ne.s32.totalorder %s5292_s11, %s7009_s12  ;;  %p7015_p2 = scmp.lt.s32.totalorder %s7009_s12, %s7009_s12 }
  0x36   :  { %v7286_v9 = vrot.slane %v226_v6, %v7274_v5  ;;  %v7289_v10 = vrot.slane %v226_v6, %v7280_v7  ;;  %v7292_v13 = vrot.slane %v226_v6, %v7283_v8 }
  0x37   :  { %p7016_p3 = por %p7015_p2, %p7014_p1 }
  0x39   :  { %p7017_p4 = pnand %p7016_p3, %p7010_p0 }
  0xe4   :  { %v203_v40 = vpop.f32.mrb[0].mxu0 }
  0xe5   :  { %v6032_v42 = vpop.f32.mrb[1].mxu0  ;;  %v7230_v44 = vadd.f32 %v203_v40, %v129_v39 }
  0xe6   :  { %v206_v43 = vpop.f32.mrb[2].mxu0 }
  0xe7   :  { %v7232_v45 = vadd.f32 %v206_v43, %v130_v41  ;;  %v6033_v46 = vpop.f32.mrb[3].mxu0 }
  0xe9   :  { %v228_v47 = vpack.c.bf16 %v7232_v45, %v7230_v44 }
  0xeb   :  { %424 = vmatmul.mubr.bf16.vlgmr.msra.gmra.mrb[0].mxu1 %v228_v47  ;;  %6059 = vmatmul.mubr.bf16.vlgmr.msra.gmra.mrb[12].mxu0 %v228_v47 }
  0xec   :  { %v211_v49 = vpop.f32.mrb[4].mxu0  ;;  %433 = vmatprep.mubr.bf16.mxu1 %v7035_v38  ;;  %6062 = vmatprep.mubr.msk.bf16.mxu0 %vm7034_vm0, %v7033_v1 }
  0xed   :  { %v6036_v51 = vpop.f32.mrb[5].mxu0  ;;  %v7245_v53 = vadd.f32 %v211_v49, %v131_v48 }
  0xee   :  { %v214_v52 = vpop.f32.mrb[6].mxu0 }
  0xef   :  { %v7247_v54 = vadd.f32 %v214_v52, %v132_v50  ;;  %v6037_v55 = vpop.f32.mrb[7].mxu0 }
  0xf1   :  { %v229_v56 = vpack.c.bf16 %v7247_v54, %v7245_v53 }
  0xf3   :  { %434 = vmatmul.mubr.bf16.gmra.mrb[4].mxu1 %v229_v56  ;;  %6063 = vmatmul.mubr.bf16.gmra.mrb[16].mxu0 %v229_v56 }
  0xf4   :  { %v219_v58 = vpop.f32.mrb[8].mxu0  ;;  %443 = vmatprep.mubr.bf16.mxu1 %v7035_v38  ;;  %6066 = vmatprep.mubr.msk.bf16.mxu0 %vm7034_vm0, %v7033_v1 }
  0xf5   :  { %v6040_v60 = vpop.f32.mrb[9].mxu0  ;;  %v7260_v62 = vadd.f32 %v219_v58, %v133_v57 }
  0xf6   :  { %v222_v61 = vpop.f32.mrb[10].mxu0 }
  0xf7   :  { %v7262_v63 = vadd.f32 %v222_v61, %v134_v59  ;;  %v6041_v0 = vpop.f32.mrb[11].mxu0 }
  0xf9   :  { %v230_v2 = vpack.c.bf16 %v7262_v63, %v7260_v62 }
  0xfb   :  { %444 = vmatmul.mubr.bf16.gmra.mrb[8].mxu1 %v230_v2  ;;  %6067 = vmatmul.mubr.bf16.gmra.mrb[20].mxu0 %v230_v2 }
  0xfc   :  { %6076 = vmatprep.mubr.msk.bf16.mxu1 %vm7034_vm0, %v7033_v1  ;;  %6094 = vmatprep.mubr.msk.bf16.mxu0 %vm7034_vm0, %v7033_v1 }
 0x1be   :  { %v425_v11 = vpop.f32.mrb[0].mxu1  ;;  %v488_v12 = vpop.f32.mrb[12].mxu0 }
 0x1bf   :  { %v515_v14 = vadd.f32 %v7286_v9, %v425_v11  ;;  %v427_v15 = vpop.f32.mrb[1].mxu1  ;;  %v6060_v16 = vpop.f32.mrb[13].mxu0  ;;  %v541_v19 = vadd.f32 %v7289_v10, %v488_v12 }
 0x1c0   :  { %v429_v17 = vpop.f32.mrb[2].mxu1  ;;  %v491_v18 = vpop.f32.mrb[14].mxu0  ;;  %v531_v24 = vadd.f32 %v7292_v13, %v427_v15 }
 0x1c1   :  { %v516_v20 = vadd.f32 %v7286_v9, %v429_v17  ;;  %v542_v21 = vadd.f32 %v7289_v10, %v491_v18  ;;  %v431_v22 = vpop.f32.mrb[3].mxu1  ;;  %v6061_v23 = vpop.f32.mrb[15].mxu0  ;;  %v521_v26 = vmul.f32 0.17677669, %v515_v14 }
 0x1c2   :  { %v532_v25 = vadd.f32 %v7292_v13, %v431_v22 }
 0x1c3   :  { %v522_v27 = vmul.f32 0.17677669, %v516_v20  ;;  %v7300_v28 = vpack.c.bf16 %v542_v21, %v541_v19 }
 0x1c4   :  { %v7302_v29 = vpack.c.bf16 %v532_v25, %v531_v24 }
 0x1c5   :  { %v7304_v30 = vpack.c.bf16 %v522_v27, %v521_v26  ;;  %6089 = vmatpush3.bf16.msra.mxu0 %v7300_v28 }
 0x1c6   :  { %v435_v31 = vpop.f32.mrb[4].mxu1  ;;  %v496_v32 = vpop.f32.mrb[16].mxu0  ;;  %787 = vrot.lane.b32.xlu0 %v7302_v29, %s7036_s29  ;;  %v564_v33 = vsel %vm553_vm2, %v7302_v29, 0  ;;  %6090 = vmatprep.subr.bf16.mxu0 %v7033_v1 }
 0x1c7   :  { %v517_v34 = vadd.f32 %v7286_v9, %v435_v31  ;;  %v437_v35 = vpop.f32.mrb[5].mxu1  ;;  %v6064_v36 = vpop.f32.mrb[17].mxu0  ;;  %6071 = vmatpush3.bf16.xpose.msra.mxu1 %v564_v33  ;;  %v543_v40 = vadd.f32 %v7289_v10, %v496_v32  ;;  %v45_v33 = vand.u32 127, %v44_v3 }
 0x1c8   :  { %v439_v37 = vpop.f32.mrb[6].mxu1  ;;  %v499_v39 = vpop.f32.mrb[18].mxu0  ;;  %6072 = vmatprep.subr.bf16.mxu1 %v7033_v1  ;;  %v533_v47 = vadd.f32 %v7292_v13, %v437_v35 }
 0x1c9   :  { %v518_v41 = vadd.f32 %v7286_v9, %v439_v37  ;;  %v544_v42 = vadd.f32 %v7289_v10, %v499_v39  ;;  %v441_v43 = vpop.f32.mrb[7].mxu1  ;;  %v6065_v46 = vpop.f32.mrb[19].mxu0  ;;  %v523_v49 = vmul.f32 0.17677669, %v517_v34  ;;  %vm65_vm3 = vcmp.lt.s32.totalorder %v45_v33, 17 }
 0x1ca   :  { %v534_v48 = vadd.f32 %v7292_v13, %v441_v43  ;;  %v7037_v34 = vmov -1e+30   ;;  %vm91_vm5 = vcmp.ge.s32.totalorder %v45_v33, 24  ;;  %vm92_vm6 = vcmp.lt.s32.totalorder %v45_v33, 41 }
 0x1cb   :  { %v524_v50 = vmul.f32 0.17677669, %v518_v41  ;;  %v7319_v51 = vpack.c.bf16 %v544_v42, %v543_v40  ;;  %v7385_v35 = vsel %vm65_vm3, 0.0, %v7037_v34  ;;  %vm93_vm7 = vmand %vm91_vm5, %vm92_vm6 }
 0x1cc   :  { %v7321_v52 = vpack.c.bf16 %v534_v48, %v533_v47  ;;  %v7394_v46 = vsel %vm93_vm7, 0.0, %v7037_v34 }
 0x1cd   :  { %v7323_v55 = vpack.c.bf16 %v524_v50, %v523_v49  ;;  %6091 = vmatpush3.bf16.msra.mxu0 %v7319_v51 }
 0x1ce   :  { %v445_v56 = vpop.f32.mrb[8].mxu1  ;;  %v504_v57 = vpop.f32.mrb[20].mxu0  ;;  %789 = vrot.lane.b32.xlu0 %v7321_v52, %s7036_s29  ;;  %v567_v58 = vsel %vm553_vm2, %v7321_v52, 0  ;;  %6092 = vmatprep.subr.bf16.mxu0 %v7033_v1 }
 0x1cf   :  { %v519_v59 = vadd.f32 %v7286_v9, %v445_v56  ;;  %v447_v60 = vpop.f32.mrb[9].mxu1  ;;  %v6068_v61 = vpop.f32.mrb[21].mxu0  ;;  %6073 = vmatpush3.bf16.xpose.msra.mxu1 %v567_v58  ;;  %v545_v6 = vadd.f32 %v7289_v10, %v504_v57 }
 0x1d0   :  { %v449_v0 = vpop.f32.mrb[10].mxu1  ;;  %v507_v2 = vpop.f32.mrb[22].mxu0  ;;  %6074 = vmatprep.subr.bf16.mxu1 %v7033_v1  ;;  %v535_v16 = vadd.f32 %v7292_v13, %v447_v60 }
 0x1d1   :  { %v520_v11 = vadd.f32 %v7286_v9, %v449_v0  ;;  %v546_v12 = vadd.f32 %v7289_v10, %v507_v2  ;;  %v451_v14 = vpop.f32.mrb[11].mxu1  ;;  %v6069_v15 = vpop.f32.mrb[23].mxu0  ;;  %v525_v18 = vmul.f32 0.17677669, %v519_v59 }
 0x1d2   :  { %v536_v17 = vadd.f32 %v7292_v13, %v451_v14  ;;  %780 = vrot.lane.b32.xlu0 %v7323_v55, %s7036_s29 }
 0x1d3   :  { %v526_v19 = vmul.f32 0.17677669, %v520_v11  ;;  %v7340_v20 = vpack.c.bf16 %v546_v12, %v545_v6 }
 0x1d4   :  { %v7342_v21 = vpack.c.bf16 %v536_v17, %v535_v16 }
 0x1d5   :  { %v7344_v22 = vpack.c.bf16 %v526_v19, %v525_v18  ;;  %6093 = vmatpush3.bf16.msra.mxu0 %v7340_v20 }
 0x1d6   :  { %791 = vrot.lane.b32.xlu1 %v7342_v21, %s7036_s29  ;;  %v570_v9 = vsel %vm553_vm2, %v7342_v21, 0  ;;  %6124 = vmatprep.subr.bf16.mxu0 %v7033_v1 }
 0x1d7   :  { %6075 = vmatpush3.bf16.xpose.msra.mxu1 %v570_v9 }
 0x1d8   :  { %6106 = vmatprep.subr.bf16.mxu1 %v7033_v1 }
 0x1da   :  { %778 = vrot.lane.b32.xlu1 %v7304_v30, %s7036_s29 }
 0x1de   :  { %782 = vrot.lane.b32.xlu1 %v7344_v22, %s7036_s29  ;;  %6077 = vmatmul.mubr.msk.bf16.vlgmr.msra.gmra.mrb[12].mxu1 %vm553_vm2, %v7304_v30 }
 0x1df   :  { %6080 = vmatprep.mubr.msk.bf16.mxu1 %vm7034_vm0, %v7033_v1 }
 0x1e6   :  { %6081 = vmatmul.mubr.msk.bf16.gmra.mrb[16].mxu1 %vm553_vm2, %v7323_v55 }
 0x1e7   :  { %6084 = vmatprep.mubr.msk.bf16.mxu1 %vm7034_vm0, %v7033_v1 }
 0x1ee   :  { %6085 = vmatmul.mubr.msk.bf16.gmra.mrb[20].mxu1 %vm553_vm2, %v7344_v22 }
 0x1ef   :  { %6112 = vmatprep.mubr.msk.bf16.mxu1 %vm7034_vm0, %v7033_v1 }
 0x238   :  { %v788_v10 = vpop.permute.xlu0 %787 }
 0x239   :  { %v803_v13 = vsel %vm553_vm2, %v788_v10, 0 }
 0x23a   :  { %6107 = vmatpush3.bf16.xpose.msra.mxu1 %v803_v13 }
 0x23b   :  { %6108 = vmatprep.subr.bf16.mxu1 %v7033_v1 }
 0x240   :  { %v790_v23 = vpop.permute.xlu0 %789 }
 0x241   :  { %v806_v24 = vsel %vm553_vm2, %v790_v23, 0 }
 0x242   :  { %6109 = vmatpush3.bf16.xpose.msra.mxu1 %v806_v24 }
 0x243   :  { %6110 = vmatprep.subr.bf16.mxu1 %v7033_v1 }
 0x244   :  { %v781_v31 = vpop.permute.xlu0 %780 }
 0x248   :  { %v792_v25 = vpop.permute.xlu1 %791 }
 0x249   :  { %v809_v26 = vsel %vm553_vm2, %v792_v25, 0 }
 0x24a   :  { %6111 = vmatpush3.bf16.xpose.msra.mxu1 %v809_v26 }
 0x24b   :  { %6514 = vmatprep.subr.bf16.mxu1 %v7033_v1 }
 0x24c   :  { %v779_v27 = vpop.permute.xlu1 %778 }
 0x250   :  { %v783_v32 = vpop.permute.xlu1 %782 }
 0x251   :  { %6113 = vmatmul.mubr.msk.bf16.vlgmr.msra.gmra.mrb[24].mxu1 %vm553_vm2, %v779_v27 }
 0x252   :  { %6116 = vmatprep.mubr.msk.bf16.mxu1 %vm7034_vm0, %v7033_v1 }
 0x259   :  { %6117 = vmatmul.mubr.msk.bf16.gmra.mrb[28].mxu1 %vm553_vm2, %v781_v31 }
 0x25a   :  { %6120 = vmatprep.mubr.msk.bf16.mxu1 %vm7034_vm0, %v7033_v1 }
 0x261   :  { %6121 = vmatmul.mubr.msk.bf16.gmra.mrb[32].mxu1 %vm553_vm2, %v783_v32 }
 0x262   :  { %6138 = vmatprep.mubr.msk.bf16.mxu1 %vm7034_vm0, %v7033_v1 }
 0x2b1   :  { %v606_v36 = vpop.f32.mrb[12].mxu1 }
 0x2b2   :  { %v7388_v37 = vadd.f32 %v606_v36, %v7385_v35  ;;  %v6078_v39 = vpop.f32.mrb[13].mxu1 }
 0x2b3   :  { %v609_v40 = vpop.f32.mrb[14].mxu1 }
 0x2b4   :  { %v610_v41 = vadd.f32 %v609_v40, %v7385_v35  ;;  %v6079_v42 = vpop.f32.mrb[15].mxu1  ;;  %v630_v43 = vsel %vm629_vm4, %v7388_v37, -inf }
 0x2b5   :  { %631 = vmax.xlane.f32.xlu0 %v630_v43 }
 0x2b6   :  { %v633_v3 = vsel %vm629_vm4, %v610_v41, -inf }
 0x2b7   :  { %634 = vmax.xlane.f32.xlu1 %v633_v3 }
 0x2b9   :  { %v614_v47 = vpop.f32.mrb[16].mxu1 }
 0x2ba   :  { %v7397_v48 = vadd.f32 %v614_v47, %v7385_v35  ;;  %v6082_v49 = vpop.f32.mrb[17].mxu1 }
 0x2bb   :  { %v617_v50 = vpop.f32.mrb[18].mxu1 }
 0x2bc   :  { %v618_v56 = vadd.f32 %v617_v50, %v7394_v46  ;;  %v6083_v57 = vpop.f32.mrb[19].mxu1  ;;  %v636_v58 = vsel %vm629_vm4, %v7397_v48, -inf }
 0x2bd   :  { %637 = vmax.xlane.f32.xlu0 %v636_v58 }
 0x2be   :  { %v639_v59 = vsel %vm629_vm4, %v618_v56, -inf }
 0x2c1   :  { %v622_v60 = vpop.f32.mrb[20].mxu1  ;;  %640 = vmax.xlane.f32.xlu0 %v639_v59 }
 0x2c2   :  { %v7404_v61 = vadd.f32 %v622_v60, %v7394_v46  ;;  %v6086_v0 = vpop.f32.mrb[21].mxu1 }
 0x2c3   :  { %v625_v2 = vpop.f32.mrb[22].mxu1 }
 0x2c4   :  { %v626_v6 = vadd.f32 %v625_v2, %v7394_v46  ;;  %v6087_v11 = vpop.f32.mrb[23].mxu1  ;;  %v642_v12 = vsel %vm629_vm4, %v7404_v61, -inf }
 0x2c5   :  { %643 = vmax.xlane.f32.xlu1 %v642_v12 }
 0x2c6   :  { %v645_v14 = vsel %vm629_vm4, %v626_v6, -inf }
 0x2c7   :  { %646 = vmax.xlane.f32.xlu0 %v645_v14 }
 0x324   :  { %v845_v15 = vpop.f32.mrb[24].mxu1 }
 0x325   :  { %v7411_v16 = vadd.f32 %v845_v15, %v7385_v35  ;;  %v6114_v17 = vpop.f32.mrb[25].mxu1 }
 0x326   :  { %v848_v18 = vpop.f32.mrb[26].mxu1 }
 0x327   :  { %v7414_v19 = vadd.f32 %v848_v18, %v7385_v35  ;;  %v6115_v9 = vpop.f32.mrb[27].mxu1  ;;  %v868_v10 = vsel %vm629_vm4, %v7411_v16, -inf }
 0x328   :  { %869 = vmax.xlane.f32.xlu1 %v868_v10 }
 0x329   :  { %v871_v13 = vsel %vm629_vm4, %v7414_v19, -inf }
 0x32a   :  { %872 = vmax.xlane.f32.xlu0 %v871_v13 }
 0x32c   :  { %v853_v23 = vpop.f32.mrb[28].mxu1 }
 0x32d   :  { %v7421_v24 = vadd.f32 %v853_v23, %v7385_v35  ;;  %v6118_v25 = vpop.f32.mrb[29].mxu1 }
 0x32e   :  { %v856_v26 = vpop.f32.mrb[30].mxu1 }
 0x32f   :  { %v7424_v27 = vadd.f32 %v856_v26, %v7394_v46  ;;  %v6119_v31 = vpop.f32.mrb[31].mxu1  ;;  %v874_v32 = vsel %vm629_vm4, %v7421_v24, -inf }
 0x330   :  { %875 = vmax.xlane.f32.xlu1 %v874_v32 }
 0x331   :  { %v877_v33 = vsel %vm629_vm4, %v7424_v27, -inf }
 0x332   :  { %878 = vmax.xlane.f32.xlu0 %v877_v33 }
 0x334   :  { %v861_v34 = vpop.f32.mrb[32].mxu1 }
 0x335   :  { %v7431_v36 = vadd.f32 %v861_v34, %v7394_v46  ;;  %v6122_v39 = vpop.f32.mrb[33].mxu1 }
 0x336   :  { %v864_v40 = vpop.f32.mrb[34].mxu1 }
 0x337   :  { %v7434_v42 = vadd.f32 %v864_v40, %v7394_v46  ;;  %v6123_v43 = vpop.f32.mrb[35].mxu1  ;;  %v880_v3 = vsel %vm629_vm4, %v7431_v36, -inf }
 0x338   :  { %881 = vmax.xlane.f32.xlu1 %v880_v3 }
 0x339   :  { %v883_v47 = vsel %vm629_vm4, %v7434_v42, -inf }
 0x33a   :  { %884 = vmax.xlane.f32.xlu0 %v883_v47 }
 0x342   :  { %v632_v57 = vpop.xlane.xlu0 %631 }
 0x344   :  { %v635_v49 = vpop.xlane.xlu1 %634 }
 0x345   :  { %v649_v50 = vsub.f32 %v610_v41, %v635_v49  ;;  %v648_v41 = vsub.f32 %v7388_v37, %v632_v57 }
 0x347   :  { %v656_v58 = vmul.f32 1.442695, %v649_v50  ;;  %v654_v18 = vmul.f32 1.442695, %v648_v41 }
 0x349   :  { %6772 = vpow2.f32 %v656_v58  ;;  %940 = vrot.lane.b32.xlu1 %v7300_v28, %s7036_s29 }
 0x34a   :  { %v638_v59 = vpop.xlane.xlu0 %637 }
 0x34b   :  { %v650_v9 = vsub.f32 %v7397_v48, %v638_v59 }
 0x34d   :  { %v658_v23 = vmul.f32 1.442695, %v650_v9 }
 0x34e   :  { %v641_v60 = vpop.xlane.xlu0 %640 }
 0x34f   :  { %v651_v0 = vsub.f32 %v618_v56, %v641_v60 }
 0x351   :  { %v660_v2 = vmul.f32 1.442695, %v651_v0 }
 0x352   :  { %v644_v10 = vpop.xlane.xlu1 %643 }
 0x353   :  { %v7442_v11 = vpop.eup %6772  ;;  %6774 = vpow2.f32 %v660_v2  ;;  %v652_v25 = vsub.f32 %v7404_v61, %v644_v10 }
 0x354   :  { %v647_v12 = vpop.xlane.xlu0 %646  ;;  %v669_v14 = vsel %vm629_vm4, %v7442_v11, 0.0 }
 0x355   :  { %v653_v15 = vsub.f32 %v626_v6, %v647_v12  ;;  %670 = vadd.xlane.f32.xlu0 %v669_v14  ;;  %v662_v37 = vmul.f32 1.442695, %v652_v25 }
 0x357   :  { %v664_v17 = vmul.f32 1.442695, %v653_v15 }
 0x359   :  { %6776 = vpow2.f32 %v664_v17 }
 0x35a   :  { %6778 = vpow2.f32 %v654_v18 }
 0x35b   :  { %6780 = vpow2.f32 %v658_v23 }
 0x35c   :  { %6782 = vpow2.f32 %v662_v37 }
 0x35d   :  { %v7448_v13 = vpop.eup %6774 }
 0x35e   :  { %v675_v56 = vsel %vm629_vm4, %v7448_v13, 0.0 }
 0x35f   :  { %676 = vadd.xlane.f32.xlu0 %v675_v56 }
 0x363   :  { %v7453_v6 = vpop.eup %6776 }
 0x364   :  { %v681_v26 = vsel %vm629_vm4, %v7453_v6, 0.0  ;;  %v7457_v48 = vpop.eup %6778 }
 0x365   :  { %682 = vadd.xlane.f32.xlu0 %v681_v26  ;;  %v666_v31 = vsel %vm629_vm4, %v7457_v48, 0.0  ;;  %v7461_v32 = vpop.eup %6780 }
 0x366   :  { %v672_v61 = vsel %vm629_vm4, %v7461_v32, 0.0  ;;  %v7465_v33 = vpop.eup %6782 }
 0x367   :  { %v678_v34 = vsel %vm629_vm4, %v7465_v33, 0.0 }
 0x36d   :  { %667 = vadd.xlane.f32.xlu1 %v666_v31 }
 0x371   :  { %673 = vadd.xlane.f32.xlu1 %v672_v61 }
 0x375   :  { %679 = vadd.xlane.f32.xlu1 %v678_v34 }
 0x3b5   :  { %v870_v39 = vpop.xlane.xlu1 %869 }
 0x3b6   :  { %v886_v40 = vsub.f32 %v7411_v16, %v870_v39 }
 0x3b7   :  { %v873_v43 = vpop.xlane.xlu0 %872 }
 0x3b8   :  { %v892_v3 = vmul.f32 1.442695, %v886_v40  ;;  %v887_v47 = vsub.f32 %v7414_v19, %v873_v43 }
 0x3ba   :  { %6784 = vpow2.f32 %v892_v3  ;;  %v894_v49 = vmul.f32 1.442695, %v887_v47 }
 0x3bc   :  { %6786 = vpow2.f32 %v894_v49 }
 0x3bd   :  { %v876_v50 = vpop.xlane.xlu1 %875 }
 0x3be   :  { %v888_v57 = vsub.f32 %v7421_v24, %v876_v50 }
 0x3bf   :  { %v879_v58 = vpop.xlane.xlu0 %878 }
 0x3c0   :  { %v896_v59 = vmul.f32 1.442695, %v888_v57  ;;  %v889_v60 = vsub.f32 %v7424_v27, %v879_v58 }
 0x3c2   :  { %6788 = vpow2.f32 %v896_v59  ;;  %v898_v0 = vmul.f32 1.442695, %v889_v60 }
 0x3c4   :  { %v7473_v2 = vpop.eup %6784  ;;  %6790 = vpow2.f32 %v898_v0 }
 0x3c5   :  { %v882_v16 = vpop.xlane.xlu1 %881  ;;  %v904_v12 = vsel %vm629_vm4, %v7473_v2, 0.0 }
 0x3c6   :  { %v7477_v19 = vpop.eup %6786  ;;  %v890_v14 = vsub.f32 %v7431_v36, %v882_v16  ;;  %905 = vadd.xlane.f32.xlu1 %v904_v12 }
 0x3c7   :  { %v885_v15 = vpop.xlane.xlu0 %884  ;;  %v907_v24 = vsel %vm629_vm4, %v7477_v19, 0.0 }
 0x3c8   :  { %v900_v41 = vmul.f32 1.442695, %v890_v14  ;;  %v891_v27 = vsub.f32 %v7434_v42, %v885_v15  ;;  %908 = vadd.xlane.f32.xlu0 %v907_v24 }
 0x3c9   :  { %v941_v17 = vpop.permute.xlu1 %940 }
 0x3ca   :  { %6792 = vpow2.f32 %v900_v41  ;;  %v902_v18 = vmul.f32 1.442695, %v891_v27  ;;  %6517 = vmatpush3.bf16.msra.mxu1 %v941_v17 }
 0x3cb   :  { %6515 = vmatprep.subr.bf16.mxu1 %v7033_v1 }
 0x3cc   :  { %v7484_v9 = vpop.eup %6788  ;;  %6794 = vpow2.f32 %v902_v18 }
 0x3cd   :  { %v910_v36 = vsel %vm629_vm4, %v7484_v9, 0.0 }
 0x3ce   :  { %v7488_v10 = vpop.eup %6790  ;;  %911 = vadd.xlane.f32.xlu1 %v910_v36 }
 0x3cf   :  { %v913_v56 = vsel %vm629_vm4, %v7488_v10, 0.0 }
 0x3d0   :  { %914 = vadd.xlane.f32.xlu0 %v913_v56 }
 0x3d4   :  { %v7492_v42 = vpop.eup %6792 }
 0x3d5   :  { %v916_v23 = vsel %vm629_vm4, %v7492_v42, 0.0 }
 0x3d6   :  { %v7496_v25 = vpop.eup %6794  ;;  %917 = vadd.xlane.f32.xlu1 %v916_v23 }
 0x3d7   :  { %v919_v37 = vsel %vm629_vm4, %v7496_v25, 0.0 }
 0x3d8   :  { %920 = vadd.xlane.f32.xlu0 %v919_v37  ;;  %v6564_v37 = vld [vmem:[%s9060_s4] sm:$0xff]  }
 0x3e2   :  { %v671_v26 = vpop.xlane.xlu0 %670 }
 0x3e3   :  { %6796 = vrcp.f32 %v671_v26 }
 0x3e7   :  { %944 = vrot.lane.b32.xlu1 %v7340_v20, %s7036_s29 }
 0x3eb   :  { %1184 = vrot.lane.b32.xlu1 %v7302_v29, %s7038_s30 }
 0x3ec   :  { %v677_v61 = vpop.xlane.xlu0 %676 }
 0x3ed   :  { %v6797_v39 = vpop.eup %6796 }
 0x3ee   :  { %942 = vrot.lane.b32.xlu0 %v7319_v51, %s7036_s29  ;;  %v687_v3 = vmul.f32 %v6797_v39, %v7442_v11  ;;  %v6565_v39 = vld [vmem:[%s9060_s4 + $0x8] sm:$0xff]  }
 0x3ef   :  { %1188 = vrot.lane.b32.xlu1 %v7342_v21, %s7038_s30 }
 0x3f2   :  { %1186 = vrot.lane.b32.xlu0 %v7321_v52, %s7038_s30  ;;  %v683_v47 = vpop.xlane.xlu0 %682 }
 0x3f3   :  { %1180 = vrot.lane.b32.xlu1 %v7323_v55, %s7038_s30 }
 0x3f6   :  { %1178 = vrot.lane.b32.xlu0 %v7304_v30, %s7038_s30 }
 0x3fa   :  { %v668_v31 = vpop.xlane.xlu1 %667  ;;  %1182 = vrot.lane.b32.xlu0 %v7344_v22, %s7038_s30 }
 0x3fb   :  { %6798 = vrcp.f32 %v668_v31 }
 0x3fe   :  { %v674_v34 = vpop.xlane.xlu1 %673 }
 0x3ff   :  { %6800 = vrcp.f32 %v674_v34 }
 0x400   :  { %6802 = vrcp.f32 %v677_v61 }
 0x402   :  { %v680_v40 = vpop.xlane.xlu1 %679 }
 0x403   :  { %6804 = vrcp.f32 %v680_v40  ;;  %v6566_v40 = vld [vmem:[%s9060_s4 + $0x10] sm:$0xff]  }
 0x404   :  { %6806 = vrcp.f32 %v683_v47 }
 0x405   :  { %v6799_v43 = vpop.eup %6798 }
 0x406   :  { %v685_v49 = vmul.f32 %v6799_v43, %v7457_v48 }
 0x408   :  { %v696_v50 = vpack.c.bf16 %v687_v3, %v685_v49  ;;  %v6567_v3 = vld [vmem:[%s9060_s4 + $0x18] sm:$0xff]  }
 0x409   :  { %v6801_v57 = vpop.eup %6800 }
 0x40a   :  { %6095 = vmatmul.mubr.msk.bf16.vlgmr.msra.gmra.mrb[24].mxu0 %vm629_vm4, %v696_v50  ;;  %v6803_v58 = vpop.eup %6802  ;;  %v689_v59 = vmul.f32 %v6801_v57, %v7461_v32 }
 0x40b   :  { %6125 = vmatpush3.bf16.msra.mxu0 %v941_v17  ;;  %6098 = vmatprep.mubr.msk.bf16.mxu0 %vm7034_vm0, %v7033_v1  ;;  %v691_v11 = vmul.f32 %v6803_v58, %v7448_v13 }
 0x40c   :  { %6126 = vmatprep.subr.bf16.mxu0 %v7033_v1 }
 0x40d   :  { %v697_v60 = vpack.c.bf16 %v691_v11, %v689_v59  ;;  %v6805_v0 = vpop.eup %6804 }
 0x40e   :  { %v6807_v48 = vpop.eup %6806  ;;  %v693_v16 = vmul.f32 %v6805_v0, %v7465_v33 }
 0x40f   :  { %v695_v12 = vmul.f32 %v6807_v48, %v7453_v6 }
 0x411   :  { %v698_v14 = vpack.c.bf16 %v695_v12, %v693_v16 }
 0x412   :  { %6099 = vmatmul.mubr.msk.bf16.gmra.mrb[28].mxu0 %vm629_vm4, %v697_v60 }
 0x413   :  { %6102 = vmatprep.mubr.msk.bf16.mxu0 %vm7034_vm0, %v7033_v1 }
 0x41a   :  { %6103 = vmatmul.mubr.msk.bf16.gmra.mrb[32].mxu0 %vm629_vm4, %v698_v14 }
 0x41b   :  { %6130 = vmatprep.mubr.msk.bf16.mxu0 %vm7034_vm0, %v7033_v1 }
 0x453   :  { %v906_v32 = vpop.xlane.xlu1 %905 }
 0x455   :  { %v909_v13 = vpop.xlane.xlu0 %908 }
 0x456   :  { %6808 = vrcp.f32 %v909_v13 }
 0x457   :  { %6810 = vrcp.f32 %v906_v32 }
 0x45b   :  { %v912_v15 = vpop.xlane.xlu1 %911 }
 0x45d   :  { %v915_v24 = vpop.xlane.xlu0 %914 }
 0x460   :  { %v6809_v33 = vpop.eup %6808 }
 0x461   :  { %v6811_v17 = vpop.eup %6810  ;;  %v925_v18 = vmul.f32 %v6809_v33, %v7477_v19 }
 0x462   :  { %v923_v36 = vmul.f32 %v6811_v17, %v7473_v2 }
 0x463   :  { %v918_v41 = vpop.xlane.xlu1 %917 }
 0x464   :  { %6812 = vrcp.f32 %v918_v41  ;;  %v934_v31 = vpack.c.bf16 %v925_v18, %v923_v36 }
 0x465   :  { %6814 = vrcp.f32 %v915_v24  ;;  %v921_v27 = vpop.xlane.xlu0 %920 }
 0x466   :  { %6816 = vrcp.f32 %v921_v27 }
 0x467   :  { %6818 = vrcp.f32 %v912_v15  ;;  %v945_v56 = vpop.permute.xlu1 %944 }
 0x469   :  { %v943_v6 = vpop.permute.xlu0 %942 }
 0x46a   :  { %6127 = vmatpush3.bf16.msra.mxu0 %v943_v6  ;;  %6518 = vmatpush3.bf16.msra.mxu1 %v943_v6 }
 0x46b   :  { %6128 = vmatprep.subr.bf16.mxu0 %v7033_v1  ;;  %6516 = vmatprep.subr.bf16.mxu1 %v7033_v1  ;;  %v1185_v24 = vpop.permute.xlu1 %1184 }
 0x46c   :  { %v1200_v17 = vsel %vm553_vm2, %v1185_v24, 0 }
 0x46e   :  { %v6813_v23 = vpop.eup %6812  ;;  %6129 = vmatpush3.bf16.msra.mxu0 %v945_v56  ;;  %6519 = vmatpush3.bf16.msra.mxu1 %v945_v56 }
 0x46f   :  { %v6815_v26 = vpop.eup %6814  ;;  %6158 = vmatprep.subr.bf16.mxu0 %v7033_v1  ;;  %6142 = vmatprep.subr.bf16.mxu1 %v7033_v1  ;;  %v931_v61 = vmul.f32 %v6813_v23, %v7492_v42 }
 0x470   :  { %v6817_v19 = vpop.eup %6816  ;;  %v929_v42 = vmul.f32 %v6815_v26, %v7488_v10 }
 0x471   :  { %v933_v34 = vmul.f32 %v6817_v19, %v7496_v25  ;;  %6131 = vmatmul.mubr.msk.bf16.vlgmr.msra.gmra.mrb[36].mxu0 %vm629_vm4, %v934_v31  ;;  %v6819_v2 = vpop.eup %6818  ;;  %v1187_v31 = vpop.permute.xlu0 %1186 }
 0x472   :  { %6134 = vmatprep.mubr.msk.bf16.mxu0 %vm7034_vm0, %v7033_v1  ;;  %6159 = vmatpush3.bf16.msra.mxu0 %v6564_v37  ;;  %v927_v25 = vmul.f32 %v6819_v2, %v7484_v9  ;;  %v1203_v2 = vsel %vm553_vm2, %v1187_v31, 0 }
 0x473   :  { %v936_v43 = vpack.c.bf16 %v933_v34, %v931_v61  ;;  %6160 = vmatprep.subr.bf16.mxu0 %v7033_v1 }
 0x474   :  { %v935_v47 = vpack.c.bf16 %v929_v42, %v927_v25 }
 0x475   :  { %6139 = vmatmul.mubr.msk.bf16.vlgmr.msra.gmra.mrb[36].mxu1 %vm629_vm4, %v936_v43  ;;  %v1179_v43 = vpop.permute.xlu0 %1178 }
 0x476   :  { %6161 = vmatpush3.bf16.msra.mxu0 %v6565_v39  ;;  %6143 = vmatpush3.bf16.msra.mxu1 %v6566_v40  ;;  %v1189_v39 = vpop.permute.xlu1 %1188 }
 0x477   :  { %6144 = vmatprep.subr.bf16.mxu1 %v7033_v1  ;;  %6146 = vmatprep.mubr.msk.bf16.mxu1 %vm7034_vm0, %v7033_v1  ;;  %v1206_v40 = vsel %vm553_vm2, %v1189_v39, 0 }
 0x478   :  { %6192 = vmatprep.subr.bf16.mxu0 %v7033_v1 }
 0x479   :  { %6135 = vmatmul.mubr.msk.bf16.gmra.mrb[40].mxu0 %vm629_vm4, %v935_v47  ;;  %v1183_v25 = vpop.permute.xlu0 %1182 }
 0x47a   :  { %6162 = vmatprep.mubr.msk.bf16.mxu0 %vm7034_vm0, %v7033_v1  ;;  %6145 = vmatpush3.bf16.msra.mxu1 %v6567_v3  ;;  %v1181_v42 = vpop.permute.xlu1 %1180 }
 0x47b   :  { %6174 = vmatprep.subr.bf16.mxu1 %v7033_v1 }
 0x4dd   :  { %v745_v9 = vpop.f32.mrb[24].mxu0 }
 0x4de   :  { %v6096_v10 = vpop.f32.mrb[25].mxu0 }
 0x4df   :  { %v748_v49 = vpop.f32.mrb[26].mxu0 }
 0x4e0   :  { %v768_v50 = vpack.c.bf16 %v748_v49, %v745_v9  ;;  %v6097_v57 = vpop.f32.mrb[27].mxu0 }
 0x4e2   :  { %6163 = vmatmul.mubr.msk.bf16.vlgmr.msra.gmra.mrb[44].mxu0 %vm553_vm2, %v768_v50 }
 0x4e3   :  { %6166 = vmatprep.mubr.msk.bf16.mxu0 %vm7034_vm0, %v7033_v1 }
 0x4e5   :  { %v753_v58 = vpop.f32.mrb[28].mxu0 }
 0x4e6   :  { %v6100_v59 = vpop.f32.mrb[29].mxu0 }
 0x4e7   :  { %v756_v11 = vpop.f32.mrb[30].mxu0 }
 0x4e8   :  { %v769_v60 = vpack.c.bf16 %v756_v11, %v753_v58  ;;  %v6101_v0 = vpop.f32.mrb[31].mxu0 }
 0x4ea   :  { %6167 = vmatmul.mubr.msk.bf16.gmra.mrb[48].mxu0 %vm553_vm2, %v769_v60 }
 0x4eb   :  { %6170 = vmatprep.mubr.msk.bf16.mxu0 %vm7034_vm0, %v7033_v1 }
 0x4ed   :  { %v761_v48 = vpop.f32.mrb[32].mxu0 }
 0x4ee   :  { %v6104_v16 = vpop.f32.mrb[33].mxu0 }
 0x4ef   :  { %v764_v12 = vpop.f32.mrb[34].mxu0 }
 0x4f0   :  { %v770_v14 = vpack.c.bf16 %v764_v12, %v761_v48  ;;  %v6105_v32 = vpop.f32.mrb[35].mxu0 }
 0x4f2   :  { %6171 = vmatmul.mubr.msk.bf16.gmra.mrb[52].mxu0 %vm553_vm2, %v770_v14 }
 0x4f3   :  { %6198 = vmatprep.mubr.msk.bf16.mxu0 %vm7034_vm0, %v7033_v1 }
 0x544   :  { %v992_v13 = vpop.f32.mrb[36].mxu0 }
 0x545   :  { %v6132_v15 = vpop.f32.mrb[37].mxu0 }
 0x546   :  { %v995_v41 = vpop.f32.mrb[38].mxu0 }
 0x547   :  { %v1015_v27 = vpack.c.bf16 %v995_v41, %v992_v13  ;;  %v6133_v33 = vpop.f32.mrb[39].mxu0 }
 0x548   :  { %v1008_v6 = vpop.f32.mrb[36].mxu1 }
 0x549   :  { %v6140_v18 = vpop.f32.mrb[37].mxu1  ;;  %6147 = vmatmul.mubr.msk.bf16.vlgmr.msra.gmra.mrb[40].mxu1 %vm553_vm2, %v1015_v27 }
 0x54a   :  { %6175 = vmatpush3.bf16.xpose.msra.mxu1 %v1200_v17  ;;  %v1011_v36 = vpop.f32.mrb[38].mxu1  ;;  %6150 = vmatprep.mubr.msk.bf16.mxu1 %vm7034_vm0, %v7033_v1 }
 0x54b   :  { %v1017_v56 = vpack.c.bf16 %v1011_v36, %v1008_v6  ;;  %v6141_v23 = vpop.f32.mrb[39].mxu1  ;;  %6176 = vmatprep.subr.bf16.mxu1 %v7033_v1 }
 0x54c   :  { %v1000_v37 = vpop.f32.mrb[40].mxu0 }
 0x54d   :  { %v6136_v26 = vpop.f32.mrb[41].mxu0 }
 0x54e   :  { %v1003_v19 = vpop.f32.mrb[42].mxu0 }
 0x54f   :  { %v1016_v61 = vpack.c.bf16 %v1003_v19, %v1000_v37  ;;  %v6137_v34 = vpop.f32.mrb[43].mxu0 }
 0x551   :  { %6151 = vmatmul.mubr.msk.bf16.gmra.mrb[44].mxu1 %vm553_vm2, %v1016_v61 }
 0x552   :  { %6177 = vmatpush3.bf16.xpose.msra.mxu1 %v1203_v2  ;;  %6154 = vmatprep.mubr.msk.bf16.mxu1 %vm7034_vm0, %v7033_v1 }
 0x553   :  { %6178 = vmatprep.subr.bf16.mxu1 %v7033_v1 }
 0x559   :  { %6155 = vmatmul.mubr.msk.bf16.gmra.mrb[48].mxu1 %vm553_vm2, %v1017_v56 }
 0x55a   :  { %6179 = vmatpush3.bf16.xpose.msra.mxu1 %v1206_v40  ;;  %6180 = vmatprep.mubr.msk.bf16.mxu1 %vm7034_vm0, %v7033_v1 }
 0x55b   :  { %6210 = vmatprep.subr.bf16.mxu1 %v7033_v1 }
 0x561   :  { %6181 = vmatmul.mubr.msk.bf16.vlgmr.msra.gmra.mrb[52].mxu1 %vm553_vm2, %v1179_v43 }
 0x562   :  { %6184 = vmatprep.mubr.msk.bf16.mxu1 %vm7034_vm0, %v7033_v1 }
 0x569   :  { %6185 = vmatmul.mubr.msk.bf16.gmra.mrb[56].mxu1 %vm553_vm2, %v1181_v42 }
 0x56a   :  { %6188 = vmatprep.mubr.msk.bf16.mxu1 %vm7034_vm0, %v7033_v1 }
 0x571   :  { %6189 = vmatmul.mubr.msk.bf16.gmra.mrb[60].mxu1 %vm553_vm2, %v1183_v25 }
 0x572   :  { %6214 = vmatprep.mubr.msk.bf16.mxu1 %vm7034_vm0, %v7033_v1 }
 0x5b5   :  { %v1155_v3 = vpop.f32.mrb[44].mxu0 }
 0x5b6   :  { %v6164_v47 = vpop.f32.mrb[45].mxu0 }
 0x5b7   :  { %v1158_v9 = vpop.f32.mrb[46].mxu0 }
 0x5b8   :  { %v6165_v10 = vpop.f32.mrb[47].mxu0 }
 0x5bd   :  { %v1163_v49 = vpop.f32.mrb[48].mxu0 }
 0x5be   :  { %v6168_v50 = vpop.f32.mrb[49].mxu0 }
 0x5bf   :  { %v1166_v57 = vpop.f32.mrb[50].mxu0 }
 0x5c0   :  { %v6169_v58 = vpop.f32.mrb[51].mxu0 }
 0x5c5   :  { %v1171_v59 = vpop.f32.mrb[52].mxu0 }
 0x5c6   :  { %v6172_v11 = vpop.f32.mrb[53].mxu0 }
 0x5c7   :  { %v1174_v60 = vpop.f32.mrb[54].mxu0 }
 0x5c8   :  { %v6173_v0 = vpop.f32.mrb[55].mxu0 }
 0x61c   :  { %v1077_v48 = vpop.f32.mrb[40].mxu1 }
 0x61d   :  { %v7600_v16 = vadd.f32 %v1155_v3, %v1077_v48  ;;  %v6148_v12 = vpop.f32.mrb[41].mxu1 }
 0x61e   :  { %v1080_v14 = vpop.f32.mrb[42].mxu1 }
 0x61f   :  { %v7602_v32 = vadd.f32 %v1158_v9, %v1080_v14  ;;  %v6149_v13 = vpop.f32.mrb[43].mxu1 }
 0x624   :  { %v1085_v15 = vpop.f32.mrb[44].mxu1 }
 0x625   :  { %v7604_v24 = vadd.f32 %v1163_v49, %v1085_v15  ;;  %v6152_v41 = vpop.f32.mrb[45].mxu1 }
 0x626   :  { %v1088_v27 = vpop.f32.mrb[46].mxu1 }
 0x627   :  { %v7606_v33 = vadd.f32 %v1166_v57, %v1088_v27  ;;  %v6153_v6 = vpop.f32.mrb[47].mxu1 }
 0x62c   :  { %v1093_v17 = vpop.f32.mrb[48].mxu1 }
 0x62d   :  { %v7608_v18 = vadd.f32 %v1171_v59, %v1093_v17  ;;  %v6156_v36 = vpop.f32.mrb[49].mxu1 }
 0x62e   :  { %v1096_v56 = vpop.f32.mrb[50].mxu1 }
 0x62f   :  { %v7610_v23 = vadd.f32 %v1174_v60, %v1096_v56  ;;  %v6157_v37 = vpop.f32.mrb[51].mxu1 }
 0x634   :  { %v1242_v26 = vpop.f32.mrb[52].mxu1 }
 0x635   :  { %v1243_v31 = vadd.f32 %v1242_v26, %v7385_v35  ;;  %v6182_v19 = vpop.f32.mrb[53].mxu1 }
 0x636   :  { %v1245_v61 = vpop.f32.mrb[54].mxu1 }
 0x637   :  { %v1246_v34 = vadd.f32 %v1245_v61, %v7385_v35  ;;  %v6183_v2 = vpop.f32.mrb[55].mxu1  ;;  %v1265_v39 = vsel %vm629_vm4, %v1243_v31, -inf }
 0x638   :  { %1266 = vmax.xlane.f32.xlu1 %v1265_v39 }
 0x639   :  { %v1268_v40 = vsel %vm629_vm4, %v1246_v34, -inf }
 0x63a   :  { %1269 = vmax.xlane.f32.xlu0 %v1268_v40 }
 0x63c   :  { %v1250_v43 = vpop.f32.mrb[56].mxu1 }
 0x63d   :  { %v1251_v42 = vadd.f32 %v1250_v43, %v7385_v35  ;;  %v6186_v25 = vpop.f32.mrb[57].mxu1 }
 0x63e   :  { %v1253_v3 = vpop.f32.mrb[58].mxu1 }
 0x63f   :  { %v1254_v47 = vadd.f32 %v1253_v3, %v7394_v46  ;;  %v6187_v9 = vpop.f32.mrb[59].mxu1  ;;  %v1271_v10 = vsel %vm629_vm4, %v1251_v42, -inf }
 0x640   :  { %1272 = vmax.xlane.f32.xlu0 %v1271_v10 }
 0x641   :  { %v1274_v49 = vsel %vm629_vm4, %v1254_v47, -inf }
 0x642   :  { %1275 = vmax.xlane.f32.xlu1 %v1274_v49 }
 0x644   :  { %v1258_v50 = vpop.f32.mrb[60].mxu1 }
 0x645   :  { %v1259_v57 = vadd.f32 %v1258_v50, %v7394_v46  ;;  %v6190_v58 = vpop.f32.mrb[61].mxu1 }
 0x646   :  { %v1261_v59 = vpop.f32.mrb[62].mxu1 }
 0x647   :  { %v1262_v11 = vadd.f32 %v1261_v59, %v7394_v46  ;;  %v6191_v60 = vpop.f32.mrb[63].mxu1  ;;  %v1277_v0 = vsel %vm629_vm4, %v1259_v57, -inf }
 0x648   :  { %1278 = vmax.xlane.f32.xlu0 %v1277_v0  ;;  %v6568_v0 = vld [vmem:[%s9060_s4 + $0x20] sm:$0xff]  }
 0x649   :  { %v1280_v48 = vsel %vm629_vm4, %v1262_v11, -inf  ;;  %6211 = vmatpush3.bf16.msra.mxu1 %v6568_v0 }
 0x64a   :  { %1281 = vmax.xlane.f32.xlu1 %v1280_v48  ;;  %6212 = vmatprep.subr.bf16.mxu1 %v7033_v1 }
 0x65b   :  { %1336 = vrot.lane.b32.xlu1 %v7319_v51, %s7038_s30 }
 0x65e   :  { %1334 = vrot.lane.b32.xlu0 %v7300_v28, %s7038_s30 }
 0x662   :  { %1338 = vrot.lane.b32.xlu0 %v7340_v20, %s7038_s30 }
 0x6c5   :  { %v1267_v12 = vpop.xlane.xlu1 %1266 }
 0x6c6   :  { %v1283_v14 = vsub.f32 %v1243_v31, %v1267_v12 }
 0x6c7   :  { %v1270_v13 = vpop.xlane.xlu0 %1269 }
 0x6c8   :  { %v1289_v15 = vmul.f32 1.442695, %v1283_v14  ;;  %v1284_v41 = vsub.f32 %v1246_v34, %v1270_v13 }
 0x6ca   :  { %6820 = vpow2.f32 %v1289_v15  ;;  %v1291_v27 = vmul.f32 1.442695, %v1284_v41 }
 0x6cc   :  { %6822 = vpow2.f32 %v1291_v27 }
 0x6cd   :  { %v1273_v6 = vpop.xlane.xlu0 %1272 }
 0x6ce   :  { %v1285_v17 = vsub.f32 %v1251_v42, %v1273_v6 }
 0x6cf   :  { %v1276_v36 = vpop.xlane.xlu1 %1275 }
 0x6d0   :  { %v1293_v56 = vmul.f32 1.442695, %v1285_v17  ;;  %v1286_v37 = vsub.f32 %v1254_v47, %v1276_v36 }
 0x6d2   :  { %6824 = vpow2.f32 %v1293_v56  ;;  %v1295_v26 = vmul.f32 1.442695, %v1286_v37 }
 0x6d4   :  { %v6821_v19 = vpop.eup %6820  ;;  %6826 = vpow2.f32 %v1295_v26 }
 0x6d5   :  { %v1279_v61 = vpop.xlane.xlu0 %1278  ;;  %v1301_v2 = vsel %vm629_vm4, %v6821_v19, 0.0 }
 0x6d6   :  { %v6823_v39 = vpop.eup %6822  ;;  %v1287_v31 = vsub.f32 %v1259_v57, %v1279_v61  ;;  %1302 = vadd.xlane.f32.xlu0 %v1301_v2 }
 0x6d7   :  { %v1282_v40 = vpop.xlane.xlu1 %1281  ;;  %v1304_v34 = vsel %vm629_vm4, %v6823_v39, 0.0 }
 0x6d8   :  { %v1297_v43 = vmul.f32 1.442695, %v1287_v31  ;;  %v1288_v25 = vsub.f32 %v1262_v11, %v1282_v40  ;;  %1305 = vadd.xlane.f32.xlu1 %v1304_v34 }
 0x6d9   :  { %v1335_v42 = vpop.permute.xlu0 %1334 }
 0x6da   :  { %6828 = vpow2.f32 %v1297_v43  ;;  %v1299_v3 = vmul.f32 1.442695, %v1288_v25  ;;  %6193 = vmatpush3.bf16.msra.mxu0 %v1335_v42 }
 0x6db   :  { %6194 = vmatprep.subr.bf16.mxu0 %v7033_v1  ;;  %v1337_v9 = vpop.permute.xlu1 %1336 }
 0x6dc   :  { %v6825_v47 = vpop.eup %6824  ;;  %6830 = vpow2.f32 %v1299_v3 }
 0x6dd   :  { %v1307_v10 = vsel %vm629_vm4, %v6825_v47, 0.0  ;;  %v1339_v57 = vpop.permute.xlu0 %1338 }
 0x6de   :  { %v6827_v49 = vpop.eup %6826  ;;  %1308 = vadd.xlane.f32.xlu0 %v1307_v10  ;;  %6195 = vmatpush3.bf16.msra.mxu0 %v1337_v9 }
 0x6df   :  { %v1310_v50 = vsel %vm629_vm4, %v6827_v49, 0.0  ;;  %6196 = vmatprep.subr.bf16.mxu0 %v7033_v1 }
 0x6e0   :  { %1311 = vadd.xlane.f32.xlu1 %v1310_v50 }
 0x6e2   :  { %6197 = vmatpush3.bf16.msra.mxu0 %v1339_v57 }
 0x6e3   :  { %6226 = vmatprep.subr.bf16.mxu0 %v7033_v1 }
 0x6e4   :  { %v6829_v58 = vpop.eup %6828 }
 0x6e5   :  { %v1313_v59 = vsel %vm629_vm4, %v6829_v58, 0.0 }
 0x6e6   :  { %v6831_v11 = vpop.eup %6830  ;;  %1314 = vadd.xlane.f32.xlu1 %v1313_v59 }
 0x6e7   :  { %v1316_v60 = vsel %vm629_vm4, %v6831_v11, 0.0 }
 0x6ea   :  { %1317 = vadd.xlane.f32.xlu1 %v1316_v60 }
 0x6f4   :  { %1506 = vrot.lane.b32.xlu0 %v7302_v29, %s7039_s18 }
 0x6f8   :  { %1510 = vrot.lane.b32.xlu0 %v7342_v21, %s7039_s18 }
 0x6fb   :  { %1508 = vrot.lane.b32.xlu1 %v7321_v52, %s7039_s18 }
 0x6fc   :  { %1502 = vrot.lane.b32.xlu0 %v7323_v55, %s7039_s18 }
 0x6ff   :  { %1500 = vrot.lane.b32.xlu1 %v7304_v30, %s7039_s18 }
 0x703   :  { %1504 = vrot.lane.b32.xlu1 %v7344_v22, %s7039_s18 }
 0x763   :  { %v1303_v29 = vpop.xlane.xlu0 %1302 }
 0x764   :  { %6832 = vrcp.f32 %v1303_v29 }
 0x765   :  { %v1306_v21 = vpop.xlane.xlu1 %1305 }
 0x766   :  { %6834 = vrcp.f32 %v1306_v21 }
 0x76b   :  { %v1309_v52 = vpop.xlane.xlu0 %1308 }
 0x76c   :  { %6836 = vrcp.f32 %v1309_v52 }
 0x76d   :  { %v1312_v55 = vpop.xlane.xlu1 %1311 }
 0x76e   :  { %v6833_v48 = vpop.eup %6832  ;;  %6838 = vrcp.f32 %v1312_v55 }
 0x76f   :  { %v1320_v12 = vmul.f32 %v6833_v48, %v6821_v19  ;;  %v1507_v22 = vpop.permute.xlu0 %1506 }
 0x770   :  { %v6835_v30 = vpop.eup %6834  ;;  %v1522_v41 = vsel %vm553_vm2, %v1507_v22, 0 }
 0x771   :  { %v1322_v14 = vmul.f32 %v6835_v30, %v6823_v39 }
 0x773   :  { %v1331_v13 = vpack.c.bf16 %v1322_v14, %v1320_v12  ;;  %v1315_v15 = vpop.xlane.xlu1 %1314  ;;  %v1511_v39 = vpop.permute.xlu0 %1510 }
 0x774   :  { %6840 = vrcp.f32 %v1315_v15  ;;  %v1528_v34 = vsel %vm553_vm2, %v1511_v39, 0 }
 0x775   :  { %6199 = vmatmul.mubr.msk.bf16.vlgmr.msra.gmra.mrb[56].mxu0 %vm629_vm4, %v1331_v13 }
 0x776   :  { %v6837_v27 = vpop.eup %6836  ;;  %6227 = vmatpush3.bf16.xpose.msra.mxu0 %v1522_v41  ;;  %6202 = vmatprep.mubr.msk.bf16.mxu0 %vm7034_vm0, %v7033_v1 }
 0x777   :  { %v1318_v6 = vpop.xlane.xlu1 %1317  ;;  %6228 = vmatprep.subr.bf16.mxu0 %v7033_v1  ;;  %v1324_v36 = vmul.f32 %v6837_v27, %v6825_v47  ;;  %v1503_v42 = vpop.permute.xlu0 %1502  ;;  %v6569_v47 = vld [vmem:[%s9060_s4 + $0x28] sm:$0xff]  }
 0x778   :  { %v6839_v17 = vpop.eup %6838  ;;  %6842 = vrcp.f32 %v1318_v6  ;;  %6213 = vmatpush3.bf16.msra.mxu1 %v6569_v47 }
 0x779   :  { %v1326_v56 = vmul.f32 %v6839_v17, %v6827_v49  ;;  %6244 = vmatprep.subr.bf16.mxu1 %v7033_v1 }
 0x77b   :  { %v1509_v37 = vpop.permute.xlu1 %1508  ;;  %v1332_v26 = vpack.c.bf16 %v1326_v56, %v1324_v36 }
 0x77c   :  { %v1525_v19 = vsel %vm553_vm2, %v1509_v37, 0 }
 0x77d   :  { %6203 = vmatmul.mubr.msk.bf16.gmra.mrb[60].mxu0 %vm629_vm4, %v1332_v26 }
 0x77e   :  { %6229 = vmatpush3.bf16.xpose.msra.mxu0 %v1525_v19  ;;  %6206 = vmatprep.mubr.msk.bf16.mxu0 %vm7034_vm0, %v7033_v1  ;;  %v6841_v61 = vpop.eup %6840 }
 0x77f   :  { %6230 = vmatprep.subr.bf16.mxu0 %v7033_v1  ;;  %v1328_v31 = vmul.f32 %v6841_v61, %v6829_v58  ;;  %v1501_v25 = vpop.permute.xlu1 %1500 }
 0x782   :  { %v6843_v2 = vpop.eup %6842 }
 0x783   :  { %v1330_v40 = vmul.f32 %v6843_v2, %v6831_v11  ;;  %v1505_v3 = vpop.permute.xlu1 %1504 }
 0x785   :  { %v1333_v43 = vpack.c.bf16 %v1330_v40, %v1328_v31 }
 0x786   :  { %6231 = vmatpush3.bf16.xpose.msra.mxu0 %v1528_v34 }
 0x787   :  { %6207 = vmatmul.mubr.msk.bf16.gmra.mrb[64].mxu0 %vm629_vm4, %v1333_v43  ;;  %6262 = vmatprep.subr.bf16.mxu0 %v7033_v1 }
 0x788   :  { %6232 = vmatprep.mubr.msk.bf16.mxu0 %vm7034_vm0, %v7033_v1 }
 0x78f   :  { %6233 = vmatmul.mubr.msk.bf16.vlgmr.msra.gmra.mrb[68].mxu0 %vm553_vm2, %v1501_v25 }
 0x790   :  { %6236 = vmatprep.mubr.msk.bf16.mxu0 %vm7034_vm0, %v7033_v1 }
 0x797   :  { %6237 = vmatmul.mubr.msk.bf16.gmra.mrb[72].mxu0 %vm553_vm2, %v1503_v42 }
 0x798   :  { %6240 = vmatprep.mubr.msk.bf16.mxu0 %vm7034_vm0, %v7033_v1 }
 0x79f   :  { %6241 = vmatmul.mubr.msk.bf16.gmra.mrb[76].mxu0 %vm553_vm2, %v1505_v3 }
 0x7a0   :  { %6266 = vmatprep.mubr.msk.bf16.mxu0 %vm7034_vm0, %v7033_v1 }
 0x848   :  { %v1386_v9 = vpop.f32.mrb[56].mxu0 }
 0x849   :  { %v6200_v10 = vpop.f32.mrb[57].mxu0 }
 0x84a   :  { %v1389_v49 = vpop.f32.mrb[58].mxu0 }
 0x84b   :  { %v1409_v50 = vpack.c.bf16 %v1389_v49, %v1386_v9  ;;  %v6201_v57 = vpop.f32.mrb[59].mxu0 }
 0x84d   :  { %6215 = vmatmul.mubr.msk.bf16.vlgmr.msra.gmra.mrb[64].mxu1 %vm553_vm2, %v1409_v50 }
 0x84e   :  { %6218 = vmatprep.mubr.msk.bf16.mxu1 %vm7034_vm0, %v7033_v1 }
 0x850   :  { %v1394_v58 = vpop.f32.mrb[60].mxu0 }
 0x851   :  { %v6204_v59 = vpop.f32.mrb[61].mxu0 }
 0x852   :  { %v1397_v11 = vpop.f32.mrb[62].mxu0 }
 0x853   :  { %v1410_v60 = vpack.c.bf16 %v1397_v11, %v1394_v58  ;;  %v6205_v0 = vpop.f32.mrb[63].mxu0 }
 0x855   :  { %6219 = vmatmul.mubr.msk.bf16.gmra.mrb[68].mxu1 %vm553_vm2, %v1410_v60 }
 0x856   :  { %6222 = vmatprep.mubr.msk.bf16.mxu1 %vm7034_vm0, %v7033_v1 }
 0x85a   :  { %v1402_v29 = vpop.f32.mrb[64].mxu0 }
 0x85b   :  { %v6208_v21 = vpop.f32.mrb[65].mxu0 }
 0x85c   :  { %v1405_v52 = vpop.f32.mrb[66].mxu0 }
 0x85d   :  { %v1411_v55 = vpack.c.bf16 %v1405_v52, %v1402_v29  ;;  %v6209_v48 = vpop.f32.mrb[67].mxu0 }
 0x85f   :  { %6223 = vmatmul.mubr.msk.bf16.gmra.mrb[72].mxu1 %vm553_vm2, %v1411_v55 }
 0x860   :  { %6250 = vmatprep.mubr.msk.bf16.mxu1 %vm7034_vm0, %v7033_v1 }
 0x862   :  { %v1564_v30 = vpop.f32.mrb[68].mxu0 }
 0x863   :  { %v1565_v12 = vadd.f32 %v1564_v30, %v7385_v35  ;;  %v6234_v14 = vpop.f32.mrb[69].mxu0 }
 0x864   :  { %v1567_v22 = vpop.f32.mrb[70].mxu0 }
 0x865   :  { %v1568_v13 = vadd.f32 %v1567_v22, %v7385_v35  ;;  %v6235_v15 = vpop.f32.mrb[71].mxu0  ;;  %v1587_v41 = vsel %vm629_vm4, %v1565_v12, -inf }
 0x866   :  { %1588 = vmax.xlane.f32.xlu0 %v1587_v41 }
 0x867   :  { %v1590_v27 = vsel %vm629_vm4, %v1568_v13, -inf }
 0x868   :  { %1591 = vmax.xlane.f32.xlu1 %v1590_v27 }
 0x86a   :  { %v1572_v6 = vpop.f32.mrb[72].mxu0 }
 0x86b   :  { %v1573_v17 = vadd.f32 %v1572_v6, %v7385_v35  ;;  %v6238_v36 = vpop.f32.mrb[73].mxu0 }
 0x86c   :  { %v1575_v56 = vpop.f32.mrb[74].mxu0 }
 0x86d   :  { %v1576_v37 = vadd.f32 %v1575_v56, %v7394_v46  ;;  %v6239_v26 = vpop.f32.mrb[75].mxu0  ;;  %v1593_v19 = vsel %vm629_vm4, %v1573_v17, -inf }
 0x86e   :  { %1594 = vmax.xlane.f32.xlu0 %v1593_v19 }
 0x86f   :  { %v1596_v61 = vsel %vm629_vm4, %v1576_v37, -inf }
 0x872   :  { %1597 = vmax.xlane.f32.xlu0 %v1596_v61  ;;  %v1580_v2 = vpop.f32.mrb[76].mxu0 }
 0x873   :  { %v1581_v39 = vadd.f32 %v1580_v2, %v7394_v46  ;;  %v6242_v31 = vpop.f32.mrb[77].mxu0 }
 0x874   :  { %v1583_v40 = vpop.f32.mrb[78].mxu0 }
 0x875   :  { %v1584_v34 = vadd.f32 %v1583_v40, %v7394_v46  ;;  %v6243_v43 = vpop.f32.mrb[79].mxu0  ;;  %v1599_v25 = vsel %vm629_vm4, %v1581_v39, -inf }
 0x876   :  { %1600 = vmax.xlane.f32.xlu1 %v1599_v25 }
 0x877   :  { %v1602_v42 = vsel %vm629_vm4, %v1584_v34, -inf }
 0x878   :  { %1603 = vmax.xlane.f32.xlu0 %v1602_v42 }
 0x887   :  { %1656 = vrot.lane.b32.xlu1 %v7300_v28, %s7039_s18 }
 0x8f3   :  { %v1589_v3 = vpop.xlane.xlu0 %1588 }
 0x8f4   :  { %v1605_v47 = vsub.f32 %v1565_v12, %v1589_v3 }
 0x8f5   :  { %v1592_v9 = vpop.xlane.xlu1 %1591 }
 0x8f6   :  { %v1611_v10 = vmul.f32 1.442695, %v1605_v47  ;;  %v1606_v49 = vsub.f32 %v1568_v13, %v1592_v9 }
 0x8f8   :  { %6844 = vpow2.f32 %v1611_v10  ;;  %v1613_v50 = vmul.f32 1.442695, %v1606_v49  ;;  %v6570_v10 = vld [vmem:[%s9060_s4 + $0x30] sm:$0xff]  }
 0x8f9   :  { %6263 = vmatpush3.bf16.msra.mxu0 %v6570_v10 }
 0x8fa   :  { %6846 = vpow2.f32 %v1613_v50  ;;  %6264 = vmatprep.subr.bf16.mxu0 %v7033_v1 }
 0x8fb   :  { %v1595_v57 = vpop.xlane.xlu0 %1594 }
 0x8fc   :  { %v1607_v58 = vsub.f32 %v1573_v17, %v1595_v57 }
 0x8fe   :  { %v1615_v59 = vmul.f32 1.442695, %v1607_v58 }
 0x8ff   :  { %v1598_v11 = vpop.xlane.xlu0 %1597 }
 0x900   :  { %6848 = vpow2.f32 %v1615_v59  ;;  %v1608_v60 = vsub.f32 %v1576_v37, %v1598_v11 }
 0x902   :  { %v7706_v0 = vpop.eup %6844  ;;  %v1617_v29 = vmul.f32 1.442695, %v1608_v60 }
 0x903   :  { %v1601_v21 = vpop.xlane.xlu1 %1600  ;;  %v1623_v28 = vsel %vm629_vm4, %v7706_v0, 0.0 }
 0x904   :  { %v7710_v52 = vpop.eup %6846  ;;  %6850 = vpow2.f32 %v1617_v29  ;;  %v1609_v55 = vsub.f32 %v1581_v39, %v1601_v21  ;;  %1624 = vadd.xlane.f32.xlu1 %v1623_v28 }
 0x905   :  { %v1604_v48 = vpop.xlane.xlu0 %1603  ;;  %v1626_v30 = vsel %vm629_vm4, %v7710_v52, 0.0 }
 0x906   :  { %v1619_v12 = vmul.f32 1.442695, %v1609_v55  ;;  %v1610_v14 = vsub.f32 %v1584_v34, %v1604_v48  ;;  %1627 = vadd.xlane.f32.xlu0 %v1626_v30 }
 0x907   :  { %v1657_v22 = vpop.permute.xlu1 %1656 }
 0x908   :  { %6852 = vpow2.f32 %v1619_v12  ;;  %v1621_v13 = vmul.f32 1.442695, %v1610_v14  ;;  %6245 = vmatpush3.bf16.msra.mxu1 %v1657_v22 }
 0x909   :  { %6246 = vmatprep.subr.bf16.mxu1 %v7033_v1 }
 0x90a   :  { %v7715_v15 = vpop.eup %6848  ;;  %6854 = vpow2.f32 %v1621_v13 }
 0x90b   :  { %v1629_v41 = vsel %vm629_vm4, %v7715_v15, 0.0 }
 0x90c   :  { %1630 = vadd.xlane.f32.xlu1 %v1629_v41 }
 0x90e   :  { %v6851_v27 = vpop.eup %6850 }
 0x90f   :  { %v1632_v6 = vsel %vm629_vm4, %v6851_v27, 0.0 }
 0x910   :  { %1633 = vadd.xlane.f32.xlu0 %v1632_v6 }
 0x912   :  { %v7720_v17 = vpop.eup %6852 }
 0x913   :  { %v1635_v36 = vsel %vm629_vm4, %v7720_v17, 0.0 }
 0x914   :  { %v6855_v56 = vpop.eup %6854  ;;  %1636 = vadd.xlane.f32.xlu1 %v1635_v36 }
 0x915   :  { %v1638_v37 = vsel %vm629_vm4, %v6855_v56, 0.0 }
 0x916   :  { %1639 = vadd.xlane.f32.xlu0 %v1638_v37 }
 0x920   :  { %v1471_v26 = vpop.f32.mrb[64].mxu1 }
 0x921   :  { %v7726_v19 = vadd.f32 %v1471_v26, %v7600_v16  ;;  %v6216_v61 = vpop.f32.mrb[65].mxu1 }
 0x922   :  { %v1474_v2 = vpop.f32.mrb[66].mxu1 }
 0x923   :  { %v7729_v39 = vadd.f32 %v1474_v2, %v7602_v32  ;;  %v6217_v31 = vpop.f32.mrb[67].mxu1 }
 0x925   :  { %1660 = vrot.lane.b32.xlu1 %v7340_v20, %s7039_s18 }
 0x928   :  { %v1479_v40 = vpop.f32.mrb[68].mxu1 }
 0x929   :  { %v7734_v34 = vadd.f32 %v1479_v40, %v7604_v24  ;;  %v6220_v43 = vpop.f32.mrb[69].mxu1 }
 0x92a   :  { %v1482_v25 = vpop.f32.mrb[70].mxu1 }
 0x92b   :  { %v7737_v42 = vadd.f32 %v1482_v25, %v7606_v33  ;;  %v6221_v16 = vpop.f32.mrb[71].mxu1 }
 0x92c   :  { %1658 = vrot.lane.b32.xlu0 %v7319_v51, %s7039_s18 }
 0x932   :  { %v1487_v3 = vpop.f32.mrb[72].mxu1 }
 0x933   :  { %v7742_v32 = vadd.f32 %v1487_v3, %v7608_v18  ;;  %v6224_v47 = vpop.f32.mrb[73].mxu1  ;;  %v7776_v3 = vsub.s32 3, %v7271_v4 }
 0x934   :  { %v1490_v9 = vpop.f32.mrb[74].mxu1  ;;  %v7781_v47 = vld [vmem:[%s9063_s7] sm:$0xff] }
 0x935   :  { %v7745_v20 = vadd.f32 %v1490_v9, %v7610_v23  ;;  %v6225_v24 = vpop.f32.mrb[75].mxu1  ;;  %v1825_v9 = vrot.slane %v7781_v47, %v7776_v3 }
 0x991   :  { %v1625_v49 = vpop.xlane.xlu1 %1624 }
 0x993   :  { %v1628_v33 = vpop.xlane.xlu0 %1627 }
 0x994   :  { %6856 = vrcp.f32 %v1628_v33 }
 0x995   :  { %6858 = vrcp.f32 %v1625_v49 }
 0x999   :  { %v1631_v18 = vpop.xlane.xlu1 %1630 }
 0x99d   :  { %v1634_v51 = vpop.xlane.xlu0 %1633 }
 0x99e   :  { %6860 = vrcp.f32 %v1634_v51  ;;  %v6857_v58 = vpop.eup %6856 }
 0x99f   :  { %6862 = vrcp.f32 %v1631_v18  ;;  %v6859_v59 = vpop.eup %6858  ;;  %v1644_v11 = vmul.f32 %v6857_v58, %v7710_v52 }
 0x9a0   :  { %v1642_v60 = vmul.f32 %v6859_v59, %v7706_v0 }
 0x9a1   :  { %v1637_v57 = vpop.xlane.xlu1 %1636 }
 0x9a2   :  { %v1653_v21 = vpack.c.bf16 %v1644_v11, %v1642_v60 }
 0x9a3   :  { %v1640_v50 = vpop.xlane.xlu0 %1639 }
 0x9a4   :  { %6864 = vrcp.f32 %v1640_v50 }
 0x9a5   :  { %v1661_v29 = vpop.permute.xlu1 %1660  ;;  %6866 = vrcp.f32 %v1637_v57 }
 0x9a7   :  { %v1659_v23 = vpop.permute.xlu0 %1658 }
 0x9a8   :  { %6247 = vmatpush3.bf16.msra.mxu1 %v1659_v23  ;;  %v6861_v28 = vpop.eup %6860 }
 0x9a9   :  { %6248 = vmatprep.subr.bf16.mxu1 %v7033_v1  ;;  %v6863_v55 = vpop.eup %6862  ;;  %v1648_v48 = vmul.f32 %v6861_v28, %v6851_v27 }
 0x9aa   :  { %v1646_v30 = vmul.f32 %v6863_v55, %v7715_v15  ;;  %v6571_v15 = vld [vmem:[%s9060_s4 + $0x38] sm:$0xff]  }
 0x9ab   :  { %6265 = vmatpush3.bf16.msra.mxu0 %v6571_v15  ;;  %v6581_v15 = vld [vmem:[%s9061_s5 + $0x28] ss:$16 sps:$4 sm:$0xff]  }
 0x9ac   :  { %6249 = vmatpush3.bf16.msra.mxu1 %v1661_v29  ;;  %v1654_v52 = vpack.c.bf16 %v1648_v48, %v1646_v30 }
 0x9ae   :  { %v6865_v12 = vpop.eup %6864 }
 0x9af   :  { %6251 = vmatmul.mubr.msk.bf16.vlgmr.msra.gmra.mrb[76].mxu1 %vm629_vm4, %v1653_v21  ;;  %v6867_v0 = vpop.eup %6866  ;;  %v1652_v14 = vmul.f32 %v6865_v12, %v6855_v56 }
 0x9b0   :  { %6254 = vmatprep.mubr.msk.bf16.mxu1 %vm7034_vm0, %v7033_v1  ;;  %v1650_v22 = vmul.f32 %v6867_v0, %v7720_v17 }
 0x9b2   :  { %v1655_v13 = vpack.c.bf16 %v1652_v14, %v1650_v22 }
 0x9b7   :  { %6255 = vmatmul.mubr.msk.bf16.gmra.mrb[80].mxu1 %vm629_vm4, %v1654_v52 }
 0x9b8   :  { %6258 = vmatprep.mubr.msk.bf16.mxu1 %vm7034_vm0, %v7033_v1 }
 0x9bf   :  { %6259 = vmatmul.mubr.msk.bf16.gmra.mrb[84].mxu1 %vm629_vm4, %v1655_v13  ;;  %v6578_v13 = vld [vmem:[%s9061_s5 + $0x20] ss:$16 sps:$4 sm:$0xff]  }
 0x9c0   :  { %2174 = vmatprep.mubr.bf16.mxu1 %v7035_v38 }
 0xa82   :  { %v1708_v41 = vpop.f32.mrb[76].mxu1 }
 0xa83   :  { %v6252_v27 = vpop.f32.mrb[77].mxu1 }
 0xa84   :  { %v1711_v6 = vpop.f32.mrb[78].mxu1 }
 0xa85   :  { %v1731_v36 = vpack.c.bf16 %v1711_v6, %v1708_v41  ;;  %v6253_v37 = vpop.f32.mrb[79].mxu1 }
 0xa87   :  { %6267 = vmatmul.mubr.msk.bf16.vlgmr.msra.gmra.mrb[80].mxu0 %vm553_vm2, %v1731_v36 }
 0xa88   :  { %6270 = vmatprep.mubr.msk.bf16.mxu0 %vm7034_vm0, %v7033_v1 }
 0xa8a   :  { %v1716_v17 = vpop.f32.mrb[80].mxu1 }
 0xa8b   :  { %v6256_v56 = vpop.f32.mrb[81].mxu1 }
 0xa8c   :  { %v1719_v26 = vpop.f32.mrb[82].mxu1 }
 0xa8d   :  { %v1732_v61 = vpack.c.bf16 %v1719_v26, %v1716_v17  ;;  %v6257_v2 = vpop.f32.mrb[83].mxu1 }
 0xa8f   :  { %6271 = vmatmul.mubr.msk.bf16.gmra.mrb[84].mxu0 %vm553_vm2, %v1732_v61 }
 0xa90   :  { %6274 = vmatprep.mubr.msk.bf16.mxu0 %vm7034_vm0, %v7033_v1 }
 0xa92   :  { %v1724_v31 = vpop.f32.mrb[84].mxu1 }
 0xa93   :  { %v6260_v40 = vpop.f32.mrb[85].mxu1 }
 0xa94   :  { %v1727_v43 = vpop.f32.mrb[86].mxu1 }
 0xa95   :  { %v1733_v25 = vpack.c.bf16 %v1727_v43, %v1724_v31  ;;  %v6261_v16 = vpop.f32.mrb[87].mxu1 }
 0xa97   :  { %6275 = vmatmul.mubr.msk.bf16.gmra.mrb[88].mxu0 %vm553_vm2, %v1733_v25 }
 0xa98   :  { %2237 = vmatprep.mubr.bf16.mxu0 %v7035_v38 }
 0xb5a   :  { %v1793_v24 = vpop.f32.mrb[80].mxu0 }
 0xb5b   :  { %v1816_v10 = vadd.f32 %v1793_v24, %v7726_v19  ;;  %v6268_v33 = vpop.f32.mrb[81].mxu0 }
 0xb5c   :  { %v1796_v49 = vpop.f32.mrb[82].mxu0 }
 0xb5d   :  { %v1826_v51 = vadd.f32 %v1825_v9, %v1816_v10  ;;  %v1817_v18 = vadd.f32 %v1796_v49, %v7729_v39  ;;  %v6269_v50 = vpop.f32.mrb[83].mxu0 }
 0xb5f   :  { %v1827_v57 = vadd.f32 %v1825_v9, %v1817_v18  ;;  %v1832_v58 = vadd.f32 %v1826_v51, %v7230_v44 }
 0xb61   :  { %1838 = vadd.xlane.f32.xlu1 %v1832_v58  ;;  %v1833_v23 = vadd.f32 %v1827_v57, %v7232_v45  ;;  %v6586_v57 = vld [vmem:[%s9061_s5 + $0x44] ss:$16 sps:$4 sm:$0xff]  }
 0xb62   :  { %v1801_v59 = vpop.f32.mrb[84].mxu0 }
 0xb63   :  { %v1818_v11 = vadd.f32 %v1801_v59, %v7734_v34  ;;  %1840 = vadd.xlane.f32.xlu0 %v1833_v23  ;;  %v6272_v60 = vpop.f32.mrb[85].mxu0  ;;  %v6587_v59 = vld [vmem:[%s9061_s5 + $0x48] ss:$16 sps:$4 sm:$0xff]  }
 0xb64   :  { %v1804_v29 = vpop.f32.mrb[86].mxu0  ;;  %v6592_v60 = vld [vmem:[%s9061_s5 + $0x64] ss:$16 sps:$4 sm:$0xff]  }
 0xb65   :  { %v1828_v21 = vadd.f32 %v1825_v9, %v1818_v11  ;;  %v1819_v19 = vadd.f32 %v1804_v29, %v7737_v42  ;;  %v6273_v28 = vpop.f32.mrb[87].mxu0  ;;  %v6595_v29 = vld [vmem:[%s9061_s5 + $0x6c] ss:$16 sps:$4 sm:$0xff]  }
 0xb66   :  { %v6598_v28 = vld [vmem:[%s9061_s5 + $0x84] ss:$16 sps:$4 sm:$0xff]  }
 0xb67   :  { %v1829_v55 = vadd.f32 %v1825_v9, %v1819_v19  ;;  %v1834_v39 = vadd.f32 %v1828_v21, %v7245_v53  ;;  %v6572_v53 = vld [vmem:[%s9061_s5] ss:$16 sps:$4 sm:$0xff]   ;;  %v6593_v19 = vld [vmem:[%s9061_s5 + $0x68] ss:$16 sps:$4 sm:$0xff]  }
 0xb68   :  { %v6590_v21 = vld [vmem:[%s9061_s5 + $0x60] ss:$16 sps:$4 sm:$0xff]  }
 0xb69   :  { %1842 = vadd.xlane.f32.xlu0 %v1834_v39  ;;  %v1835_v48 = vadd.f32 %v1829_v55, %v7247_v54  ;;  %v6574_v54 = vld [vmem:[%s9061_s5 + $0x4] ss:$16 sps:$4 sm:$0xff]   ;;  %v6601_v55 = vld [vmem:[%s9061_s5 + $0x8c] ss:$16 sps:$4 sm:$0xff]  }
 0xb6a   :  { %v1809_v44 = vpop.f32.mrb[88].mxu0  ;;  %2142 = vmatprep.subr.bf16.mxu1 %v6574_v54  ;;  %v6617_v54 = vld [vmem:[%s9061_s5 + $0xe8] ss:$16 sps:$4 sm:$0xff]  }
 0xb6b   :  { %v1820_v30 = vadd.f32 %v1809_v44, %v7742_v32  ;;  %1844 = vadd.xlane.f32.xlu1 %v1835_v48  ;;  %v6276_v45 = vpop.f32.mrb[89].mxu0  ;;  %v6575_v32 = vld [vmem:[%s9061_s5 + $0x8] ss:$16 sps:$4 sm:$0xff]   ;;  %2143 = vmatpush1.bf16.msra.mxu1 %v6572_v53  ;;  %v6604_v44 = vld [vmem:[%s9061_s5 + $0xa4] ss:$16 sps:$4 sm:$0xff]  }
 0xb6c   :  { %v1812_v52 = vpop.f32.mrb[90].mxu0  ;;  %v6602_v45 = vld [vmem:[%s9061_s5 + $0xa0] ss:$16 sps:$4 sm:$0xff]  }
 0xb6d   :  { %v1830_v34 = vadd.f32 %v1825_v9, %v1820_v30  ;;  %v1821_v12 = vadd.f32 %v1812_v52, %v7745_v20  ;;  %v6277_v0 = vpop.f32.mrb[91].mxu0  ;;  %v6583_v20 = vld [vmem:[%s9061_s5 + $0x2c] ss:$16 sps:$4 sm:$0xff]   ;;  %v6605_v52 = vld [vmem:[%s9061_s5 + $0xa8] ss:$16 sps:$4 sm:$0xff]  }
 0xb6e   :  { %v6607_v30 = vld [vmem:[%s9061_s5 + $0xac] ss:$16 sps:$4 sm:$0xff]   ;;  %v6608_v0 = vld [vmem:[%s9061_s5 + $0xc0] ss:$16 sps:$4 sm:$0xff]  }
 0xb6f   :  { %v1831_v14 = vadd.f32 %v1825_v9, %v1821_v12  ;;  %v1836_v42 = vadd.f32 %v1830_v34, %v7260_v62  ;;  %v6577_v62 = vld [vmem:[%s9061_s5 + $0xc] ss:$16 sps:$4 sm:$0xff]   ;;  %v6610_v34 = vld [vmem:[%s9061_s5 + $0xc4] ss:$16 sps:$4 sm:$0xff]   ;;  %v6614_v53 = vld [vmem:[%s9061_s5 + $0xe0] ss:$16 sps:$4 sm:$0xff]  }
 0xb70   :  { %2205 = vmatprep.subr.bf16.mxu0 %v6577_v62  ;;  %v6613_v12 = vld [vmem:[%s9061_s5 + $0xcc] ss:$16 sps:$4 sm:$0xff]   ;;  %v6621_v62 = vld [vmem:[%s9062_s6 + $0xc0] sm:$0xff]  }
 0xb71   :  { %1846 = vadd.xlane.f32.xlu0 %v1836_v42  ;;  %v1837_v22 = vadd.f32 %v1831_v14, %v7262_v63  ;;  %v6580_v63 = vld [vmem:[%s9061_s5 + $0x24] ss:$16 sps:$4 sm:$0xff]   ;;  %2206 = vmatpush1.bf16.msra.mxu0 %v6575_v32  ;;  %v6611_v14 = vld [vmem:[%s9061_s5 + $0xc8] ss:$16 sps:$4 sm:$0xff]  }
 0xb72   :  { %2144 = vmatprep.subr.bf16.mxu1 %v6580_v63  ;;  %2207 = vmatprep.subr.bf16.mxu0 %v6583_v20  ;;  %v6620_v32 = vld [vmem:[%s9062_s6 + $0x40] sm:$0xff]  }
 0xb73   :  { %1848 = vadd.xlane.f32.xlu1 %v1837_v22  ;;  %2145 = vmatpush1.bf16.msra.mxu1 %v6578_v13 }
 0xb74   :  { %2146 = vmatprep.subr.bf16.mxu1 %v6586_v57 }
 0xb75   :  { %2208 = vmatpush1.bf16.msra.mxu0 %v6581_v15 }
 0xbee   :  { %v1839_v41 = vpop.xlane.xlu1 %1838 }
 0xbef   :  { %v1851_v27 = vmul.f32 0.0078125, %v1839_v41 }
 0xbf0   :  { %v1841_v6 = vpop.xlane.xlu0 %1840 }
 0xbf1   :  { %v1852_v36 = vmul.f32 0.0078125, %v1841_v6  ;;  %v7821_v37 = vsub.f32 %v1832_v58, %v1851_v27  ;;  %v6589_v58 = vld [vmem:[%s9061_s5 + $0x4c] ss:$16 sps:$4 sm:$0xff]  }
 0xbf2   :  { %2209 = vmatprep.subr.bf16.mxu0 %v6589_v58 }
 0xbf3   :  { %v1863_v17 = vmul.f32 %v7821_v37, %v7821_v37  ;;  %v7825_v56 = vsub.f32 %v1833_v23, %v1852_v36  ;;  %v6584_v23 = vld [vmem:[%s9061_s5 + $0x40] ss:$16 sps:$4 sm:$0xff]   ;;  %2210 = vmatpush1.bf16.msra.mxu0 %v6587_v59 }
 0xbf4   :  { %2147 = vmatpush1.bf16.msra.mxu1 %v6584_v23  ;;  %2211 = vmatprep.subr.bf16.mxu0 %v6595_v29 }
 0xbf5   :  { %1869 = vadd.xlane.f32.xlu0 %v1863_v17  ;;  %v1864_v26 = vmul.f32 %v7825_v56, %v7825_v56  ;;  %2148 = vmatprep.subr.bf16.mxu1 %v6592_v60  ;;  %v1907_v17 = vsub.s32 5, %v7271_v4 }
 0xbf6   :  { %v1843_v61 = vpop.xlane.xlu0 %1842 }
 0xbf7   :  { %v1853_v2 = vmul.f32 0.0078125, %v1843_v61  ;;  %1871 = vadd.xlane.f32.xlu1 %v1864_v26  ;;  %2212 = vmatpush1.bf16.msra.mxu0 %v6593_v19 }
 0xbf8   :  { %v1845_v31 = vpop.xlane.xlu1 %1844  ;;  %2149 = vmatpush1.bf16.msra.mxu1 %v6590_v21  ;;  %2213 = vmatprep.subr.bf16.mxu0 %v6601_v55  ;;  %v6622_v55 = vld [vmem:[%s9062_s6] sm:$0xff]  }
 0xbf9   :  { %v1854_v40 = vmul.f32 0.0078125, %v1845_v31  ;;  %v7829_v43 = vsub.f32 %v1834_v39, %v1853_v2  ;;  %v6596_v39 = vld [vmem:[%s9061_s5 + $0x80] ss:$16 sps:$4 sm:$0xff]   ;;  %2150 = vmatprep.subr.bf16.mxu1 %v6598_v28 }
 0xbfb   :  { %v1865_v25 = vmul.f32 %v7829_v43, %v7829_v43  ;;  %v7833_v16 = vsub.f32 %v1835_v48, %v1854_v40  ;;  %v6599_v48 = vld [vmem:[%s9061_s5 + $0x88] ss:$16 sps:$4 sm:$0xff]   ;;  %v7927_v40 = vrot.slane %v7781_v47, %v1907_v17 }
 0xbfc   :  { %2151 = vmatpush1.bf16.msra.mxu1 %v6596_v39  ;;  %2214 = vmatpush1.bf16.msra.mxu0 %v6599_v48  ;;  %v6623_v39 = vld [vmem:[%s9062_s6 + $0x80] sm:$0xff]  }
 0xbfd   :  { %1873 = vadd.xlane.f32.xlu0 %v1865_v25  ;;  %v1866_v9 = vmul.f32 %v7833_v16, %v7833_v16  ;;  %2152 = vmatprep.subr.bf16.mxu1 %v6604_v44  ;;  %v1917_v25 = vsub.s32 6, %v7271_v4  ;;  %v6624_v44 = vld [vmem:[%s9062_s6 + $0x48] sm:$0xff]  }
 0xbfe   :  { %v1847_v24 = vpop.xlane.xlu0 %1846  ;;  %2215 = vmatprep.subr.bf16.mxu0 %v6607_v30  ;;  %v6625_v30 = vld [vmem:[%s9062_s6 + $0xc8] sm:$0xff]  }
 0xbff   :  { %v1855_v10 = vmul.f32 0.0078125, %v1847_v24  ;;  %1875 = vadd.xlane.f32.xlu1 %v1866_v9  ;;  %v1918_v23 = vrot.slane %v7781_v47, %v1917_v25 }
 0xc00   :  { %v1849_v33 = vpop.xlane.xlu1 %1848  ;;  %2153 = vmatpush1.bf16.msra.mxu1 %v6602_v45  ;;  %2216 = vmatpush1.bf16.msra.mxu0 %v6605_v52 }
 0xc01   :  { %v1856_v49 = vmul.f32 0.0078125, %v1849_v33  ;;  %v7837_v51 = vsub.f32 %v1836_v42, %v1855_v10  ;;  %2154 = vmatprep.subr.bf16.mxu1 %v6610_v34  ;;  %2217 = vmatprep.subr.bf16.mxu0 %v6613_v12  ;;  %v6616_v42 = vld [vmem:[%s9061_s5 + $0xe4] ss:$16 sps:$4 sm:$0xff]   ;;  %v6626_v34 = vld [vmem:[%s9062_s6 + $0x8] sm:$0xff]  }
 0xc02   :  { %v6627_v12 = vld [vmem:[%s9062_s6 + $0x88] sm:$0xff]  }
 0xc03   :  { %v1867_v18 = vmul.f32 %v7837_v51, %v7837_v51  ;;  %v7841_v50 = vsub.f32 %v1837_v22, %v1856_v49  ;;  %v6619_v22 = vld [vmem:[%s9061_s5 + $0xec] ss:$16 sps:$4 sm:$0xff]  }
 0xc04   :  { %2155 = vmatpush1.bf16.msra.mxu1 %v6608_v0  ;;  %2218 = vmatpush1.bf16.msra.mxu0 %v6611_v14  ;;  %v6629_v0 = vld [vmem:[%s9062_s6 + $0xd0] sm:$0xff]  }
 0xc05   :  { %1877 = vadd.xlane.f32.xlu0 %v1867_v18  ;;  %v1868_v11 = vmul.f32 %v7841_v50, %v7841_v50  ;;  %2156 = vmatprep.subr.bf16.mxu1 %v6616_v42 }
 0xc06   :  { %2219 = vmatprep.subr.bf16.mxu0 %v6619_v22 }
 0xc07   :  { %1879 = vadd.xlane.f32.xlu1 %v1868_v11 }
 0xc08   :  { %2157 = vmatpush1.bf16.msra.mxu1 %v6614_v53  ;;  %2220 = vmatpush1.bf16.msra.mxu0 %v6617_v54 }
 0xc09   :  { %5807 = vmatprep.subr.bf16.mxu1 %v6620_v32  ;;  %5841 = vmatprep.subr.bf16.mxu0 %v6621_v62  ;;  %v6630_v32 = vld [vmem:[%s9062_s6 + $0x10] sm:$0xff]  }
 0xc0a   :  { %v6631_v62 = vld [vmem:[%s9062_s6 + $0x90] sm:$0xff]  }
 0xc82   :  { %v1870_v63 = vpop.xlane.xlu0 %1869 }
 0xc83   :  { %v1881_v20 = vmul.f32 0.0078125, %v1870_v63 }
 0xc84   :  { %v1872_v13 = vpop.xlane.xlu1 %1871 }
 0xc85   :  { %v1887_v15 = vadd.f32 1e-05, %v1881_v20  ;;  %v1882_v41 = vmul.f32 0.0078125, %v1872_v13  ;;  %v6632_v20 = vld [vmem:[%s9062_s6 + $0x58] sm:$0xff]  }
 0xc87   :  { %6868 = vrsqrt.f32 %v1887_v15  ;;  %v1888_v27 = vadd.f32 1e-05, %v1882_v41 }
 0xc89   :  { %6870 = vrsqrt.f32 %v1888_v27  ;;  %v6634_v27 = vld [vmem:[%s9062_s6 + $0x18] sm:$0xff]  }
 0xc8a   :  { %v1874_v6 = vpop.xlane.xlu0 %1873 }
 0xc8b   :  { %v1883_v36 = vmul.f32 0.0078125, %v1874_v6  ;;  %v6635_v6 = vld [vmem:[%s9062_s6 + $0x98] sm:$0xff]  }
 0xc8c   :  { %v1876_v26 = vpop.xlane.xlu1 %1875 }
 0xc8d   :  { %v1889_v61 = vadd.f32 1e-05, %v1883_v36  ;;  %v1884_v2 = vmul.f32 0.0078125, %v1876_v26  ;;  %v6637_v36 = vld [vmem:[%s9062_s6 + $0xe0] sm:$0xff]  }
 0xc8f   :  { %6872 = vrsqrt.f32 %v1889_v61  ;;  %v1890_v31 = vadd.f32 1e-05, %v1884_v2 }
 0xc91   :  { %v6869_v9 = vpop.eup %6868  ;;  %6874 = vrsqrt.f32 %v1890_v31  ;;  %v6638_v31 = vld [vmem:[%s9062_s6 + $0x20] sm:$0xff]  }
 0xc92   :  { %v1899_v24 = vmul.f32 %v6869_v9, %v7821_v37  ;;  %v1878_v10 = vpop.xlane.xlu0 %1877  ;;  %v6640_v9 = vld [vmem:[%s9062_s6 + $0x68] sm:$0xff]  }
 0xc93   :  { %v6871_v33 = vpop.eup %6870  ;;  %v1885_v49 = vmul.f32 0.0078125, %v1878_v10  ;;  %v6642_v10 = vld [vmem:[%s9062_s6 + $0x28] sm:$0xff]  }
 0xc94   :  { %v1909_v18 = vmul.f32 %v7927_v40, %v1899_v24  ;;  %v1900_v57 = vmul.f32 %v6871_v33, %v7825_v56  ;;  %v1880_v58 = vpop.xlane.xlu1 %1879  ;;  %v6641_v24 = vld [vmem:[%s9062_s6 + $0xe8] sm:$0xff]  }
 0xc95   :  { %v1891_v59 = vadd.f32 1e-05, %v1885_v49  ;;  %v1886_v11 = vmul.f32 0.0078125, %v1880_v58  ;;  %v6643_v33 = vld [vmem:[%s9062_s6 + $0xa8] sm:$0xff]   ;;  %v6644_v49 = vld [vmem:[%s9062_s6 + $0x70] sm:$0xff]  }
 0xc96   :  { %v1910_v60 = vmul.f32 %v7927_v40, %v1900_v57  ;;  %v7937_v21 = vadd.f32 %v1918_v23, %v1909_v18  ;;  %v6645_v18 = vld [vmem:[%s9062_s6 + $0xf0] sm:$0xff]  }
 0xc97   :  { %6876 = vrsqrt.f32 %v1891_v59  ;;  %v1892_v29 = vadd.f32 1e-05, %v1886_v11  ;;  %v6646_v57 = vld [vmem:[%s9062_s6 + $0x30] sm:$0xff]   ;;  %v6649_v59 = vld [vmem:[%s9062_s6 + $0xf8] sm:$0xff]  }
 0xc98   :  { %v7939_v37 = vadd.f32 %v1918_v23, %v1910_v60  ;;  %v6647_v58 = vld [vmem:[%s9062_s6 + $0xb0] sm:$0xff]   ;;  %v6650_v11 = vld [vmem:[%s9062_s6 + $0x38] sm:$0xff]  }
 0xc99   :  { %v6873_v19 = vpop.eup %6872  ;;  %6878 = vrsqrt.f32 %v1892_v29  ;;  %v6651_v60 = vld [vmem:[%s9062_s6 + $0xb8] sm:$0xff]   ;;  %v1960_v29 = vld [vmem:[%s9064_s8] sm:$0xf] }
 0xc9a   :  { %v1925_v56 = vpack.c.bf16 %v7939_v37, %v7937_v21  ;;  %v1901_v28 = vmul.f32 %v6873_v19, %v7829_v43  ;;  %v8062_v19 = vrot.slane %v1960_v29, %v7274_v5 }
 0xc9b   :  { %v6875_v48 = vpop.eup %6874 }
 0xc9c   :  { %2175 = vmatmul.mubr.bf16.vlgmr.msra.gmra.mrb[88].mxu1 %v1925_v56  ;;  %2238 = vmatmul.mubr.bf16.vlgmr.msra.gmra.mrb[92].mxu0 %v1925_v56  ;;  %v1902_v43 = vmul.f32 %v6875_v48, %v7833_v16  ;;  %v1911_v45 = vmul.f32 %v7927_v40, %v1901_v28  ;;  %v6628_v16 = vld [vmem:[%s9062_s6 + $0x50] sm:$0xff]   ;;  %v8065_v56 = vrot.slane %v1960_v29, %v7280_v7 }
 0xc9d   :  { %2184 = vmatprep.mubr.bf16.mxu1 %v7035_v38  ;;  %2247 = vmatprep.mubr.bf16.mxu0 %v7035_v38  ;;  %v8068_v28 = vrot.slane %v1960_v29, %v7283_v8 }
 0xc9e   :  { %v1912_v52 = vmul.f32 %v7927_v40, %v1902_v43  ;;  %5808 = vmatpush3.bf16.msra.mxu1 %v6622_v55  ;;  %5842 = vmatpush3.bf16.msra.mxu0 %v6623_v39  ;;  %v7973_v14 = vadd.f32 %v1918_v23, %v1911_v45  ;;  %v8071_v55 = vrot.slane %v1960_v29, %v7776_v3 }
 0xc9f   :  { %5809 = vmatprep.subr.bf16.mxu1 %v6624_v44  ;;  %5843 = vmatprep.subr.bf16.mxu0 %v6625_v30 }
 0xca0   :  { %v7975_v42 = vadd.f32 %v1918_v23, %v1912_v52 }
 0xca1   :  { %v6877_v22 = vpop.eup %6876 }
 0xca2   :  { %v1926_v53 = vpack.c.bf16 %v7975_v42, %v7973_v14  ;;  %v1903_v54 = vmul.f32 %v6877_v22, %v7837_v51  ;;  %5810 = vmatpush3.bf16.msra.mxu1 %v6626_v34  ;;  %5844 = vmatpush3.bf16.msra.mxu0 %v6627_v12  ;;  %v6633_v51 = vld [vmem:[%s9062_s6 + $0xd8] sm:$0xff]  }
 0xca3   :  { %v6879_v63 = vpop.eup %6878  ;;  %5811 = vmatprep.subr.bf16.mxu1 %v6628_v16  ;;  %5845 = vmatprep.subr.bf16.mxu0 %v6629_v0 }
 0xca4   :  { %2185 = vmatmul.mubr.bf16.gmra.mrb[92].mxu1 %v1926_v53  ;;  %2248 = vmatmul.mubr.bf16.gmra.mrb[96].mxu0 %v1926_v53  ;;  %v1904_v13 = vmul.f32 %v6879_v63, %v7841_v50  ;;  %v1913_v15 = vmul.f32 %v7927_v40, %v1903_v54  ;;  %v6636_v50 = vld [vmem:[%s9062_s6 + $0x60] sm:$0xff]  }
 0xca5   :  { %2194 = vmatprep.mubr.bf16.mxu1 %v7035_v38  ;;  %2257 = vmatprep.mubr.bf16.mxu0 %v7035_v38 }
 0xca6   :  { %v1914_v41 = vmul.f32 %v7927_v40, %v1904_v13  ;;  %5812 = vmatpush3.bf16.msra.mxu1 %v6630_v32  ;;  %5846 = vmatpush3.bf16.msra.mxu0 %v6631_v62  ;;  %v8009_v26 = vadd.f32 %v1918_v23, %v1913_v15  ;;  %v6639_v40 = vld [vmem:[%s9062_s6 + $0xa0] sm:$0xff]  }
 0xca7   :  { %5813 = vmatprep.subr.bf16.mxu1 %v6632_v20  ;;  %5847 = vmatprep.subr.bf16.mxu0 %v6633_v51 }
 0xca8   :  { %v8011_v61 = vadd.f32 %v1918_v23, %v1914_v41  ;;  %v6648_v23 = vld [vmem:[%s9062_s6 + $0x78] sm:$0xff]  }
 0xcaa   :  { %v1927_v2 = vpack.c.bf16 %v8011_v61, %v8009_v26  ;;  %5814 = vmatpush3.bf16.msra.mxu1 %v6634_v27  ;;  %5848 = vmatpush3.bf16.msra.mxu0 %v6635_v6 }
 0xcab   :  { %5815 = vmatprep.subr.bf16.mxu1 %v6636_v50  ;;  %5849 = vmatprep.subr.bf16.mxu0 %v6637_v36 }
 0xcac   :  { %2195 = vmatmul.mubr.bf16.gmra.mrb[96].mxu1 %v1927_v2  ;;  %2258 = vmatmul.mubr.bf16.gmra.mrb[100].mxu0 %v1927_v2 }
 0xcae   :  { %5816 = vmatpush3.bf16.msra.mxu1 %v6638_v31  ;;  %5850 = vmatpush3.bf16.msra.mxu0 %v6639_v40 }
 0xcaf   :  { %5817 = vmatprep.subr.bf16.mxu1 %v6640_v9  ;;  %5851 = vmatprep.subr.bf16.mxu0 %v6641_v24 }
 0xcb2   :  { %5818 = vmatpush3.bf16.msra.mxu1 %v6642_v10  ;;  %5852 = vmatpush3.bf16.msra.mxu0 %v6643_v33 }
 0xcb3   :  { %5819 = vmatprep.subr.bf16.mxu1 %v6644_v49  ;;  %5853 = vmatprep.subr.bf16.mxu0 %v6645_v18 }
 0xcb6   :  { %5820 = vmatpush3.bf16.msra.mxu1 %v6646_v57  ;;  %5854 = vmatpush3.bf16.msra.mxu0 %v6647_v58 }
 0xcb7   :  { %5821 = vmatprep.subr.bf16.mxu1 %v6648_v23  ;;  %5855 = vmatprep.subr.bf16.mxu0 %v6649_v59 }
 0xcba   :  { %5822 = vmatpush3.bf16.msra.mxu1 %v6650_v11  ;;  %5856 = vmatpush3.bf16.msra.mxu0 %v6651_v60 }
 0xcbb   :  { %6278 = vmatprep.subr.bf16.mxu0 %v7033_v1 }
 0xd6f   :  { %v2176_v39 = vpop.f32.mrb[88].mxu1  ;;  %v2239_v48 = vpop.f32.mrb[92].mxu0 }
 0xd70   :  { %v2177_v44 = vadd.f32 %v2176_v39, %v8062_v19  ;;  %v2240_v30 = vadd.f32 %v2239_v48, %v8065_v56  ;;  %v2178_v43 = vpop.f32.mrb[89].mxu1  ;;  %v2241_v45 = vpop.f32.mrb[93].mxu0 }
 0xd71   :  { %v2179_v52 = vadd.f32 %v2178_v43, %v8068_v28  ;;  %v2242_v34 = vadd.f32 %v2241_v45, %v8071_v55  ;;  %v2180_v12 = vpop.f32.mrb[90].mxu1  ;;  %v2243_v16 = vpop.f32.mrb[94].mxu0 }
 0xd72   :  { %v2181_v0 = vadd.f32 %v2180_v12, %v8062_v19  ;;  %v2244_v22 = vadd.f32 %v2243_v16, %v8065_v56  ;;  %v2182_v53 = vpop.f32.mrb[91].mxu1  ;;  %v2245_v54 = vpop.f32.mrb[95].mxu0  ;;  %v2268_v63 = vmax.f32 %v2177_v44, 0.0  ;;  %v2270_v20 = vmax.f32 %v2240_v30, 0.0 }
 0xd73   :  { %v2183_v32 = vadd.f32 %v2182_v53, %v8068_v28  ;;  %v2246_v62 = vadd.f32 %v2245_v54, %v8071_v55  ;;  %v2269_v15 = vmax.f32 %v2179_v52, 0.0  ;;  %v2271_v41 = vmax.f32 %v2242_v34, 0.0 }
 0xd74   :  { %v2272_v51 = vmax.f32 %v2181_v0, 0.0  ;;  %v2274_v13 = vmax.f32 %v2244_v22, 0.0 }
 0xd75   :  { %v2273_v27 = vmax.f32 %v2183_v32, 0.0  ;;  %v2275_v6 = vmax.f32 %v2246_v62, 0.0 }
 0xd76   :  { %v2292_v50 = vpack.c.bf16 %v2272_v51, %v2268_v63  ;;  %v2294_v36 = vpack.c.bf16 %v2274_v13, %v2270_v20 }
 0xd77   :  { %v2293_v2 = vpack.c.bf16 %v2273_v27, %v2269_v15  ;;  %v2295_v31 = vpack.c.bf16 %v2275_v6, %v2271_v41  ;;  %v2186_v40 = vpop.f32.mrb[92].mxu1  ;;  %v2249_v9 = vpop.f32.mrb[96].mxu0 }
 0xd78   :  { %v2187_v24 = vadd.f32 %v2186_v40, %v8062_v19  ;;  %v2250_v10 = vadd.f32 %v2249_v9, %v8065_v56  ;;  %v2188_v33 = vpop.f32.mrb[93].mxu1  ;;  %v2251_v49 = vpop.f32.mrb[97].mxu0 }
 0xd79   :  { %v2189_v18 = vadd.f32 %v2188_v33, %v8068_v28  ;;  %v2252_v57 = vadd.f32 %v2251_v49, %v8071_v55  ;;  %v2190_v58 = vpop.f32.mrb[94].mxu1  ;;  %v2253_v23 = vpop.f32.mrb[98].mxu0  ;;  %2596 = vmatprep.mubr.bf16.mxu1 %v2293_v2  ;;  %2653 = vmatprep.mubr.bf16.mxu0 %v2295_v31 }
 0xd7a   :  { %v2191_v59 = vadd.f32 %v2190_v58, %v8062_v19  ;;  %v2254_v11 = vadd.f32 %v2253_v23, %v8065_v56  ;;  %v2192_v60 = vpop.f32.mrb[95].mxu1  ;;  %v2255_v29 = vpop.f32.mrb[99].mxu0  ;;  %2597 = vmatmul.mubr.bf16.vlgmr.msra.gmra.mrb[100].mxu1 %v2292_v50  ;;  %2654 = vmatmul.mubr.bf16.vlgmr.msra.gmra.mrb[104].mxu0 %v2294_v36  ;;  %v2276_v44 = vmax.f32 %v2187_v24, 0.0  ;;  %v2278_v30 = vmax.f32 %v2250_v10, 0.0 }
 0xd7b   :  { %v2193_v39 = vadd.f32 %v2192_v60, %v8068_v28  ;;  %v2256_v48 = vadd.f32 %v2255_v29, %v8071_v55  ;;  %v2277_v52 = vmax.f32 %v2189_v18, 0.0  ;;  %v2279_v34 = vmax.f32 %v2252_v57, 0.0 }
 0xd7c   :  { %v2280_v43 = vmax.f32 %v2191_v59, 0.0  ;;  %v2282_v45 = vmax.f32 %v2254_v11, 0.0 }
 0xd7d   :  { %v2281_v12 = vmax.f32 %v2193_v39, 0.0  ;;  %v2283_v16 = vmax.f32 %v2256_v48, 0.0 }
 0xd7e   :  { %v2296_v0 = vpack.c.bf16 %v2280_v43, %v2276_v44  ;;  %v2298_v22 = vpack.c.bf16 %v2282_v45, %v2278_v30 }
 0xd7f   :  { %v2297_v53 = vpack.c.bf16 %v2281_v12, %v2277_v52  ;;  %v2299_v54 = vpack.c.bf16 %v2283_v16, %v2279_v34  ;;  %v2196_v32 = vpop.f32.mrb[96].mxu1  ;;  %v2259_v62 = vpop.f32.mrb[100].mxu0 }
 0xd80   :  { %v2197_v63 = vadd.f32 %v2196_v32, %v8062_v19  ;;  %v2260_v20 = vadd.f32 %v2259_v62, %v8065_v56  ;;  %v2198_v51 = vpop.f32.mrb[97].mxu1  ;;  %v2261_v13 = vpop.f32.mrb[101].mxu0 }
 0xd81   :  { %v2199_v15 = vadd.f32 %v2198_v51, %v8068_v28  ;;  %v2262_v41 = vadd.f32 %v2261_v13, %v8071_v55  ;;  %v2200_v27 = vpop.f32.mrb[98].mxu1  ;;  %v2263_v6 = vpop.f32.mrb[102].mxu0  ;;  %2604 = vmatprep.mubr.bf16.mxu1 %v2297_v53  ;;  %2661 = vmatprep.mubr.bf16.mxu0 %v2299_v54 }
 0xd82   :  { %v2201_v50 = vadd.f32 %v2200_v27, %v8062_v19  ;;  %v2264_v36 = vadd.f32 %v2263_v6, %v8065_v56  ;;  %v2202_v2 = vpop.f32.mrb[99].mxu1  ;;  %v2265_v31 = vpop.f32.mrb[103].mxu0  ;;  %2605 = vmatmul.mubr.bf16.gmra.mrb[104].mxu1 %v2296_v0  ;;  %2662 = vmatmul.mubr.bf16.gmra.mrb[108].mxu0 %v2298_v22  ;;  %v2284_v24 = vmax.f32 %v2197_v63, 0.0  ;;  %v2286_v10 = vmax.f32 %v2260_v20, 0.0 }
 0xd83   :  { %v2203_v40 = vadd.f32 %v2202_v2, %v8068_v28  ;;  %v2266_v9 = vadd.f32 %v2265_v31, %v8071_v55  ;;  %v2285_v18 = vmax.f32 %v2199_v15, 0.0  ;;  %v2287_v57 = vmax.f32 %v2262_v41, 0.0 }
 0xd84   :  { %v2288_v33 = vmax.f32 %v2201_v50, 0.0  ;;  %v2290_v49 = vmax.f32 %v2264_v36, 0.0  ;;  %v2370_v28 = vsub.s32 4, %v7271_v4 }
 0xd85   :  { %v2289_v58 = vmax.f32 %v2203_v40, 0.0  ;;  %v2291_v23 = vmax.f32 %v2266_v9, 0.0 }
 0xd86   :  { %v2300_v59 = vpack.c.bf16 %v2288_v33, %v2284_v24  ;;  %v2302_v19 = vpack.c.bf16 %v2290_v49, %v2286_v10  ;;  %v2371_v29 = vrot.slane %v7781_v47, %v2370_v28 }
 0xd87   :  { %v2301_v11 = vpack.c.bf16 %v2289_v58, %v2285_v18  ;;  %v2303_v56 = vpack.c.bf16 %v2291_v23, %v2287_v57 }
 0xd89   :  { %2612 = vmatprep.mubr.bf16.mxu1 %v2301_v11  ;;  %2669 = vmatprep.mubr.bf16.mxu0 %v2303_v56 }
 0xd8a   :  { %2613 = vmatmul.mubr.bf16.gmra.mrb[108].mxu1 %v2300_v59  ;;  %2670 = vmatmul.mubr.bf16.gmra.mrb[112].mxu0 %v2302_v19 }
 0xd8b   :  { %2969 = vmatprep.mubr.bf16.mxu1 %v7035_v38  ;;  %6294 = vmatprep.mubr.msk.bf16.mxu0 %vm7034_vm0, %v7033_v1 }
 0xe4d   :  { %v5823_v55 = vpop.f32.mrb[100].mxu1  ;;  %v5857_v60 = vpop.f32.mrb[104].mxu0 }
 0xe4e   :  { %v5824_v39 = vpop.f32.mrb[101].mxu1  ;;  %v5858_v48 = vpop.f32.mrb[105].mxu0 }
 0xe4f   :  { %v5825_v44 = vadd.f32 %v5824_v39, %v5823_v55  ;;  %v5859_v30 = vadd.f32 %v5858_v48, %v5857_v60  ;;  %v5826_v43 = vpop.f32.mrb[102].mxu1  ;;  %v5860_v45 = vpop.f32.mrb[106].mxu0 }
 0xe50   :  { %v5827_v52 = vpop.f32.mrb[103].mxu1  ;;  %v5861_v34 = vpop.f32.mrb[107].mxu0 }
 0xe51   :  { %v2599_v12 = vadd.f32 %v5825_v44, %v2371_v29  ;;  %v5828_v16 = vadd.f32 %v5827_v52, %v5826_v43  ;;  %v5862_v0 = vadd.f32 %v5861_v34, %v5860_v45  ;;  %v6652_v43 = vld [vmem:[%s9059_s3 + $0xc0] ss:$12 sps:$4 sm:$0xff]   ;;  %v6655_v45 = vld [vmem:[%s9059_s3 + $0xc8] ss:$12 sps:$4 sm:$0xff]  }
 0xe52   :  { %6279 = vmatpush3.bf16.msra.mxu0 %v6655_v45 }
 0xe53   :  { %v2656_v22 = vadd.f32 %v5859_v30, %v2599_v12  ;;  %v2602_v53 = vadd.f32 %v5828_v16, %v2371_v29  ;;  %6280 = vmatprep.subr.bf16.mxu0 %v7033_v1 }
 0xe55   :  { %v2659_v54 = vadd.f32 %v5862_v0, %v2602_v53  ;;  %v5829_v32 = vpop.f32.mrb[104].mxu1  ;;  %v5863_v62 = vpop.f32.mrb[108].mxu0  ;;  %v2678_v63 = vadd.f32 %v2656_v22, %v7937_v21 }
 0xe56   :  { %v5830_v20 = vpop.f32.mrb[105].mxu1  ;;  %v5864_v47 = vpop.f32.mrb[109].mxu0 }
 0xe57   :  { %v5831_v51 = vadd.f32 %v5830_v20, %v5829_v32  ;;  %v5865_v13 = vadd.f32 %v5864_v47, %v5863_v62  ;;  %v5832_v15 = vpop.f32.mrb[106].mxu1  ;;  %v5866_v41 = vpop.f32.mrb[110].mxu0  ;;  %2684 = vadd.xlane.f32.xlu0 %v2678_v63  ;;  %v2679_v27 = vadd.f32 %v2659_v54, %v7939_v37 }
 0xe58   :  { %v5833_v6 = vpop.f32.mrb[107].mxu1  ;;  %v5867_v50 = vpop.f32.mrb[111].mxu0 }
 0xe59   :  { %v2607_v36 = vadd.f32 %v5831_v51, %v2371_v29  ;;  %v5834_v2 = vadd.f32 %v5833_v6, %v5832_v15  ;;  %v5868_v31 = vadd.f32 %v5867_v50, %v5866_v41  ;;  %2686 = vadd.xlane.f32.xlu1 %v2679_v27 }
 0xe5b   :  { %v2664_v40 = vadd.f32 %v5865_v13, %v2607_v36  ;;  %v2610_v9 = vadd.f32 %v5834_v2, %v2371_v29 }
 0xe5d   :  { %v2667_v24 = vadd.f32 %v5868_v31, %v2610_v9  ;;  %v5835_v10 = vpop.f32.mrb[108].mxu1  ;;  %v5869_v21 = vpop.f32.mrb[112].mxu0  ;;  %v2680_v33 = vadd.f32 %v2664_v40, %v7973_v14  ;;  %v6662_v40 = vld [vmem:[%s9059_s3 + $0xf4] ss:$12 sps:$4 sm:$0xff]   ;;  %v6660_v9 = vld [vmem:[%s9059_s3 + $0xf0] ss:$12 sps:$4 sm:$0xff]  }
 0xe5e   :  { %v5836_v49 = vpop.f32.mrb[109].mxu1  ;;  %v5870_v18 = vpop.f32.mrb[113].mxu0 }
 0xe5f   :  { %v5837_v57 = vadd.f32 %v5836_v49, %v5835_v10  ;;  %v5871_v58 = vadd.f32 %v5870_v18, %v5869_v21  ;;  %v5838_v23 = vpop.f32.mrb[110].mxu1  ;;  %v5872_v59 = vpop.f32.mrb[114].mxu0  ;;  %2688 = vadd.xlane.f32.xlu0 %v2680_v33  ;;  %v2681_v37 = vadd.f32 %v2667_v24, %v7975_v42  ;;  %v6654_v42 = vld [vmem:[%s9059_s3 + $0xc4] ss:$12 sps:$4 sm:$0xff]   ;;  %v6666_v21 = vld [vmem:[%s9059_s3 + $0x10c] ss:$12 sps:$4 sm:$0xff]  }
 0xe60   :  { %v5839_v19 = vpop.f32.mrb[111].mxu1  ;;  %v5873_v11 = vpop.f32.mrb[115].mxu0  ;;  %2937 = vmatprep.subr.bf16.mxu1 %v6654_v42  ;;  %v6663_v24 = vld [vmem:[%s9059_s3 + $0xf8] ss:$12 sps:$4 sm:$0xff]   ;;  %v6667_v49 = vld [vmem:[%s9059_s3 + $0x110] ss:$12 sps:$4 sm:$0xff]  }
 0xe61   :  { %v2615_v56 = vadd.f32 %v5837_v57, %v2371_v29  ;;  %v5840_v55 = vadd.f32 %v5839_v19, %v5838_v23  ;;  %v5874_v60 = vadd.f32 %v5873_v11, %v5872_v59  ;;  %2690 = vadd.xlane.f32.xlu1 %v2681_v37  ;;  %2938 = vmatpush1.bf16.msra.mxu1 %v6652_v43  ;;  %v6670_v18 = vld [vmem:[%s9059_s3 + $0x124] ss:$12 sps:$4 sm:$0xff]   ;;  %v6668_v57 = vld [vmem:[%s9059_s3 + $0x120] ss:$12 sps:$4 sm:$0xff]   ;;  %v6674_v23 = vld [vmem:[%s9059_s3 + $0x13c] ss:$12 sps:$4 sm:$0xff]  }
 0xe62   :  { %v6672_v59 = vld [vmem:[%s9059_s3 + $0x138] ss:$12 sps:$4 sm:$0xff]   ;;  %v6678_v19 = vld [vmem:[%s9059_s3 + $0x154] ss:$12 sps:$4 sm:$0xff]   ;;  %v6676_v11 = vld [vmem:[%s9059_s3 + $0x150] ss:$12 sps:$4 sm:$0xff]  }
 0xe63   :  { %v2672_v39 = vadd.f32 %v5871_v58, %v2615_v56  ;;  %v2618_v48 = vadd.f32 %v5840_v55, %v2371_v29  ;;  %v6656_v29 = vld [vmem:[%s9059_s3 + $0xd8] ss:$12 sps:$4 sm:$0xff]   ;;  %v6671_v58 = vld [vmem:[%s9059_s3 + $0x128] ss:$12 sps:$4 sm:$0xff]  }
 0xe64   :  { %v6679_v56 = vld [vmem:[%s9059_s3 + $0x158] ss:$12 sps:$4 sm:$0xff]  }
 0xe65   :  { %v2675_v44 = vadd.f32 %v5874_v60, %v2618_v48  ;;  %v2682_v14 = vadd.f32 %v2672_v39, %v8009_v26  ;;  %v6658_v26 = vld [vmem:[%s9059_s3 + $0xdc] ss:$12 sps:$4 sm:$0xff]   ;;  %v6682_v55 = vld [vmem:[%s9059_s3 + $0x16c] ss:$12 sps:$4 sm:$0xff]  }
 0xe66   :  { %2939 = vmatprep.subr.bf16.mxu1 %v6658_v26  ;;  %v6680_v60 = vld [vmem:[%s9059_s3 + $0x168] ss:$12 sps:$4 sm:$0xff]   ;;  %v6683_v39 = vld [vmem:[%s9059_s3 + $0x170] ss:$12 sps:$4 sm:$0xff]  }
 0xe67   :  { %2692 = vadd.xlane.f32.xlu0 %v2682_v14  ;;  %v2683_v30 = vadd.f32 %v2675_v44, %v8011_v61  ;;  %v6659_v61 = vld [vmem:[%s9059_s3 + $0xe0] ss:$12 sps:$4 sm:$0xff]   ;;  %2940 = vmatpush1.bf16.msra.mxu1 %v6656_v29 }
 0xe68   :  { %6281 = vmatpush3.bf16.msra.mxu0 %v6659_v61  ;;  %2941 = vmatprep.subr.bf16.mxu1 %v6662_v40  ;;  %v2752_v61 = vsub.s32 7, %v7271_v4 }
 0xe69   :  { %2694 = vadd.xlane.f32.xlu1 %v2683_v30  ;;  %6282 = vmatprep.subr.bf16.mxu0 %v7033_v1 }
 0xe6b   :  { %2942 = vmatpush1.bf16.msra.mxu1 %v6660_v9 }
 0xe6c   :  { %6283 = vmatpush3.bf16.msra.mxu0 %v6663_v24  ;;  %2943 = vmatprep.subr.bf16.mxu1 %v6666_v21 }
 0xe6d   :  { %6284 = vmatprep.subr.bf16.mxu0 %v7033_v1 }
 0xe70   :  { %6285 = vmatpush3.bf16.msra.mxu0 %v6667_v49 }
 0xe71   :  { %6286 = vmatprep.subr.bf16.mxu0 %v7033_v1 }
 0xe74   :  { %6287 = vmatpush3.bf16.msra.mxu0 %v6671_v58 }
 0xe75   :  { %6288 = vmatprep.subr.bf16.mxu0 %v7033_v1 }
 0xee4   :  { %v2685_v52 = vpop.xlane.xlu0 %2684 }
 0xee5   :  { %v2696_v34 = vmul.f32 0.0078125, %v2685_v52 }
 0xee6   :  { %v2687_v12 = vpop.xlane.xlu1 %2686 }
 0xee7   :  { %v2697_v16 = vmul.f32 0.0078125, %v2687_v12  ;;  %v8130_v0 = vsub.f32 %v2678_v63, %v2696_v34 }
 0xee9   :  { %v2708_v22 = vmul.f32 %v8130_v0, %v8130_v0  ;;  %v8134_v53 = vsub.f32 %v2679_v27, %v2697_v16  ;;  %v7007_v16 = vld [vmem:[%s9063_s7] sm:$0xff] }
 0xeeb   :  { %2714 = vadd.xlane.f32.xlu0 %v2708_v22  ;;  %v2709_v54 = vmul.f32 %v8134_v53, %v8134_v53  ;;  %v2753_v22 = vrot.slane %v7007_v16, %v2752_v61 }
 0xeec   :  { %v2689_v32 = vpop.xlane.xlu0 %2688 }
 0xeed   :  { %v2698_v62 = vmul.f32 0.0078125, %v2689_v32  ;;  %2716 = vadd.xlane.f32.xlu1 %v2709_v54 }
 0xeee   :  { %v2691_v20 = vpop.xlane.xlu1 %2690 }
 0xeef   :  { %v2699_v47 = vmul.f32 0.0078125, %v2691_v20  ;;  %v8138_v51 = vsub.f32 %v2680_v33, %v2698_v62  ;;  %v6664_v33 = vld [vmem:[%s9059_s3 + $0x108] ss:$12 sps:$4 sm:$0xff]  }
 0xef0   :  { %2944 = vmatpush1.bf16.msra.mxu1 %v6664_v33 }
 0xef1   :  { %v2710_v63 = vmul.f32 %v8138_v51, %v8138_v51  ;;  %v8142_v13 = vsub.f32 %v2681_v37, %v2699_v47  ;;  %2945 = vmatprep.subr.bf16.mxu1 %v6670_v18  ;;  %v6675_v37 = vld [vmem:[%s9059_s3 + $0x140] ss:$12 sps:$4 sm:$0xff]  }
 0xef2   :  { %6289 = vmatpush3.bf16.msra.mxu0 %v6675_v37 }
 0xef3   :  { %2718 = vadd.xlane.f32.xlu0 %v2710_v63  ;;  %v2711_v15 = vmul.f32 %v8142_v13, %v8142_v13  ;;  %6290 = vmatprep.subr.bf16.mxu0 %v7033_v1 }
 0xef4   :  { %v2693_v41 = vpop.xlane.xlu0 %2692  ;;  %2946 = vmatpush1.bf16.msra.mxu1 %v6668_v57 }
 0xef5   :  { %v2700_v27 = vmul.f32 0.0078125, %v2693_v41  ;;  %2720 = vadd.xlane.f32.xlu1 %v2711_v15  ;;  %2947 = vmatprep.subr.bf16.mxu1 %v6674_v23 }
 0xef6   :  { %v2695_v6 = vpop.xlane.xlu1 %2694  ;;  %6291 = vmatpush3.bf16.msra.mxu0 %v6679_v56 }
 0xef7   :  { %v8146_v50 = vsub.f32 %v2682_v14, %v2700_v27  ;;  %v2701_v36 = vmul.f32 0.0078125, %v2695_v6  ;;  %6292 = vmatprep.subr.bf16.mxu0 %v7033_v1 }
 0xef8   :  { %2948 = vmatpush1.bf16.msra.mxu1 %v6672_v59 }
 0xef9   :  { %v2712_v2 = vmul.f32 %v8146_v50, %v8146_v50  ;;  %v8150_v31 = vsub.f32 %v2683_v30, %v2701_v36  ;;  %2949 = vmatprep.subr.bf16.mxu1 %v6678_v19  ;;  %v5438_v36 = vld [vmem:[%s9063_s7 + $0x8] ss:$0 sm:$0xff] }
 0xefa   :  { %6293 = vmatpush3.bf16.msra.mxu0 %v6683_v39 }
 0xefb   :  { %2722 = vadd.xlane.f32.xlu0 %v2712_v2  ;;  %v2713_v10 = vmul.f32 %v8150_v31, %v8150_v31  ;;  %6324 = vmatprep.subr.bf16.mxu0 %v7033_v1 }
 0xefc   :  { %2950 = vmatpush1.bf16.msra.mxu1 %v6676_v11 }
 0xefd   :  { %2724 = vadd.xlane.f32.xlu1 %v2713_v10  ;;  %2951 = vmatprep.subr.bf16.mxu1 %v6682_v55 }
 0xf00   :  { %2952 = vmatpush1.bf16.msra.mxu1 %v6680_v60 }
 0xf01   :  { %6306 = vmatprep.subr.bf16.mxu1 %v7033_v1 }
 0xf78   :  { %v2715_v48 = vpop.xlane.xlu0 %2714 }
 0xf79   :  { %v2726_v44 = vmul.f32 0.0078125, %v2715_v48 }
 0xf7a   :  { %v2717_v14 = vpop.xlane.xlu1 %2716 }
 0xf7b   :  { %v2732_v30 = vadd.f32 1e-05, %v2726_v44  ;;  %v2727_v43 = vmul.f32 0.0078125, %v2717_v14 }
 0xf7d   :  { %6880 = vrsqrt.f32 %v2732_v30  ;;  %v2733_v42 = vadd.f32 1e-05, %v2727_v43 }
 0xf7f   :  { %6882 = vrsqrt.f32 %v2733_v42 }
 0xf80   :  { %v2719_v45 = vpop.xlane.xlu0 %2718 }
 0xf81   :  { %v2728_v26 = vmul.f32 0.0078125, %v2719_v45 }
 0xf82   :  { %v2721_v29 = vpop.xlane.xlu1 %2720 }
 0xf83   :  { %v2734_v52 = vadd.f32 1e-05, %v2728_v26  ;;  %v2729_v34 = vmul.f32 0.0078125, %v2721_v29 }
 0xf85   :  { %6884 = vrsqrt.f32 %v2734_v52  ;;  %v2735_v12 = vadd.f32 1e-05, %v2729_v34 }
 0xf87   :  { %v6881_v54 = vpop.eup %6880  ;;  %6886 = vrsqrt.f32 %v2735_v12 }
 0xf88   :  { %v2744_v32 = vmul.f32 %v6881_v54, %v8130_v0  ;;  %v2723_v62 = vpop.xlane.xlu0 %2722 }
 0xf89   :  { %v6883_v20 = vpop.eup %6882  ;;  %v2730_v47 = vmul.f32 0.0078125, %v2723_v62 }
 0xf8a   :  { %v2754_v63 = vmul.f32 %v2753_v22, %v2744_v32  ;;  %v2745_v15 = vmul.f32 %v6883_v20, %v8134_v53  ;;  %v2725_v41 = vpop.xlane.xlu1 %2724 }
 0xf8b   :  { %v2736_v27 = vadd.f32 1e-05, %v2730_v47  ;;  %v2731_v6 = vmul.f32 0.0078125, %v2725_v41 }
 0xf8c   :  { %v2755_v2 = vmul.f32 %v2753_v22, %v2745_v15  ;;  %v8226_v9 = vadd.f32 %v5438_v36, %v2754_v63 }
 0xf8d   :  { %6888 = vrsqrt.f32 %v2736_v27  ;;  %v2737_v40 = vadd.f32 1e-05, %v2731_v6 }
 0xf8e   :  { %v8228_v24 = vadd.f32 %v5438_v36, %v2755_v2 }
 0xf8f   :  { %v6885_v0 = vpop.eup %6884  ;;  %6890 = vrsqrt.f32 %v2737_v40 }
 0xf90   :  { %v2773_v10 = vpack.c.bf16 %v8228_v24, %v8226_v9  ;;  %v2746_v53 = vmul.f32 %v6885_v0, %v8138_v51 }
 0xf91   :  { %v6887_v21 = vpop.eup %6886 }
 0xf92   :  { %2970 = vmatmul.mubr.bf16.vlgmr.msra.gmra.mrb[112].mxu1 %v2773_v10  ;;  %6295 = vmatmul.mubr.bf16.vlgmr.msra.gmra.mrb[116].mxu0 %v2773_v10  ;;  %v2747_v33 = vmul.f32 %v6887_v21, %v8142_v13  ;;  %v2756_v49 = vmul.f32 %v2753_v22, %v2746_v53 }
 0xf93   :  { %2979 = vmatprep.mubr.bf16.mxu1 %v7035_v38  ;;  %6298 = vmatprep.mubr.msk.bf16.mxu0 %vm7034_vm0, %v7033_v1 }
 0xf94   :  { %v2757_v18 = vmul.f32 %v2753_v22, %v2747_v33  ;;  %v8237_v57 = vadd.f32 %v5438_v36, %v2756_v49 }
 0xf96   :  { %v8239_v58 = vadd.f32 %v5438_v36, %v2757_v18 }
 0xf97   :  { %v6889_v23 = vpop.eup %6888 }
 0xf98   :  { %v2774_v51 = vpack.c.bf16 %v8239_v58, %v8237_v57  ;;  %v2748_v59 = vmul.f32 %v6889_v23, %v8146_v50  ;;  %v5439_v50 = vld [vmem:[%s9063_s7 + $0x10] sm:$0xff] }
 0xf99   :  { %v6891_v37 = vpop.eup %6890  ;;  %v3086_v39 = vrot.slane %v5439_v50, %v7280_v7  ;;  %v8264_v14 = vrot.slane %v5439_v50, %v7283_v8 }
 0xf9a   :  { %2980 = vmatmul.mubr.bf16.gmra.mrb[116].mxu1 %v2774_v51  ;;  %6299 = vmatmul.mubr.bf16.gmra.mrb[120].mxu0 %v2774_v51  ;;  %v2749_v13 = vmul.f32 %v6891_v37, %v8150_v31  ;;  %v2758_v19 = vmul.f32 %v2753_v22, %v2748_v59  ;;  %v3060_v31 = vrot.slane %v5439_v50, %v7274_v5 }
 0xf9b   :  { %2989 = vmatprep.mubr.bf16.mxu1 %v7035_v38  ;;  %6302 = vmatprep.mubr.msk.bf16.mxu0 %vm7034_vm0, %v7033_v1 }
 0xf9c   :  { %v2759_v11 = vmul.f32 %v2753_v22, %v2749_v13  ;;  %v8248_v56 = vadd.f32 %v5438_v36, %v2758_v19 }
 0xf9e   :  { %v8250_v55 = vadd.f32 %v5438_v36, %v2759_v11 }
 0xfa0   :  { %v2775_v60 = vpack.c.bf16 %v8250_v55, %v8248_v56 }
 0xfa2   :  { %2990 = vmatmul.mubr.bf16.gmra.mrb[120].mxu1 %v2775_v60  ;;  %6303 = vmatmul.mubr.bf16.gmra.mrb[124].mxu0 %v2775_v60 }
 0xfa3   :  { %6312 = vmatprep.mubr.msk.bf16.mxu1 %vm7034_vm0, %v7033_v1  ;;  %6330 = vmatprep.mubr.msk.bf16.mxu0 %vm7034_vm0, %v7033_v1 }
0x1065   :  { %v2971_v48 = vpop.f32.mrb[112].mxu1  ;;  %v3034_v44 = vpop.f32.mrb[116].mxu0 }
0x1066   :  { %v3061_v30 = vadd.f32 %v3060_v31, %v2971_v48  ;;  %v2973_v43 = vpop.f32.mrb[113].mxu1  ;;  %v6296_v42 = vpop.f32.mrb[117].mxu0  ;;  %v3087_v29 = vadd.f32 %v3086_v39, %v3034_v44 }
0x1067   :  { %v2975_v45 = vpop.f32.mrb[114].mxu1  ;;  %v3037_v26 = vpop.f32.mrb[118].mxu0  ;;  %v3077_v22 = vadd.f32 %v8264_v14, %v2973_v43 }
0x1068   :  { %v3062_v52 = vadd.f32 %v3060_v31, %v2975_v45  ;;  %v3088_v34 = vadd.f32 %v3086_v39, %v3037_v26  ;;  %v2977_v12 = vpop.f32.mrb[115].mxu1  ;;  %v6297_v16 = vpop.f32.mrb[119].mxu0  ;;  %v3067_v32 = vmul.f32 0.17677669, %v3061_v30 }
0x1069   :  { %v3078_v54 = vadd.f32 %v8264_v14, %v2977_v12 }
0x106a   :  { %v3068_v62 = vmul.f32 0.17677669, %v3062_v52  ;;  %v8268_v20 = vpack.c.bf16 %v3088_v34, %v3087_v29 }
0x106b   :  { %v8270_v47 = vpack.c.bf16 %v3078_v54, %v3077_v22 }
0x106c   :  { %v8272_v63 = vpack.c.bf16 %v3068_v62, %v3067_v32  ;;  %6325 = vmatpush3.bf16.msra.mxu0 %v8268_v20 }
0x106d   :  { %3332 = vrot.lane.b32.xlu0 %v8270_v47, %s7036_s29  ;;  %v2981_v15 = vpop.f32.mrb[116].mxu1  ;;  %v3042_v41 = vpop.f32.mrb[120].mxu0  ;;  %v3109_v27 = vsel %vm553_vm2, %v8270_v47, 0  ;;  %6326 = vmatprep.subr.bf16.mxu0 %v7033_v1 }
0x106e   :  { %v3063_v6 = vadd.f32 %v3060_v31, %v2981_v15  ;;  %v2983_v36 = vpop.f32.mrb[117].mxu1  ;;  %v6300_v2 = vpop.f32.mrb[121].mxu0  ;;  %6307 = vmatpush3.bf16.xpose.msra.mxu1 %v3109_v27  ;;  %v3089_v10 = vadd.f32 %v3086_v39, %v3042_v41 }
0x106f   :  { %v2985_v40 = vpop.f32.mrb[118].mxu1  ;;  %v3045_v0 = vpop.f32.mrb[122].mxu0  ;;  %6308 = vmatprep.subr.bf16.mxu1 %v7033_v1  ;;  %v3079_v18 = vadd.f32 %v8264_v14, %v2983_v36 }
0x1070   :  { %v3064_v53 = vadd.f32 %v3060_v31, %v2985_v40  ;;  %v3090_v21 = vadd.f32 %v3086_v39, %v3045_v0  ;;  %v2987_v33 = vpop.f32.mrb[119].mxu1  ;;  %v6301_v49 = vpop.f32.mrb[123].mxu0  ;;  %v3069_v51 = vmul.f32 0.17677669, %v3063_v6 }
0x1071   :  { %v3080_v23 = vadd.f32 %v8264_v14, %v2987_v33  ;;  %3323 = vrot.lane.b32.xlu0 %v8272_v63, %s7036_s29 }
0x1072   :  { %v3070_v59 = vmul.f32 0.17677669, %v3064_v53  ;;  %v8285_v37 = vpack.c.bf16 %v3090_v21, %v3089_v10 }
0x1073   :  { %v8287_v13 = vpack.c.bf16 %v3080_v23, %v3079_v18 }
0x1074   :  { %v8289_v19 = vpack.c.bf16 %v3070_v59, %v3069_v51  ;;  %6327 = vmatpush3.bf16.msra.mxu0 %v8285_v37 }
0x1075   :  { %3334 = vrot.lane.b32.xlu1 %v8287_v13, %s7036_s29  ;;  %v2991_v11 = vpop.f32.mrb[120].mxu1  ;;  %v3050_v60 = vpop.f32.mrb[124].mxu0  ;;  %v3112_v50 = vsel %vm553_vm2, %v8287_v13, 0  ;;  %6328 = vmatprep.subr.bf16.mxu0 %v7033_v1 }
0x1076   :  { %v3065_v48 = vadd.f32 %v3060_v31, %v2991_v11  ;;  %v2993_v44 = vpop.f32.mrb[121].mxu1  ;;  %v6304_v30 = vpop.f32.mrb[125].mxu0  ;;  %6309 = vmatpush3.bf16.xpose.msra.mxu1 %v3112_v50  ;;  %v3091_v45 = vadd.f32 %v3086_v39, %v3050_v60 }
0x1077   :  { %v2995_v43 = vpop.f32.mrb[122].mxu1  ;;  %v3053_v42 = vpop.f32.mrb[126].mxu0  ;;  %6310 = vmatprep.subr.bf16.mxu1 %v7033_v1  ;;  %v3081_v12 = vadd.f32 %v8264_v14, %v2993_v44 }
0x1078   :  { %v3066_v26 = vadd.f32 %v3060_v31, %v2995_v43  ;;  %v3092_v29 = vadd.f32 %v3086_v39, %v3053_v42  ;;  %v2997_v52 = vpop.f32.mrb[123].mxu1  ;;  %v6305_v34 = vpop.f32.mrb[127].mxu0  ;;  %v3071_v22 = vmul.f32 0.17677669, %v3065_v48 }
0x1079   :  { %v3082_v16 = vadd.f32 %v8264_v14, %v2997_v52 }
0x107a   :  { %v3072_v54 = vmul.f32 0.17677669, %v3066_v26  ;;  %v8300_v32 = vpack.c.bf16 %v3092_v29, %v3091_v45 }
0x107b   :  { %v8302_v62 = vpack.c.bf16 %v3082_v16, %v3081_v12 }
0x107c   :  { %v8304_v15 = vpack.c.bf16 %v3072_v54, %v3071_v22  ;;  %6329 = vmatpush3.bf16.msra.mxu0 %v8300_v32 }
0x107d   :  { %3336 = vrot.lane.b32.xlu1 %v8302_v62, %s7036_s29  ;;  %v3115_v31 = vsel %vm553_vm2, %v8302_v62, 0  ;;  %6360 = vmatprep.subr.bf16.mxu0 %v7033_v1 }
0x107e   :  { %3327 = vrot.lane.b32.xlu0 %v8304_v15, %s7036_s29  ;;  %6311 = vmatpush3.bf16.xpose.msra.mxu1 %v3115_v31 }
0x107f   :  { %6342 = vmatprep.subr.bf16.mxu1 %v7033_v1 }
0x1081   :  { %3325 = vrot.lane.b32.xlu1 %v8289_v19, %s7036_s29 }
0x1085   :  { %6313 = vmatmul.mubr.msk.bf16.vlgmr.msra.gmra.mrb[124].mxu1 %vm553_vm2, %v8272_v63 }
0x1086   :  { %6316 = vmatprep.mubr.msk.bf16.mxu1 %vm7034_vm0, %v7033_v1 }
0x108d   :  { %6317 = vmatmul.mubr.msk.bf16.gmra.mrb[128].mxu1 %vm553_vm2, %v8289_v19 }
0x108e   :  { %6320 = vmatprep.mubr.msk.bf16.mxu1 %vm7034_vm0, %v7033_v1 }
0x1095   :  { %6321 = vmatmul.mubr.msk.bf16.gmra.mrb[132].mxu1 %vm553_vm2, %v8304_v15 }
0x1096   :  { %6348 = vmatprep.mubr.msk.bf16.mxu1 %vm7034_vm0, %v7033_v1 }
0x10df   :  { %v3333_v39 = vpop.permute.xlu0 %3332 }
0x10e0   :  { %v3348_v14 = vsel %vm553_vm2, %v3333_v39, 0 }
0x10e1   :  { %6343 = vmatpush3.bf16.xpose.msra.mxu1 %v3348_v14 }
0x10e2   :  { %6344 = vmatprep.subr.bf16.mxu1 %v7033_v1 }
0x10e3   :  { %v3324_v2 = vpop.permute.xlu0 %3323 }
0x10e7   :  { %v3335_v41 = vpop.permute.xlu1 %3334 }
0x10e8   :  { %v3351_v27 = vsel %vm553_vm2, %v3335_v41, 0 }
0x10e9   :  { %6345 = vmatpush3.bf16.xpose.msra.mxu1 %v3351_v27 }
0x10ea   :  { %6346 = vmatprep.subr.bf16.mxu1 %v7033_v1 }
0x10ef   :  { %v3337_v6 = vpop.permute.xlu1 %3336 }
0x10f0   :  { %v3354_v36 = vsel %vm553_vm2, %v3337_v6, 0  ;;  %v3328_v0 = vpop.permute.xlu0 %3327 }
0x10f1   :  { %6347 = vmatpush3.bf16.xpose.msra.mxu1 %v3354_v36 }
0x10f2   :  { %6378 = vmatprep.subr.bf16.mxu1 %v7033_v1 }
0x10f3   :  { %v3326_v40 = vpop.permute.xlu1 %3325 }
0x10f8   :  { %6349 = vmatmul.mubr.msk.bf16.vlgmr.msra.gmra.mrb[136].mxu1 %vm553_vm2, %v3324_v2 }
0x10f9   :  { %6352 = vmatprep.mubr.msk.bf16.mxu1 %vm7034_vm0, %v7033_v1 }
0x1100   :  { %6353 = vmatmul.mubr.msk.bf16.gmra.mrb[140].mxu1 %vm553_vm2, %v3326_v40 }
0x1101   :  { %6356 = vmatprep.mubr.msk.bf16.mxu1 %vm7034_vm0, %v7033_v1 }
0x1108   :  { %6357 = vmatmul.mubr.msk.bf16.gmra.mrb[144].mxu1 %vm553_vm2, %v3328_v0 }
0x1109   :  { %6382 = vmatprep.mubr.msk.bf16.mxu1 %vm7034_vm0, %v7033_v1 }
0x1158   :  { %v3151_v10 = vpop.f32.mrb[124].mxu1 }
0x1159   :  { %v3152_v53 = vadd.f32 %v3151_v10, %v7385_v35  ;;  %v6314_v21 = vpop.f32.mrb[125].mxu1 }
0x115a   :  { %v3154_v33 = vpop.f32.mrb[126].mxu1 }
0x115b   :  { %v3155_v49 = vadd.f32 %v3154_v33, %v7385_v35  ;;  %v6315_v18 = vpop.f32.mrb[127].mxu1  ;;  %v3174_v23 = vsel %vm629_vm4, %v3152_v53, -inf }
0x115c   :  { %3175 = vmax.xlane.f32.xlu1 %v3174_v23 }
0x115d   :  { %v3177_v51 = vsel %vm629_vm4, %v3155_v49, -inf }
0x115e   :  { %3178 = vmax.xlane.f32.xlu0 %v3177_v51 }
0x1160   :  { %v3159_v59 = vpop.f32.mrb[128].mxu1 }
0x1161   :  { %v3160_v11 = vadd.f32 %v3159_v59, %v7385_v35  ;;  %v6318_v60 = vpop.f32.mrb[129].mxu1 }
0x1162   :  { %v3162_v50 = vpop.f32.mrb[130].mxu1 }
0x1163   :  { %v3163_v48 = vadd.f32 %v3162_v50, %v7394_v46  ;;  %v6319_v44 = vpop.f32.mrb[131].mxu1  ;;  %v3180_v30 = vsel %vm629_vm4, %v3160_v11, -inf }
0x1164   :  { %3181 = vmax.xlane.f32.xlu0 %v3180_v30 }
0x1165   :  { %v3183_v43 = vsel %vm629_vm4, %v3163_v48, -inf }
0x1166   :  { %3184 = vmax.xlane.f32.xlu1 %v3183_v43 }
0x1168   :  { %v3167_v42 = vpop.f32.mrb[132].mxu1 }
0x1169   :  { %v8353_v45 = vadd.f32 %v3167_v42, %v7394_v46  ;;  %v6322_v26 = vpop.f32.mrb[133].mxu1 }
0x116a   :  { %v3170_v29 = vpop.f32.mrb[134].mxu1 }
0x116b   :  { %v8356_v52 = vadd.f32 %v3170_v29, %v7394_v46  ;;  %v6323_v34 = vpop.f32.mrb[135].mxu1  ;;  %v3186_v12 = vsel %vm629_vm4, %v8353_v45, -inf }
0x116c   :  { %3187 = vmax.xlane.f32.xlu0 %v3186_v12 }
0x116d   :  { %v3189_v16 = vsel %vm629_vm4, %v8356_v52, -inf }
0x116e   :  { %3190 = vmax.xlane.f32.xlu1 %v3189_v16 }
0x11cb   :  { %v3390_v22 = vpop.f32.mrb[136].mxu1 }
0x11cc   :  { %v8363_v54 = vadd.f32 %v3390_v22, %v7385_v35  ;;  %v6350_v31 = vpop.f32.mrb[137].mxu1 }
0x11cd   :  { %v3393_v39 = vpop.f32.mrb[138].mxu1 }
0x11ce   :  { %v8366_v14 = vadd.f32 %v3393_v39, %v7385_v35  ;;  %v6351_v41 = vpop.f32.mrb[139].mxu1  ;;  %v3413_v27 = vsel %vm629_vm4, %v8363_v54, -inf }
0x11cf   :  { %3414 = vmax.xlane.f32.xlu0 %v3413_v27 }
0x11d0   :  { %v3416_v6 = vsel %vm629_vm4, %v8366_v14, -inf }
0x11d1   :  { %3417 = vmax.xlane.f32.xlu1 %v3416_v6 }
0x11d3   :  { %v3398_v36 = vpop.f32.mrb[140].mxu1 }
0x11d4   :  { %v8373_v2 = vadd.f32 %v3398_v36, %v7385_v35  ;;  %v6354_v40 = vpop.f32.mrb[141].mxu1 }
0x11d5   :  { %v3401_v0 = vpop.f32.mrb[142].mxu1 }
0x11d6   :  { %v8376_v10 = vadd.f32 %v3401_v0, %v7394_v46  ;;  %v6355_v21 = vpop.f32.mrb[143].mxu1  ;;  %v3419_v33 = vsel %vm629_vm4, %v8373_v2, -inf }
0x11d7   :  { %3420 = vmax.xlane.f32.xlu0 %v3419_v33 }
0x11d8   :  { %v3422_v18 = vsel %vm629_vm4, %v8376_v10, -inf }
0x11d9   :  { %3423 = vmax.xlane.f32.xlu1 %v3422_v18 }
0x11db   :  { %v3406_v23 = vpop.f32.mrb[144].mxu1 }
0x11dc   :  { %v8383_v51 = vadd.f32 %v3406_v23, %v7394_v46  ;;  %v6358_v59 = vpop.f32.mrb[145].mxu1 }
0x11dd   :  { %v3409_v60 = vpop.f32.mrb[146].mxu1 }
0x11de   :  { %v8386_v50 = vadd.f32 %v3409_v60, %v7394_v46  ;;  %v6359_v44 = vpop.f32.mrb[147].mxu1  ;;  %v3425_v30 = vsel %vm629_vm4, %v8383_v51, -inf }
0x11df   :  { %3426 = vmax.xlane.f32.xlu0 %v3425_v30 }
0x11e0   :  { %v3428_v43 = vsel %vm629_vm4, %v8386_v50, -inf }
0x11e1   :  { %3429 = vmax.xlane.f32.xlu1 %v3428_v43 }
0x11e9   :  { %v3176_v42 = vpop.xlane.xlu1 %3175 }
0x11ea   :  { %v3192_v26 = vsub.f32 %v3152_v53, %v3176_v42 }
0x11eb   :  { %v3179_v29 = vpop.xlane.xlu0 %3178 }
0x11ec   :  { %v3198_v34 = vmul.f32 1.442695, %v3192_v26  ;;  %v3193_v12 = vsub.f32 %v3155_v49, %v3179_v29 }
0x11ee   :  { %6892 = vpow2.f32 %v3198_v34  ;;  %v3200_v16 = vmul.f32 1.442695, %v3193_v12 }
0x11f0   :  { %6894 = vpow2.f32 %v3200_v16 }
0x11f1   :  { %v3182_v22 = vpop.xlane.xlu0 %3181 }
0x11f2   :  { %v3194_v31 = vsub.f32 %v3160_v11, %v3182_v22 }
0x11f3   :  { %v3185_v39 = vpop.xlane.xlu1 %3184 }
0x11f4   :  { %v3202_v41 = vmul.f32 1.442695, %v3194_v31  ;;  %v3195_v27 = vsub.f32 %v3163_v48, %v3185_v39 }
0x11f6   :  { %6896 = vpow2.f32 %v3202_v41  ;;  %v3204_v6 = vmul.f32 1.442695, %v3195_v27 }
0x11f8   :  { %v8392_v36 = vpop.eup %6892  ;;  %6898 = vpow2.f32 %v3204_v6 }
0x11f9   :  { %v3188_v40 = vpop.xlane.xlu0 %3187  ;;  %v3210_v53 = vsel %vm629_vm4, %v8392_v36, 0.0 }
0x11fa   :  { %v8396_v0 = vpop.eup %6894  ;;  %v3196_v49 = vsub.f32 %v8353_v45, %v3188_v40  ;;  %3211 = vadd.xlane.f32.xlu0 %v3210_v53 }
0x11fb   :  { %v3191_v21 = vpop.xlane.xlu1 %3190  ;;  %v3213_v11 = vsel %vm629_vm4, %v8396_v0, 0.0 }
0x11fc   :  { %v3206_v33 = vmul.f32 1.442695, %v3196_v49  ;;  %v3197_v48 = vsub.f32 %v8356_v52, %v3191_v21  ;;  %3214 = vadd.xlane.f32.xlu1 %v3213_v11 }
0x11fe   :  { %6900 = vpow2.f32 %v3206_v33  ;;  %v3208_v18 = vmul.f32 1.442695, %v3197_v48 }
0x1200   :  { %v8402_v23 = vpop.eup %6896  ;;  %6902 = vpow2.f32 %v3208_v18 }
0x1201   :  { %v3216_v59 = vsel %vm629_vm4, %v8402_v23, 0.0 }
0x1202   :  { %v8406_v60 = vpop.eup %6898  ;;  %3217 = vadd.xlane.f32.xlu0 %v3216_v59 }
0x1203   :  { %v3219_v45 = vsel %vm629_vm4, %v8406_v60, 0.0 }
0x1204   :  { %3220 = vadd.xlane.f32.xlu1 %v3219_v45 }
0x1208   :  { %v8410_v44 = vpop.eup %6900 }
0x1209   :  { %v3222_v52 = vsel %vm629_vm4, %v8410_v44, 0.0 }
0x120a   :  { %v8414_v30 = vpop.eup %6902  ;;  %3223 = vadd.xlane.f32.xlu0 %v3222_v52 }
0x120b   :  { %v3225_v43 = vsel %vm629_vm4, %v8414_v30, 0.0 }
0x120c   :  { %3226 = vadd.xlane.f32.xlu1 %v3225_v43 }
0x125c   :  { %v3415_v42 = vpop.xlane.xlu0 %3414 }
0x125d   :  { %v3431_v26 = vsub.f32 %v8363_v54, %v3415_v42 }
0x125e   :  { %v3418_v29 = vpop.xlane.xlu1 %3417 }
0x125f   :  { %v3437_v34 = vmul.f32 1.442695, %v3431_v26  ;;  %v3432_v12 = vsub.f32 %v8366_v14, %v3418_v29 }
0x1261   :  { %6904 = vpow2.f32 %v3437_v34  ;;  %v3439_v16 = vmul.f32 1.442695, %v3432_v12 }
0x1263   :  { %6906 = vpow2.f32 %v3439_v16 }
0x1264   :  { %v3421_v22 = vpop.xlane.xlu0 %3420 }
0x1265   :  { %v3433_v31 = vsub.f32 %v8373_v2, %v3421_v22 }
0x1266   :  { %v3424_v39 = vpop.xlane.xlu1 %3423 }
0x1267   :  { %v3441_v41 = vmul.f32 1.442695, %v3433_v31  ;;  %v3434_v27 = vsub.f32 %v8376_v10, %v3424_v39 }
0x1269   :  { %6908 = vpow2.f32 %v3441_v41  ;;  %v3443_v6 = vmul.f32 1.442695, %v3434_v27 }
0x126b   :  { %v8422_v40 = vpop.eup %6904  ;;  %6910 = vpow2.f32 %v3443_v6 }
0x126c   :  { %v3427_v54 = vpop.xlane.xlu0 %3426  ;;  %v3449_v53 = vsel %vm629_vm4, %v8422_v40, 0.0 }
0x126d   :  { %v8426_v14 = vpop.eup %6906  ;;  %v3435_v49 = vsub.f32 %v8383_v51, %v3427_v54  ;;  %3450 = vadd.xlane.f32.xlu0 %v3449_v53 }
0x126e   :  { %v3452_v2 = vsel %vm629_vm4, %v8426_v14, 0.0  ;;  %v3430_v59 = vpop.xlane.xlu1 %3429 }
0x126f   :  { %v3445_v21 = vmul.f32 1.442695, %v3435_v49  ;;  %3453 = vadd.xlane.f32.xlu1 %v3452_v2  ;;  %v3436_v16 = vsub.f32 %v8386_v50, %v3430_v59 }
0x1271   :  { %6912 = vpow2.f32 %v3445_v21  ;;  %v3447_v27 = vmul.f32 1.442695, %v3436_v16 }
0x1273   :  { %v8431_v10 = vpop.eup %6908 }
0x1274   :  { %v3455_v11 = vsel %vm629_vm4, %v8431_v10, 0.0 }
0x1275   :  { %v8435_v33 = vpop.eup %6910  ;;  %3456 = vadd.xlane.f32.xlu0 %v3455_v11  ;;  %v6687_v11 = vld [vmem:[%s9060_s4 + $0x58] sm:$0xff]  }
0x1276   :  { %v3458_v48 = vsel %vm629_vm4, %v8435_v33, 0.0 }
0x1277   :  { %3459 = vadd.xlane.f32.xlu1 %v3458_v48 }
0x127b   :  { %v8439_v51 = vpop.eup %6912 }
0x127c   :  { %v3461_v18 = vsel %vm629_vm4, %v8439_v51, 0.0 }
0x127d   :  { %3462 = vadd.xlane.f32.xlu0 %v3461_v18 }
0x1287   :  { %v3212_v45 = vpop.xlane.xlu0 %3211 }
0x1288   :  { %6914 = vrcp.f32 %v3212_v45  ;;  %3487 = vrot.lane.b32.xlu1 %v8285_v37, %s7036_s29 }
0x1289   :  { %v3215_v52 = vpop.xlane.xlu1 %3214 }
0x128a   :  { %6916 = vrcp.f32 %v3215_v52 }
0x128f   :  { %v3218_v43 = vpop.xlane.xlu0 %3217 }
0x1290   :  { %6918 = vrcp.f32 %v3218_v43 }
0x1291   :  { %v3221_v42 = vpop.xlane.xlu1 %3220 }
0x1292   :  { %v6915_v26 = vpop.eup %6914  ;;  %6920 = vrcp.f32 %v3221_v42 }
0x1293   :  { %3485 = vrot.lane.b32.xlu0 %v8268_v20, %s7036_s29  ;;  %v3229_v34 = vmul.f32 %v6915_v26, %v8392_v36 }
0x1294   :  { %v6917_v29 = vpop.eup %6916 }
0x1295   :  { %v3231_v12 = vmul.f32 %v6917_v29, %v8396_v0 }
0x1297   :  { %v3240_v22 = vpack.c.bf16 %v3231_v12, %v3229_v34  ;;  %3729 = vrot.lane.b32.xlu0 %v8270_v47, %s7038_s30  ;;  %v3224_v31 = vpop.xlane.xlu0 %3223 }
0x1298   :  { %6922 = vrcp.f32 %v3224_v31 }
0x1299   :  { %v3227_v39 = vpop.xlane.xlu1 %3226  ;;  %6331 = vmatmul.mubr.msk.bf16.vlgmr.msra.gmra.mrb[128].mxu0 %vm629_vm4, %v3240_v22  ;;  %v6684_v22 = vld [vmem:[%s9060_s4 + $0x40] sm:$0xff]  }
0x129a   :  { %v6919_v41 = vpop.eup %6918  ;;  %6924 = vrcp.f32 %v3227_v39  ;;  %6334 = vmatprep.mubr.msk.bf16.mxu0 %vm7034_vm0, %v7033_v1 }
0x129b   :  { %3733 = vrot.lane.b32.xlu0 %v8302_v62, %s7038_s30  ;;  %v3233_v50 = vmul.f32 %v6919_v41, %v8402_v23  ;;  %6926 = vpow2.f32 %v3447_v27 }
0x129c   :  { %v6921_v36 = vpop.eup %6920 }
0x129d   :  { %v3235_v0 = vmul.f32 %v6921_v36, %v8406_v60 }
0x129f   :  { %3725 = vrot.lane.b32.xlu0 %v8289_v19, %s7038_s30  ;;  %v3241_v6 = vpack.c.bf16 %v3235_v0, %v3233_v50 }
0x12a1   :  { %6335 = vmatmul.mubr.msk.bf16.gmra.mrb[132].mxu0 %vm629_vm4, %v3241_v6 }
0x12a2   :  { %v6923_v54 = vpop.eup %6922  ;;  %6338 = vmatprep.mubr.msk.bf16.mxu0 %vm7034_vm0, %v7033_v1 }
0x12a3   :  { %v3237_v49 = vmul.f32 %v6923_v54, %v8410_v44  ;;  %v6686_v44 = vld [vmem:[%s9060_s4 + $0x50] sm:$0xff]  }
0x12a4   :  { %v6925_v53 = vpop.eup %6924  ;;  %6379 = vmatpush3.bf16.msra.mxu1 %v6686_v44 }
0x12a5   :  { %v3239_v2 = vmul.f32 %v6925_v53, %v8414_v30  ;;  %v6927_v23 = vpop.eup %6926  ;;  %6380 = vmatprep.subr.bf16.mxu1 %v7033_v1 }
0x12a6   :  { %v3464_v60 = vsel %vm629_vm4, %v6927_v23, 0.0 }
0x12a7   :  { %v3242_v21 = vpack.c.bf16 %v3239_v2, %v3237_v49 }
0x12a8   :  { %6381 = vmatpush3.bf16.msra.mxu1 %v6687_v11 }
0x12a9   :  { %6339 = vmatmul.mubr.msk.bf16.gmra.mrb[136].mxu0 %vm629_vm4, %v3242_v21  ;;  %6410 = vmatprep.subr.bf16.mxu1 %v7033_v1 }
0x12aa   :  { %6366 = vmatprep.mubr.msk.bf16.mxu0 %vm7034_vm0, %v7033_v1 }
0x12ac   :  { %3465 = vadd.xlane.f32.xlu1 %v3464_v60 }
0x12bd   :  { %3489 = vrot.lane.b32.xlu1 %v8300_v32, %s7036_s29 }
0x12c1   :  { %3731 = vrot.lane.b32.xlu1 %v8287_v13, %s7038_s30 }
0x12c5   :  { %3723 = vrot.lane.b32.xlu1 %v8272_v63, %s7038_s30 }
0x12c9   :  { %3727 = vrot.lane.b32.xlu1 %v8304_v15, %s7038_s30 }
0x12fa   :  { %v3451_v30 = vpop.xlane.xlu0 %3450 }
0x12fc   :  { %v3454_v18 = vpop.xlane.xlu1 %3453 }
0x12fd   :  { %6928 = vrcp.f32 %v3454_v18 }
0x12fe   :  { %6930 = vrcp.f32 %v3451_v30 }
0x1302   :  { %v3457_v48 = vpop.xlane.xlu0 %3456 }
0x1304   :  { %v3460_v45 = vpop.xlane.xlu1 %3459 }
0x1305   :  { %6932 = vrcp.f32 %v3460_v45 }
0x1306   :  { %6934 = vrcp.f32 %v3457_v48 }
0x1307   :  { %v6929_v42 = vpop.eup %6928 }
0x1308   :  { %v3488_v43 = vpop.permute.xlu1 %3487  ;;  %v6931_v29 = vpop.eup %6930  ;;  %v3470_v34 = vmul.f32 %v6929_v42, %v8426_v14 }
0x1309   :  { %v3468_v12 = vmul.f32 %v6931_v29, %v8422_v40  ;;  %v6685_v40 = vld [vmem:[%s9060_s4 + $0x48] sm:$0xff]  }
0x130a   :  { %v3463_v59 = vpop.xlane.xlu0 %3462 }
0x130b   :  { %v3479_v31 = vpack.c.bf16 %v3470_v34, %v3468_v12 }
0x130e   :  { %v3486_v52 = vpop.permute.xlu0 %3485 }
0x130f   :  { %6361 = vmatpush3.bf16.msra.mxu0 %v3486_v52  ;;  %v6933_v39 = vpop.eup %6932 }
0x1310   :  { %6362 = vmatprep.subr.bf16.mxu0 %v7033_v1  ;;  %v6935_v41 = vpop.eup %6934  ;;  %v3474_v14 = vmul.f32 %v6933_v39, %v8435_v33 }
0x1311   :  { %v3472_v27 = vmul.f32 %v6935_v41, %v8431_v10 }
0x1312   :  { %v3730_v42 = vpop.permute.xlu0 %3729 }
0x1313   :  { %6363 = vmatpush3.bf16.msra.mxu0 %v3488_v43  ;;  %v3480_v36 = vpack.c.bf16 %v3474_v14, %v3472_v27  ;;  %v3745_v12 = vsel %vm553_vm2, %v3730_v42, 0 }
0x1314   :  { %6364 = vmatprep.subr.bf16.mxu0 %v7033_v1 }
0x1339   :  { %v3466_v26 = vpop.xlane.xlu1 %3465 }
0x133a   :  { %6936 = vrcp.f32 %v3466_v26 }
0x133b   :  { %6938 = vrcp.f32 %v3463_v59 }
0x133d   :  { %v3490_v16 = vpop.permute.xlu1 %3489 }
0x133e   :  { %6365 = vmatpush3.bf16.msra.mxu0 %v3490_v16 }
0x133f   :  { %6394 = vmatprep.subr.bf16.mxu0 %v7033_v1 }
0x1341   :  { %6367 = vmatmul.mubr.msk.bf16.vlgmr.msra.gmra.mrb[140].mxu0 %vm629_vm4, %v3479_v31  ;;  %v3732_v31 = vpop.permute.xlu1 %3731 }
0x1342   :  { %6370 = vmatprep.mubr.msk.bf16.mxu0 %vm7034_vm0, %v7033_v1  ;;  %6395 = vmatpush3.bf16.msra.mxu0 %v6684_v22  ;;  %v3748_v14 = vsel %vm553_vm2, %v3732_v31, 0 }
0x1343   :  { %6396 = vmatprep.subr.bf16.mxu0 %v7033_v1 }
0x1344   :  { %v6937_v50 = vpop.eup %6936 }
0x1345   :  { %v6939_v0 = vpop.eup %6938  ;;  %v3478_v6 = vmul.f32 %v6937_v50, %v6927_v23  ;;  %v3734_v50 = vpop.permute.xlu0 %3733 }
0x1346   :  { %6397 = vmatpush3.bf16.msra.mxu0 %v6685_v40  ;;  %v3476_v54 = vmul.f32 %v6939_v0, %v8439_v51 }
0x1347   :  { %6428 = vmatprep.subr.bf16.mxu0 %v7033_v1 }
0x1348   :  { %v3481_v53 = vpack.c.bf16 %v3478_v6, %v3476_v54 }
0x1349   :  { %6371 = vmatmul.mubr.msk.bf16.gmra.mrb[144].mxu0 %vm629_vm4, %v3480_v36 }
0x134a   :  { %6374 = vmatprep.mubr.msk.bf16.mxu0 %vm7034_vm0, %v7033_v1 }
0x1351   :  { %6375 = vmatmul.mubr.msk.bf16.gmra.mrb[148].mxu0 %vm629_vm4, %v3481_v53  ;;  %v3751_v53 = vsel %vm553_vm2, %v3734_v50, 0 }
0x1352   :  { %6398 = vmatprep.mubr.msk.bf16.mxu0 %vm7034_vm0, %v7033_v1 }
0x136c   :  { %v3289_v10 = vpop.f32.mrb[128].mxu0 }
0x136d   :  { %v6332_v33 = vpop.f32.mrb[129].mxu0 }
0x136e   :  { %v3292_v49 = vpop.f32.mrb[130].mxu0  ;;  %v3726_v33 = vpop.permute.xlu0 %3725 }
0x136f   :  { %v3312_v2 = vpack.c.bf16 %v3292_v49, %v3289_v10  ;;  %v6333_v21 = vpop.f32.mrb[131].mxu0  ;;  %v3724_v10 = vpop.permute.xlu1 %3723 }
0x1371   :  { %6399 = vmatmul.mubr.msk.bf16.vlgmr.msra.gmra.mrb[152].mxu0 %vm553_vm2, %v3312_v2 }
0x1372   :  { %6402 = vmatprep.mubr.msk.bf16.mxu0 %vm7034_vm0, %v7033_v1 }
0x1373   :  { %v3728_v49 = vpop.permute.xlu1 %3727 }
0x1374   :  { %v3297_v60 = vpop.f32.mrb[132].mxu0 }
0x1375   :  { %v6336_v23 = vpop.f32.mrb[133].mxu0 }
0x1376   :  { %v3300_v44 = vpop.f32.mrb[134].mxu0 }
0x1377   :  { %v3313_v51 = vpack.c.bf16 %v3300_v44, %v3297_v60  ;;  %v6337_v30 = vpop.f32.mrb[135].mxu0 }
0x1379   :  { %6403 = vmatmul.mubr.msk.bf16.gmra.mrb[156].mxu0 %vm553_vm2, %v3313_v51 }
0x137a   :  { %6406 = vmatprep.mubr.msk.bf16.mxu0 %vm7034_vm0, %v7033_v1 }
0x137c   :  { %v3305_v11 = vpop.f32.mrb[136].mxu0 }
0x137d   :  { %v6340_v48 = vpop.f32.mrb[137].mxu0 }
0x137e   :  { %v3308_v18 = vpop.f32.mrb[138].mxu0 }
0x137f   :  { %v3314_v59 = vpack.c.bf16 %v3308_v18, %v3305_v11  ;;  %v6341_v45 = vpop.f32.mrb[139].mxu0 }
0x1381   :  { %6407 = vmatmul.mubr.msk.bf16.gmra.mrb[160].mxu0 %vm553_vm2, %v3314_v59 }
0x1382   :  { %6434 = vmatprep.mubr.msk.bf16.mxu0 %vm7034_vm0, %v7033_v1 }
0x1414   :  { %v3537_v52 = vpop.f32.mrb[140].mxu0 }
0x1415   :  { %v6368_v43 = vpop.f32.mrb[141].mxu0 }
0x1416   :  { %v3540_v26 = vpop.f32.mrb[142].mxu0 }
0x1417   :  { %v3560_v29 = vpack.c.bf16 %v3540_v26, %v3537_v52  ;;  %v6369_v34 = vpop.f32.mrb[143].mxu0 }
0x1419   :  { %6383 = vmatmul.mubr.msk.bf16.vlgmr.msra.gmra.mrb[148].mxu1 %vm553_vm2, %v3560_v29 }
0x141a   :  { %6411 = vmatpush3.bf16.xpose.msra.mxu1 %v3745_v12  ;;  %6386 = vmatprep.mubr.msk.bf16.mxu1 %vm7034_vm0, %v7033_v1 }
0x141b   :  { %6412 = vmatprep.subr.bf16.mxu1 %v7033_v1 }
0x141c   :  { %v3545_v16 = vpop.f32.mrb[144].mxu0 }
0x141d   :  { %v6372_v22 = vpop.f32.mrb[145].mxu0 }
0x141e   :  { %v3548_v39 = vpop.f32.mrb[146].mxu0 }
0x141f   :  { %v3561_v41 = vpack.c.bf16 %v3548_v39, %v3545_v16  ;;  %v6373_v40 = vpop.f32.mrb[147].mxu0 }
0x1421   :  { %6387 = vmatmul.mubr.msk.bf16.gmra.mrb[152].mxu1 %vm553_vm2, %v3561_v41 }
0x1422   :  { %6413 = vmatpush3.bf16.xpose.msra.mxu1 %v3748_v14  ;;  %6390 = vmatprep.mubr.msk.bf16.mxu1 %vm7034_vm0, %v7033_v1 }
0x1423   :  { %6414 = vmatprep.subr.bf16.mxu1 %v7033_v1 }
0x1424   :  { %v3553_v27 = vpop.f32.mrb[148].mxu0 }
0x1425   :  { %v6376_v36 = vpop.f32.mrb[149].mxu0 }
0x1426   :  { %v3556_v0 = vpop.f32.mrb[150].mxu0 }
0x1427   :  { %v3562_v6 = vpack.c.bf16 %v3556_v0, %v3553_v27  ;;  %v6377_v54 = vpop.f32.mrb[151].mxu0 }
0x1429   :  { %6391 = vmatmul.mubr.msk.bf16.gmra.mrb[156].mxu1 %vm553_vm2, %v3562_v6 }
0x142a   :  { %6415 = vmatpush3.bf16.xpose.msra.mxu1 %v3751_v53  ;;  %6416 = vmatprep.mubr.msk.bf16.mxu1 %vm7034_vm0, %v7033_v1 }
0x142b   :  { %6446 = vmatprep.subr.bf16.mxu1 %v7033_v1 }
0x1431   :  { %6417 = vmatmul.mubr.msk.bf16.vlgmr.msra.gmra.mrb[160].mxu1 %vm553_vm2, %v3724_v10 }
0x1432   :  { %6420 = vmatprep.mubr.msk.bf16.mxu1 %vm7034_vm0, %v7033_v1 }
0x1439   :  { %6421 = vmatmul.mubr.msk.bf16.gmra.mrb[164].mxu1 %vm553_vm2, %v3726_v33 }
0x143a   :  { %6424 = vmatprep.mubr.msk.bf16.mxu1 %vm7034_vm0, %v7033_v1 }
0x1441   :  { %6425 = vmatmul.mubr.msk.bf16.gmra.mrb[168].mxu1 %vm553_vm2, %v3728_v49 }
0x1442   :  { %6450 = vmatprep.mubr.msk.bf16.mxu1 %vm7034_vm0, %v7033_v1 }
0x1444   :  { %v3700_v2 = vpop.f32.mrb[152].mxu0 }
0x1445   :  { %v6400_v21 = vpop.f32.mrb[153].mxu0 }
0x1446   :  { %v3703_v60 = vpop.f32.mrb[154].mxu0 }
0x1447   :  { %v6401_v23 = vpop.f32.mrb[155].mxu0 }
0x144c   :  { %v3708_v44 = vpop.f32.mrb[156].mxu0 }
0x144d   :  { %v6404_v51 = vpop.f32.mrb[157].mxu0 }
0x144e   :  { %v3711_v30 = vpop.f32.mrb[158].mxu0 }
0x144f   :  { %v6405_v11 = vpop.f32.mrb[159].mxu0 }
0x1454   :  { %v3716_v48 = vpop.f32.mrb[160].mxu0 }
0x1455   :  { %v6408_v18 = vpop.f32.mrb[161].mxu0 }
0x1456   :  { %v3719_v59 = vpop.f32.mrb[162].mxu0 }
0x1457   :  { %v6409_v45 = vpop.f32.mrb[163].mxu0 }
0x14ec   :  { %v3622_v52 = vpop.f32.mrb[148].mxu1 }
0x14ed   :  { %v8544_v43 = vadd.f32 %v3700_v2, %v3622_v52  ;;  %v6384_v42 = vpop.f32.mrb[149].mxu1 }
0x14ee   :  { %v3625_v26 = vpop.f32.mrb[150].mxu1 }
0x14ef   :  { %v8546_v29 = vadd.f32 %v3703_v60, %v3625_v26  ;;  %v6385_v34 = vpop.f32.mrb[151].mxu1 }
0x14f4   :  { %v3630_v12 = vpop.f32.mrb[152].mxu1 }
0x14f5   :  { %v8548_v16 = vadd.f32 %v3708_v44, %v3630_v12  ;;  %v6388_v22 = vpop.f32.mrb[153].mxu1 }
0x14f6   :  { %v3633_v31 = vpop.f32.mrb[154].mxu1 }
0x14f7   :  { %v8550_v39 = vadd.f32 %v3711_v30, %v3633_v31  ;;  %v6389_v41 = vpop.f32.mrb[155].mxu1 }
0x14fc   :  { %v3638_v40 = vpop.f32.mrb[156].mxu1 }
0x14fd   :  { %v8552_v14 = vadd.f32 %v3716_v48, %v3638_v40  ;;  %v6392_v27 = vpop.f32.mrb[157].mxu1 }
0x14fe   :  { %v3641_v36 = vpop.f32.mrb[158].mxu1 }
0x14ff   :  { %v8554_v50 = vadd.f32 %v3719_v59, %v3641_v36  ;;  %v6393_v0 = vpop.f32.mrb[159].mxu1 }
0x1504   :  { %v3787_v6 = vpop.f32.mrb[160].mxu1 }
0x1505   :  { %v3788_v54 = vadd.f32 %v3787_v6, %v7385_v35  ;;  %v6418_v53 = vpop.f32.mrb[161].mxu1 }
0x1506   :  { %v3790_v10 = vpop.f32.mrb[162].mxu1 }
0x1507   :  { %v3791_v33 = vadd.f32 %v3790_v10, %v7385_v35  ;;  %v6419_v49 = vpop.f32.mrb[163].mxu1  ;;  %v3810_v2 = vsel %vm629_vm4, %v3788_v54, -inf }
0x1508   :  { %3811 = vmax.xlane.f32.xlu0 %v3810_v2 }
0x1509   :  { %v3813_v21 = vsel %vm629_vm4, %v3791_v33, -inf }
0x150a   :  { %3814 = vmax.xlane.f32.xlu1 %v3813_v21 }
0x150c   :  { %v3795_v60 = vpop.f32.mrb[164].mxu1 }
0x150d   :  { %v3796_v23 = vadd.f32 %v3795_v60, %v7385_v35  ;;  %v6422_v44 = vpop.f32.mrb[165].mxu1 }
0x150e   :  { %v3798_v51 = vpop.f32.mrb[166].mxu1 }
0x150f   :  { %v3799_v30 = vadd.f32 %v3798_v51, %v7394_v46  ;;  %v6423_v11 = vpop.f32.mrb[167].mxu1  ;;  %v3816_v48 = vsel %vm629_vm4, %v3796_v23, -inf }
0x1510   :  { %3817 = vmax.xlane.f32.xlu0 %v3816_v48 }
0x1511   :  { %v3819_v18 = vsel %vm629_vm4, %v3799_v30, -inf }
0x1514   :  { %3820 = vmax.xlane.f32.xlu0 %v3819_v18  ;;  %v3803_v59 = vpop.f32.mrb[168].mxu1 }
0x1515   :  { %v3804_v45 = vadd.f32 %v3803_v59, %v7394_v46  ;;  %v6426_v52 = vpop.f32.mrb[169].mxu1 }
0x1516   :  { %v3806_v42 = vpop.f32.mrb[170].mxu1 }
0x1517   :  { %v3807_v26 = vadd.f32 %v3806_v42, %v7394_v46  ;;  %v6427_v34 = vpop.f32.mrb[171].mxu1  ;;  %v3822_v12 = vsel %vm629_vm4, %v3804_v45, -inf }
0x1518   :  { %3823 = vmax.xlane.f32.xlu1 %v3822_v12 }
0x1519   :  { %v3825_v22 = vsel %vm629_vm4, %v3807_v26, -inf }
0x151a   :  { %3826 = vmax.xlane.f32.xlu0 %v3825_v22 }
0x1529   :  { %3879 = vrot.lane.b32.xlu1 %v8268_v20, %s7038_s30 }
0x1595   :  { %v3812_v31 = vpop.xlane.xlu0 %3811 }
0x1596   :  { %v3828_v41 = vsub.f32 %v3788_v54, %v3812_v31 }
0x1597   :  { %v3815_v40 = vpop.xlane.xlu1 %3814 }
0x1598   :  { %v3834_v27 = vmul.f32 1.442695, %v3828_v41  ;;  %v3829_v36 = vsub.f32 %v3791_v33, %v3815_v40 }
0x159a   :  { %6940 = vpow2.f32 %v3834_v27  ;;  %v3836_v0 = vmul.f32 1.442695, %v3829_v36 }
0x159c   :  { %6942 = vpow2.f32 %v3836_v0 }
0x159d   :  { %v3818_v6 = vpop.xlane.xlu0 %3817 }
0x159e   :  { %v3830_v53 = vsub.f32 %v3796_v23, %v3818_v6 }
0x15a0   :  { %v3838_v10 = vmul.f32 1.442695, %v3830_v53 }
0x15a1   :  { %v3821_v49 = vpop.xlane.xlu0 %3820 }
0x15a2   :  { %6944 = vpow2.f32 %v3838_v10  ;;  %v3831_v2 = vsub.f32 %v3799_v30, %v3821_v49 }
0x15a4   :  { %v6941_v21 = vpop.eup %6940  ;;  %v3840_v60 = vmul.f32 1.442695, %v3831_v2 }
0x15a5   :  { %v3824_v44 = vpop.xlane.xlu1 %3823  ;;  %v3846_v51 = vsel %vm629_vm4, %v6941_v21, 0.0 }
0x15a6   :  { %v6943_v11 = vpop.eup %6942  ;;  %6946 = vpow2.f32 %v3840_v60  ;;  %v3832_v54 = vsub.f32 %v3804_v45, %v3824_v44  ;;  %3847 = vadd.xlane.f32.xlu1 %v3846_v51 }
0x15a7   :  { %v3827_v48 = vpop.xlane.xlu0 %3826  ;;  %v3849_v33 = vsel %vm629_vm4, %v6943_v11, 0.0 }
0x15a8   :  { %v3842_v18 = vmul.f32 1.442695, %v3832_v54  ;;  %v3833_v59 = vsub.f32 %v3807_v26, %v3827_v48  ;;  %3850 = vadd.xlane.f32.xlu0 %v3849_v33 }
0x15a9   :  { %v3880_v23 = vpop.permute.xlu1 %3879 }
0x15aa   :  { %6948 = vpow2.f32 %v3842_v18  ;;  %v3844_v52 = vmul.f32 1.442695, %v3833_v59  ;;  %6429 = vmatpush3.bf16.msra.mxu0 %v3880_v23 }
0x15ab   :  { %6430 = vmatprep.subr.bf16.mxu0 %v7033_v1 }
0x15ac   :  { %v6945_v30 = vpop.eup %6944  ;;  %6950 = vpow2.f32 %v3844_v52 }
0x15ad   :  { %v3852_v42 = vsel %vm629_vm4, %v6945_v30, 0.0 }
0x15ae   :  { %3853 = vadd.xlane.f32.xlu1 %v3852_v42 }
0x15b0   :  { %v6947_v34 = vpop.eup %6946 }
0x15b1   :  { %v3855_v45 = vsel %vm629_vm4, %v6947_v34, 0.0 }
0x15b2   :  { %3856 = vadd.xlane.f32.xlu0 %v3855_v45 }
0x15b4   :  { %v6949_v12 = vpop.eup %6948 }
0x15b5   :  { %v3858_v22 = vsel %vm629_vm4, %v6949_v12, 0.0 }
0x15b6   :  { %v6951_v26 = vpop.eup %6950  ;;  %3859 = vadd.xlane.f32.xlu0 %v3858_v22  ;;  %v6689_v22 = vld [vmem:[%s9060_s4 + $0x68] sm:$0xff]  }
0x15b7   :  { %v3861_v31 = vsel %vm629_vm4, %v6951_v26, 0.0 }
0x15ba   :  { %3862 = vadd.xlane.f32.xlu0 %v3861_v31 }
0x15bf   :  { %3883 = vrot.lane.b32.xlu1 %v8300_v32, %s7038_s30 }
0x15c3   :  { %4051 = vrot.lane.b32.xlu1 %v8270_v47, %s7039_s18  ;;  %v6688_v47 = vld [vmem:[%s9060_s4 + $0x60] sm:$0xff]  }
0x15c4   :  { %6447 = vmatpush3.bf16.msra.mxu1 %v6688_v47 }
0x15c5   :  { %6448 = vmatprep.subr.bf16.mxu1 %v7033_v1 }
0x15c7   :  { %4053 = vrot.lane.b32.xlu1 %v8287_v13, %s7039_s18 }
0x15c8   :  { %6449 = vmatpush3.bf16.msra.mxu1 %v6689_v22 }
0x15c9   :  { %6480 = vmatprep.subr.bf16.mxu1 %v7033_v1 }
0x15cb   :  { %4055 = vrot.lane.b32.xlu1 %v8302_v62, %s7039_s18 }
0x15cf   :  { %4047 = vrot.lane.b32.xlu1 %v8289_v19, %s7039_s18 }
0x15d0   :  { %3881 = vrot.lane.b32.xlu0 %v8285_v37, %s7038_s30 }
0x15d4   :  { %4045 = vrot.lane.b32.xlu0 %v8272_v63, %s7039_s18 }
0x15d8   :  { %4049 = vrot.lane.b32.xlu0 %v8304_v15, %s7039_s18 }
0x1633   :  { %v3848_v62 = vpop.xlane.xlu1 %3847 }
0x1635   :  { %v3851_v13 = vpop.xlane.xlu0 %3850 }
0x1636   :  { %6952 = vrcp.f32 %v3851_v13 }
0x1637   :  { %6954 = vrcp.f32 %v3848_v62 }
0x163b   :  { %v3854_v40 = vpop.xlane.xlu1 %3853 }
0x163f   :  { %v3857_v41 = vpop.xlane.xlu0 %3856  ;;  %v3884_v53 = vpop.permute.xlu1 %3883 }
0x1640   :  { %6956 = vrcp.f32 %v3857_v41  ;;  %v6953_v63 = vpop.eup %6952 }
0x1641   :  { %6958 = vrcp.f32 %v3854_v40  ;;  %v6955_v15 = vpop.eup %6954  ;;  %v3867_v0 = vmul.f32 %v6953_v63, %v6943_v11 }
0x1642   :  { %v3865_v6 = vmul.f32 %v6955_v15, %v6941_v21 }
0x1643   :  { %v3860_v19 = vpop.xlane.xlu0 %3859  ;;  %v4052_v60 = vpop.permute.xlu1 %4051 }
0x1644   :  { %v3876_v10 = vpack.c.bf16 %v3867_v0, %v3865_v6  ;;  %v4067_v11 = vsel %vm553_vm2, %v4052_v60, 0 }
0x1647   :  { %v3863_v27 = vpop.xlane.xlu0 %3862  ;;  %v4054_v33 = vpop.permute.xlu1 %4053 }
0x1648   :  { %6960 = vrcp.f32 %v3863_v27  ;;  %v4070_v23 = vsel %vm553_vm2, %v4054_v33, 0 }
0x1649   :  { %6962 = vrcp.f32 %v3860_v19 }
0x164a   :  { %v6957_v49 = vpop.eup %6956 }
0x164b   :  { %v3882_v36 = vpop.permute.xlu0 %3881  ;;  %v6959_v2 = vpop.eup %6958  ;;  %v3871_v44 = vmul.f32 %v6957_v49, %v6947_v34 }
0x164c   :  { %6431 = vmatpush3.bf16.msra.mxu0 %v3882_v36  ;;  %v3869_v51 = vmul.f32 %v6959_v2, %v6945_v30  ;;  %v4056_v30 = vpop.permute.xlu1 %4055 }
0x164d   :  { %6432 = vmatprep.subr.bf16.mxu0 %v7033_v1  ;;  %v4073_v42 = vsel %vm553_vm2, %v4056_v30, 0 }
0x164e   :  { %v3877_v21 = vpack.c.bf16 %v3871_v44, %v3869_v51 }
0x164f   :  { %v4046_v34 = vpop.permute.xlu0 %4045 }
0x1650   :  { %6433 = vmatpush3.bf16.msra.mxu0 %v3884_v53  ;;  %v4048_v45 = vpop.permute.xlu1 %4047 }
0x1651   :  { %6462 = vmatprep.subr.bf16.mxu0 %v7033_v1 }
0x1652   :  { %v6961_v54 = vpop.eup %6960 }
0x1653   :  { %6435 = vmatmul.mubr.msk.bf16.vlgmr.msra.gmra.mrb[164].mxu0 %vm629_vm4, %v3876_v10  ;;  %v6963_v48 = vpop.eup %6962  ;;  %v3875_v18 = vmul.f32 %v6961_v54, %v6951_v26 }
0x1654   :  { %6438 = vmatprep.mubr.msk.bf16.mxu0 %vm7034_vm0, %v7033_v1  ;;  %v3873_v59 = vmul.f32 %v6963_v48, %v6949_v12  ;;  %v4050_v12 = vpop.permute.xlu0 %4049 }
0x1656   :  { %v3878_v52 = vpack.c.bf16 %v3875_v18, %v3873_v59 }
0x1659   :  { %6463 = vmatpush3.bf16.xpose.msra.mxu0 %v4067_v11 }
0x165a   :  { %6464 = vmatprep.subr.bf16.mxu0 %v7033_v1 }
0x165b   :  { %6439 = vmatmul.mubr.msk.bf16.gmra.mrb[168].mxu0 %vm629_vm4, %v3877_v21 }
0x165c   :  { %6442 = vmatprep.mubr.msk.bf16.mxu0 %vm7034_vm0, %v7033_v1 }
0x1661   :  { %6465 = vmatpush3.bf16.xpose.msra.mxu0 %v4070_v23 }
0x1662   :  { %6466 = vmatprep.subr.bf16.mxu0 %v7033_v1 }
0x1663   :  { %6443 = vmatmul.mubr.msk.bf16.gmra.mrb[172].mxu0 %vm629_vm4, %v3878_v52 }
0x1664   :  { %6468 = vmatprep.mubr.msk.bf16.mxu0 %vm7034_vm0, %v7033_v1 }
0x1669   :  { %6467 = vmatpush3.bf16.xpose.msra.mxu0 %v4073_v42 }
0x166a   :  { %6498 = vmatprep.subr.bf16.mxu0 %v7033_v1 }
0x1670   :  { %6469 = vmatmul.mubr.msk.bf16.vlgmr.msra.gmra.mrb[176].mxu0 %vm553_vm2, %v4046_v34 }
0x1671   :  { %6472 = vmatprep.mubr.msk.bf16.mxu0 %vm7034_vm0, %v7033_v1 }
0x1678   :  { %6473 = vmatmul.mubr.msk.bf16.gmra.mrb[180].mxu0 %vm553_vm2, %v4048_v45 }
0x1679   :  { %6476 = vmatprep.mubr.msk.bf16.mxu0 %vm7034_vm0, %v7033_v1 }
0x1680   :  { %6477 = vmatmul.mubr.msk.bf16.gmra.mrb[184].mxu0 %vm553_vm2, %v4050_v12 }
0x1681   :  { %6502 = vmatprep.mubr.msk.bf16.mxu0 %vm7034_vm0, %v7033_v1 }
0x1726   :  { %v3931_v26 = vpop.f32.mrb[164].mxu0 }
0x1727   :  { %v6436_v31 = vpop.f32.mrb[165].mxu0 }
0x1728   :  { %v3934_v47 = vpop.f32.mrb[166].mxu0 }
0x1729   :  { %v3954_v13 = vpack.c.bf16 %v3934_v47, %v3931_v26  ;;  %v6437_v62 = vpop.f32.mrb[167].mxu0 }
0x172b   :  { %6451 = vmatmul.mubr.msk.bf16.vlgmr.msra.gmra.mrb[172].mxu1 %vm553_vm2, %v3954_v13 }
0x172c   :  { %6454 = vmatprep.mubr.msk.bf16.mxu1 %vm7034_vm0, %v7033_v1 }
0x172e   :  { %v3939_v41 = vpop.f32.mrb[168].mxu0 }
0x172f   :  { %v6440_v19 = vpop.f32.mrb[169].mxu0 }
0x1730   :  { %v3942_v40 = vpop.f32.mrb[170].mxu0 }
0x1731   :  { %v3955_v27 = vpack.c.bf16 %v3942_v40, %v3939_v41  ;;  %v6441_v63 = vpop.f32.mrb[171].mxu0 }
0x1733   :  { %6455 = vmatmul.mubr.msk.bf16.gmra.mrb[176].mxu1 %vm553_vm2, %v3955_v27 }
0x1734   :  { %6458 = vmatprep.mubr.msk.bf16.mxu1 %vm7034_vm0, %v7033_v1 }
0x1736   :  { %v3947_v36 = vpop.f32.mrb[172].mxu0 }
0x1737   :  { %v6444_v15 = vpop.f32.mrb[173].mxu0 }
0x1738   :  { %v3950_v0 = vpop.f32.mrb[174].mxu0 }
0x1739   :  { %v3956_v6 = vpack.c.bf16 %v3950_v0, %v3947_v36  ;;  %v6445_v53 = vpop.f32.mrb[175].mxu0 }
0x173b   :  { %6459 = vmatmul.mubr.msk.bf16.gmra.mrb[180].mxu1 %vm553_vm2, %v3956_v6 }
0x173c   :  { %6486 = vmatprep.mubr.msk.bf16.mxu1 %vm7034_vm0, %v7033_v1 }
0x1743   :  { %v4109_v10 = vpop.f32.mrb[176].mxu0 }
0x1744   :  { %v4110_v49 = vadd.f32 %v4109_v10, %v7385_v35  ;;  %v6470_v2 = vpop.f32.mrb[177].mxu0 }
0x1745   :  { %v4112_v60 = vpop.f32.mrb[178].mxu0 }
0x1746   :  { %v4113_v44 = vadd.f32 %v4112_v60, %v7385_v35  ;;  %v6471_v51 = vpop.f32.mrb[179].mxu0  ;;  %v4132_v11 = vsel %vm629_vm4, %v4110_v49, -inf }
0x1747   :  { %4133 = vmax.xlane.f32.xlu1 %v4132_v11 }
0x1748   :  { %v4135_v21 = vsel %vm629_vm4, %v4113_v44, -inf }
0x1749   :  { %4136 = vmax.xlane.f32.xlu0 %v4135_v21 }
0x174b   :  { %v4117_v54 = vpop.f32.mrb[180].mxu0 }
0x174c   :  { %v4118_v48 = vadd.f32 %v4117_v54, %v7385_v35  ;;  %v6474_v33 = vpop.f32.mrb[181].mxu0 }
0x174d   :  { %v4120_v18 = vpop.f32.mrb[182].mxu0 }
0x174e   :  { %v4121_v59 = vadd.f32 %v4120_v18, %v7394_v46  ;;  %v6475_v23 = vpop.f32.mrb[183].mxu0  ;;  %v4138_v52 = vsel %vm629_vm4, %v4118_v48, -inf }
0x174f   :  { %4139 = vmax.xlane.f32.xlu0 %v4138_v52 }
0x1750   :  { %v4141_v30 = vsel %vm629_vm4, %v4121_v59, -inf }
0x1751   :  { %4142 = vmax.xlane.f32.xlu1 %v4141_v30 }
0x1753   :  { %v4125_v42 = vpop.f32.mrb[184].mxu0 }
0x1754   :  { %v6478_v34 = vpop.f32.mrb[185].mxu0 }
0x1755   :  { %v4128_v45 = vpop.f32.mrb[186].mxu0 }
0x1756   :  { %v6479_v12 = vpop.f32.mrb[187].mxu0 }
0x17d4   :  { %v4134_v22 = vpop.xlane.xlu1 %4133 }
0x17d5   :  { %v4150_v26 = vsub.f32 %v4110_v49, %v4134_v22 }
0x17d6   :  { %v4137_v31 = vpop.xlane.xlu0 %4136 }
0x17d7   :  { %v4156_v47 = vmul.f32 1.442695, %v4150_v26  ;;  %v4151_v35 = vsub.f32 %v4113_v44, %v4137_v31 }
0x17d9   :  { %6964 = vpow2.f32 %v4156_v47  ;;  %v4158_v13 = vmul.f32 1.442695, %v4151_v35 }
0x17db   :  { %6966 = vpow2.f32 %v4158_v13 }
0x17dc   :  { %v4140_v62 = vpop.xlane.xlu0 %4139 }
0x17dd   :  { %v4152_v41 = vsub.f32 %v4118_v48, %v4140_v62 }
0x17de   :  { %v4143_v44 = vpop.xlane.xlu1 %4142 }
0x17df   :  { %v4160_v19 = vmul.f32 1.442695, %v4152_v41  ;;  %v4153_v51 = vsub.f32 %v4121_v59, %v4143_v44 }
0x17e1   :  { %6968 = vpow2.f32 %v4160_v19  ;;  %v4162_v33 = vmul.f32 1.442695, %v4153_v51 }
0x17e3   :  { %v6965_v40 = vpop.eup %6964  ;;  %6970 = vpow2.f32 %v4162_v33 }
0x17e4   :  { %v4168_v27 = vsel %vm629_vm4, %v6965_v40, 0.0 }
0x17e5   :  { %v6967_v63 = vpop.eup %6966  ;;  %4169 = vadd.xlane.f32.xlu0 %v4168_v27 }
0x17e6   :  { %v4171_v36 = vsel %vm629_vm4, %v6967_v63, 0.0 }
0x17e7   :  { %4172 = vadd.xlane.f32.xlu1 %v4171_v36 }
0x17eb   :  { %v8646_v15 = vpop.eup %6968 }
0x17ec   :  { %v4174_v0 = vsel %vm629_vm4, %v8646_v15, 0.0 }
0x17ed   :  { %4175 = vadd.xlane.f32.xlu0 %v4174_v0 }
0x17f8   :  { %4203 = vrot.lane.b32.xlu1 %v8285_v37, %s7039_s18 }
0x17fe   :  { %v4016_v6 = vpop.f32.mrb[172].mxu1 }
0x17ff   :  { %v8653_v53 = vadd.f32 %v4016_v6, %v8544_v43  ;;  %v6452_v10 = vpop.f32.mrb[173].mxu1 }
0x1800   :  { %v4019_v49 = vpop.f32.mrb[174].mxu1 }
0x1801   :  { %v8656_v2 = vadd.f32 %v4019_v49, %v8546_v29  ;;  %v6453_v60 = vpop.f32.mrb[175].mxu1 }
0x1803   :  { %4201 = vrot.lane.b32.xlu0 %v8268_v20, %s7039_s18 }
0x1806   :  { %v4024_v11 = vpop.f32.mrb[176].mxu1 }
0x1807   :  { %v8661_v21 = vadd.f32 %v4024_v11, %v8548_v16  ;;  %v6456_v37 = vpop.f32.mrb[177].mxu1  ;;  %v6971_v16 = vpop.eup %6970 }
0x1808   :  { %v4027_v54 = vpop.f32.mrb[178].mxu1  ;;  %v4177_v30 = vsel %vm629_vm4, %v6971_v16, 0.0 }
0x1809   :  { %v8664_v43 = vadd.f32 %v4027_v54, %v8550_v39  ;;  %v6457_v48 = vpop.f32.mrb[179].mxu1  ;;  %v4126_v39 = vadd.f32 %v4125_v42, %v7394_v46  ;;  %v6691_v54 = vld [vmem:[%s9060_s4 + $0x78] sm:$0xff]  }
0x180b   :  { %v4144_v34 = vsel %vm629_vm4, %v4126_v39, -inf }
0x180e   :  { %v4032_v29 = vpop.f32.mrb[180].mxu1 }
0x180f   :  { %v8667_v18 = vadd.f32 %v4032_v29, %v8552_v14  ;;  %v6460_v23 = vpop.f32.mrb[181].mxu1  ;;  %v4129_v14 = vadd.f32 %v4128_v45, %v7394_v46 }
0x1810   :  { %v4035_v52 = vpop.f32.mrb[182].mxu1 }
0x1811   :  { %v8670_v20 = vadd.f32 %v4035_v52, %v8554_v50  ;;  %v6461_v59 = vpop.f32.mrb[183].mxu1  ;;  %v4147_v12 = vsel %vm629_vm4, %v4129_v14, -inf }
0x181c   :  { %4178 = vadd.xlane.f32.xlu1 %v4177_v30 }
0x1822   :  { %4145 = vmax.xlane.f32.xlu0 %v4144_v34 }
0x182d   :  { %4205 = vrot.lane.b32.xlu1 %v8300_v32, %s7039_s18 }
0x1851   :  { %4148 = vmax.xlane.f32.xlu1 %v4147_v12 }
0x1872   :  { %v4170_v50 = vpop.xlane.xlu0 %4169 }
0x1874   :  { %v4173_v26 = vpop.xlane.xlu1 %4172 }
0x1875   :  { %6972 = vrcp.f32 %v4173_v26 }
0x1876   :  { %6974 = vrcp.f32 %v4170_v50 }
0x1878   :  { %v4204_v47 = vpop.permute.xlu1 %4203 }
0x187a   :  { %v4176_v22 = vpop.xlane.xlu0 %4175 }
0x187b   :  { %6976 = vrcp.f32 %v4176_v22 }
0x187e   :  { %v4202_v31 = vpop.permute.xlu0 %4201 }
0x187f   :  { %6481 = vmatpush3.bf16.msra.mxu1 %v4202_v31  ;;  %v6973_v42 = vpop.eup %6972 }
0x1880   :  { %6482 = vmatprep.subr.bf16.mxu1 %v7033_v1  ;;  %v6975_v46 = vpop.eup %6974  ;;  %v4189_v45 = vmul.f32 %v6973_v42, %v6967_v63  ;;  %v8708_v42 = vld [vmem:[%s9063_s7 + $0x10] sm:$0xff] }
0x1881   :  { %v4187_v35 = vmul.f32 %v6975_v46, %v6965_v40 }
0x1883   :  { %6483 = vmatpush3.bf16.msra.mxu1 %v4204_v47  ;;  %v4198_v62 = vpack.c.bf16 %v4189_v45, %v4187_v35 }
0x1884   :  { %6484 = vmatprep.subr.bf16.mxu1 %v7033_v1 }
0x1885   :  { %v6977_v27 = vpop.eup %6976 }
0x1886   :  { %v4191_v6 = vmul.f32 %v6977_v27, %v8646_v15  ;;  %v6690_v15 = vld [vmem:[%s9060_s4 + $0x70] sm:$0xff]  }
0x1887   :  { %6499 = vmatpush3.bf16.msra.mxu0 %v6690_v15  ;;  %v6694_v15 = vld [vmem:[%s9061_s5 + $0x104] ss:$16 sps:$4 sm:$0xff]  }
0x1888   :  { %6500 = vmatprep.subr.bf16.mxu0 %v7033_v1 }
0x188b   :  { %6501 = vmatpush3.bf16.msra.mxu0 %v6691_v54  ;;  %v6703_v54 = vld [vmem:[%s9061_s5 + $0x12c] ss:$16 sps:$4 sm:$0xff]  }
0x18a9   :  { %v4179_v32 = vpop.xlane.xlu1 %4178 }
0x18aa   :  { %6978 = vrcp.f32 %v4179_v32  ;;  %v8712_v32 = vrot.slane %v8708_v42, %v7776_v3 }
0x18ad   :  { %v4206_v13 = vpop.permute.xlu1 %4205 }
0x18ae   :  { %6485 = vmatpush3.bf16.msra.mxu1 %v4206_v13 }
0x18af   :  { %v4146_v41 = vpop.xlane.xlu0 %4145  ;;  %4688 = vmatprep.subr.bf16.mxu1 %v6694_v15 }
0x18b0   :  { %v4154_v19 = vsub.f32 %v4126_v39, %v4146_v41 }
0x18b1   :  { %6487 = vmatmul.mubr.msk.bf16.vlgmr.msra.gmra.mrb[184].mxu1 %vm629_vm4, %v4198_v62 }
0x18b2   :  { %v4164_v36 = vmul.f32 1.442695, %v4154_v19  ;;  %6490 = vmatprep.mubr.msk.bf16.mxu1 %vm7034_vm0, %v7033_v1 }
0x18b4   :  { %v6979_v0 = vpop.eup %6978  ;;  %6980 = vpow2.f32 %v4164_v36 }
0x18b5   :  { %v4193_v10 = vmul.f32 %v6979_v0, %v6971_v16 }
0x18b7   :  { %v4199_v49 = vpack.c.bf16 %v4193_v10, %v4191_v6 }
0x18b9   :  { %6491 = vmatmul.mubr.msk.bf16.gmra.mrb[188].mxu1 %vm629_vm4, %v4199_v49 }
0x18ba   :  { %6494 = vmatprep.mubr.msk.bf16.mxu1 %vm7034_vm0, %v7033_v1 }
0x18be   :  { %v6981_v40 = vpop.eup %6980 }
0x18bf   :  { %v4180_v63 = vsel %vm629_vm4, %v6981_v40, 0.0 }
0x18c0   :  { %4181 = vadd.xlane.f32.xlu0 %v4180_v63 }
0x18de   :  { %v4149_v60 = vpop.xlane.xlu1 %4148 }
0x18df   :  { %v4155_v44 = vsub.f32 %v4129_v14, %v4149_v60 }
0x18e1   :  { %v4166_v51 = vmul.f32 1.442695, %v4155_v44 }
0x18e3   :  { %6982 = vpow2.f32 %v4166_v51 }
0x18ed   :  { %v6983_v11 = vpop.eup %6982 }
0x18ee   :  { %v4183_v37 = vsel %vm629_vm4, %v6983_v11, 0.0 }
0x18ef   :  { %4184 = vadd.xlane.f32.xlu0 %v4183_v37 }
0x194d   :  { %v4182_v48 = vpop.xlane.xlu0 %4181 }
0x194e   :  { %6984 = vrcp.f32 %v4182_v48  ;;  %v6698_v48 = vld [vmem:[%s9061_s5 + $0x120] ss:$16 sps:$4 sm:$0xff]  }
0x1958   :  { %v6985_v23 = vpop.eup %6984 }
0x1959   :  { %v4195_v34 = vmul.f32 %v6985_v23, %v6981_v40 }
0x197c   :  { %v4185_v33 = vpop.xlane.xlu0 %4184 }
0x197d   :  { %6986 = vrcp.f32 %v4185_v33  ;;  %v6701_v33 = vld [vmem:[%s9061_s5 + $0x128] ss:$16 sps:$4 sm:$0xff]  }
0x1984   :  { %v4253_v29 = vpop.f32.mrb[184].mxu1 }
0x1985   :  { %v6488_v52 = vpop.f32.mrb[185].mxu1 }
0x1986   :  { %v4256_v59 = vpop.f32.mrb[186].mxu1 }
0x1987   :  { %v6987_v16 = vpop.eup %6986  ;;  %v4276_v30 = vpack.c.bf16 %v4256_v59, %v4253_v29  ;;  %v6489_v39 = vpop.f32.mrb[187].mxu1 }
0x1988   :  { %v4197_v14 = vmul.f32 %v6987_v16, %v6983_v11 }
0x1989   :  { %6503 = vmatmul.mubr.msk.bf16.vlgmr.msra.gmra.mrb[188].mxu0 %vm553_vm2, %v4276_v30 }
0x198a   :  { %v4200_v12 = vpack.c.bf16 %v4197_v14, %v4195_v34  ;;  %6506 = vmatprep.mubr.msk.bf16.mxu0 %vm7034_vm0, %v7033_v1 }
0x198c   :  { %v4261_v50 = vpop.f32.mrb[188].mxu1  ;;  %6495 = vmatmul.mubr.msk.bf16.gmra.mrb[192].mxu1 %vm629_vm4, %v4200_v12 }
0x198d   :  { %v6492_v22 = vpop.f32.mrb[189].mxu1  ;;  %4720 = vmatprep.mubr.bf16.mxu1 %v7035_v38 }
0x198e   :  { %v4264_v26 = vpop.f32.mrb[190].mxu1 }
0x198f   :  { %v4277_v31 = vpack.c.bf16 %v4264_v26, %v4261_v50  ;;  %v6493_v47 = vpop.f32.mrb[191].mxu1 }
0x1991   :  { %6507 = vmatmul.mubr.msk.bf16.gmra.mrb[192].mxu0 %vm553_vm2, %v4277_v31 }
0x1992   :  { %6510 = vmatprep.mubr.msk.bf16.mxu0 %vm7034_vm0, %v7033_v1 }
0x1a5c   :  { %v4338_v46 = vpop.f32.mrb[188].mxu0 }
0x1a5d   :  { %v4361_v45 = vadd.f32 %v4338_v46, %v8653_v53  ;;  %v6504_v35 = vpop.f32.mrb[189].mxu0 }
0x1a5e   :  { %v4341_v13 = vpop.f32.mrb[190].mxu0  ;;  %v6709_v35 = vld [vmem:[%s9061_s5 + $0x14c] ss:$16 sps:$4 sm:$0xff]  }
0x1a5f   :  { %v4371_v62 = vadd.f32 %v8712_v32, %v4361_v45  ;;  %v4362_v41 = vadd.f32 %v4341_v13, %v8656_v2  ;;  %v4269_v19 = vpop.f32.mrb[192].mxu1  ;;  %v6505_v1 = vpop.f32.mrb[191].mxu0  ;;  %v6706_v45 = vld [vmem:[%s9061_s5 + $0x144] ss:$16 sps:$4 sm:$0xff]   ;;  %v6704_v13 = vld [vmem:[%s9061_s5 + $0x140] ss:$16 sps:$4 sm:$0xff]  }
0x1a60   :  { %v6496_v27 = vpop.f32.mrb[193].mxu1  ;;  %v6710_v1 = vld [vmem:[%s9061_s5 + $0x160] ss:$16 sps:$4 sm:$0xff]  }
0x1a61   :  { %v4372_v36 = vadd.f32 %v8712_v32, %v4362_v41  ;;  %v4272_v0 = vpop.f32.mrb[194].mxu1  ;;  %v4377_v6 = vadd.f32 %v4371_v62, %v8226_v9  ;;  %v6707_v62 = vld [vmem:[%s9061_s5 + $0x148] ss:$16 sps:$4 sm:$0xff]   ;;  %v6712_v41 = vld [vmem:[%s9061_s5 + $0x164] ss:$16 sps:$4 sm:$0xff]  }
0x1a62   :  { %v4278_v10 = vpack.c.bf16 %v4272_v0, %v4269_v19  ;;  %v6497_v49 = vpop.f32.mrb[195].mxu1  ;;  %v6715_v19 = vld [vmem:[%s9061_s5 + $0x16c] ss:$16 sps:$4 sm:$0xff]   ;;  %v6713_v27 = vld [vmem:[%s9061_s5 + $0x168] ss:$16 sps:$4 sm:$0xff]  }
0x1a63   :  { %4383 = vadd.xlane.f32.xlu1 %v4377_v6  ;;  %v4378_v40 = vadd.f32 %v4372_v36, %v8228_v24  ;;  %v6718_v36 = vld [vmem:[%s9061_s5 + $0x184] ss:$16 sps:$4 sm:$0xff]   ;;  %v6721_v0 = vld [vmem:[%s9061_s5 + $0x18c] ss:$16 sps:$4 sm:$0xff]  }
0x1a64   :  { %v4346_v53 = vpop.f32.mrb[192].mxu0  ;;  %6511 = vmatmul.mubr.msk.bf16.gmra.mrb[196].mxu0 %vm553_vm2, %v4278_v10  ;;  %v6719_v10 = vld [vmem:[%s9061_s5 + $0x188] ss:$16 sps:$4 sm:$0xff]   ;;  %v6724_v49 = vld [vmem:[%s9061_s5 + $0x1a4] ss:$16 sps:$4 sm:$0xff]  }
0x1a65   :  { %v4363_v63 = vadd.f32 %v4346_v53, %v8661_v21  ;;  %v6508_v60 = vpop.f32.mrb[193].mxu0  ;;  %4385 = vadd.xlane.f32.xlu0 %v4378_v40  ;;  %4783 = vmatprep.mubr.bf16.mxu0 %v7035_v38  ;;  %v6692_v21 = vld [vmem:[%s9061_s5 + $0x100] ss:$16 sps:$4 sm:$0xff]  }
0x1a66   :  { %v4349_v2 = vpop.f32.mrb[194].mxu0  ;;  %4689 = vmatpush1.bf16.msra.mxu1 %v6692_v21  ;;  %v6722_v53 = vld [vmem:[%s9061_s5 + $0x1a0] ss:$16 sps:$4 sm:$0xff]   ;;  %v6730_v60 = vld [vmem:[%s9061_s5 + $0x1c4] ss:$16 sps:$4 sm:$0xff]  }
0x1a67   :  { %v4373_v44 = vadd.f32 %v8712_v32, %v4363_v63  ;;  %v4364_v51 = vadd.f32 %v4349_v2, %v8664_v43  ;;  %v6509_v9 = vpop.f32.mrb[195].mxu0  ;;  %v6695_v43 = vld [vmem:[%s9061_s5 + $0x108] ss:$16 sps:$4 sm:$0xff]   ;;  %v6733_v2 = vld [vmem:[%s9061_s5 + $0x1cc] ss:$16 sps:$4 sm:$0xff]  }
0x1a68   :  { %v6725_v63 = vld [vmem:[%s9061_s5 + $0x1a8] ss:$16 sps:$4 sm:$0xff]   ;;  %v6734_v9 = vld [vmem:[%s9061_s5 + $0x1e0] ss:$16 sps:$4 sm:$0xff]  }
0x1a69   :  { %v4374_v11 = vadd.f32 %v8712_v32, %v4364_v51  ;;  %v4379_v37 = vadd.f32 %v4373_v44, %v8237_v57  ;;  %v6697_v57 = vld [vmem:[%s9061_s5 + $0x10c] ss:$16 sps:$4 sm:$0xff]   ;;  %v6728_v44 = vld [vmem:[%s9061_s5 + $0x1c0] ss:$16 sps:$4 sm:$0xff]   ;;  %v6731_v51 = vld [vmem:[%s9061_s5 + $0x1c8] ss:$16 sps:$4 sm:$0xff]  }
0x1a6a   :  { %4751 = vmatprep.subr.bf16.mxu0 %v6697_v57 }
0x1a6b   :  { %4387 = vadd.xlane.f32.xlu1 %v4379_v37  ;;  %v4380_v24 = vadd.f32 %v4374_v11, %v8239_v58  ;;  %v6700_v58 = vld [vmem:[%s9061_s5 + $0x124] ss:$16 sps:$4 sm:$0xff]   ;;  %4752 = vmatpush1.bf16.msra.mxu0 %v6695_v43 }
0x1a6c   :  { %4690 = vmatprep.subr.bf16.mxu1 %v6700_v58  ;;  %4753 = vmatprep.subr.bf16.mxu0 %v6703_v54  ;;  %v6736_v11 = vld [vmem:[%s9061_s5 + $0x1e4] ss:$16 sps:$4 sm:$0xff]  }
0x1a6d   :  { %4389 = vadd.xlane.f32.xlu0 %v4380_v24  ;;  %4691 = vmatpush1.bf16.msra.mxu1 %v6698_v48 }
0x1a6e   :  { %4692 = vmatprep.subr.bf16.mxu1 %v6706_v45 }
0x1a6f   :  { %4754 = vmatpush1.bf16.msra.mxu0 %v6701_v33 }
0x1a70   :  { %4755 = vmatprep.subr.bf16.mxu0 %v6709_v35 }
0x1a71   :  { %4693 = vmatpush1.bf16.msra.mxu1 %v6704_v13 }
0x1a72   :  { %4694 = vmatprep.subr.bf16.mxu1 %v6712_v41 }
0x1a73   :  { %4756 = vmatpush1.bf16.msra.mxu0 %v6707_v62  ;;  %v8857_v62 = vrot.slane %v8708_v42, %v1917_v25 }
0x1a74   :  { %4757 = vmatprep.subr.bf16.mxu0 %v6715_v19 }
0x1a75   :  { %4695 = vmatpush1.bf16.msra.mxu1 %v6710_v1 }
0x1a76   :  { %4696 = vmatprep.subr.bf16.mxu1 %v6718_v36 }
0x1a77   :  { %4758 = vmatpush1.bf16.msra.mxu0 %v6713_v27 }
0x1a78   :  { %4759 = vmatprep.subr.bf16.mxu0 %v6721_v0 }
0x1a7b   :  { %4760 = vmatpush1.bf16.msra.mxu0 %v6719_v10 }
0x1af0   :  { %v4384_v29 = vpop.xlane.xlu1 %4383 }
0x1af1   :  { %v4395_v23 = vmul.f32 0.0078125, %v4384_v29 }
0x1af2   :  { %v4386_v52 = vpop.xlane.xlu0 %4385 }
0x1af3   :  { %v8752_v59 = vsub.f32 %v4377_v6, %v4395_v23  ;;  %v4396_v16 = vmul.f32 0.0078125, %v4386_v52  ;;  %v6716_v6 = vld [vmem:[%s9061_s5 + $0x180] ss:$16 sps:$4 sm:$0xff]  }
0x1af4   :  { %4697 = vmatpush1.bf16.msra.mxu1 %v6716_v6 }
0x1af5   :  { %v8754_v30 = vsub.f32 %v4378_v40, %v4396_v16  ;;  %v4407_v39 = vmul.f32 %v8752_v59, %v8752_v59  ;;  %v6727_v40 = vld [vmem:[%s9061_s5 + $0x1ac] ss:$16 sps:$4 sm:$0xff]   ;;  %4698 = vmatprep.subr.bf16.mxu1 %v6724_v49 }
0x1af6   :  { %4761 = vmatprep.subr.bf16.mxu0 %v6727_v40 }
0x1af7   :  { %4413 = vadd.xlane.f32.xlu1 %v4407_v39  ;;  %v4408_v34 = vmul.f32 %v8754_v30, %v8754_v30  ;;  %4762 = vmatpush1.bf16.msra.mxu0 %v6725_v63 }
0x1af8   :  { %v4388_v14 = vpop.xlane.xlu1 %4387  ;;  %4699 = vmatpush1.bf16.msra.mxu1 %v6722_v53  ;;  %4763 = vmatprep.subr.bf16.mxu0 %v6733_v2 }
0x1af9   :  { %v4397_v12 = vmul.f32 0.0078125, %v4388_v14  ;;  %4415 = vadd.xlane.f32.xlu0 %v4408_v34  ;;  %4700 = vmatprep.subr.bf16.mxu1 %v6730_v60 }
0x1afa   :  { %v4390_v50 = vpop.xlane.xlu0 %4389 }
0x1afb   :  { %v8760_v22 = vsub.f32 %v4379_v37, %v4397_v12  ;;  %v4398_v26 = vmul.f32 0.0078125, %v4390_v50  ;;  %4764 = vmatpush1.bf16.msra.mxu0 %v6731_v51  ;;  %v6737_v37 = vld [vmem:[%s9061_s5 + $0x1e8] ss:$16 sps:$4 sm:$0xff]   ;;  %v6741_v51 = vld [vmem:[%s9062_s6 + $0x1c0] sm:$0xff]  }
0x1afc   :  { %4701 = vmatpush1.bf16.msra.mxu1 %v6728_v44 }
0x1afd   :  { %v8762_v31 = vsub.f32 %v4380_v24, %v4398_v26  ;;  %v4409_v47 = vmul.f32 %v8760_v22, %v8760_v22  ;;  %v6739_v24 = vld [vmem:[%s9061_s5 + $0x1ec] ss:$16 sps:$4 sm:$0xff]   ;;  %4702 = vmatprep.subr.bf16.mxu1 %v6736_v11  ;;  %v6743_v11 = vld [vmem:[%s9062_s6 + $0x180] sm:$0xff]  }
0x1afe   :  { %4765 = vmatprep.subr.bf16.mxu0 %v6739_v24  ;;  %v6745_v24 = vld [vmem:[%s9062_s6 + $0x1c8] sm:$0xff]  }
0x1aff   :  { %4417 = vadd.xlane.f32.xlu1 %v4409_v47  ;;  %v4410_v46 = vmul.f32 %v8762_v31, %v8762_v31  ;;  %4766 = vmatpush1.bf16.msra.mxu0 %v6737_v37  ;;  %v6744_v37 = vld [vmem:[%s9062_s6 + $0x148] sm:$0xff]  }
0x1b00   :  { %4703 = vmatpush1.bf16.msra.mxu1 %v6734_v9  ;;  %v6742_v9 = vld [vmem:[%s9062_s6 + $0x100] sm:$0xff]   ;;  %5988 = vmatprep.subr.bf16.mxu0 %v6741_v51 }
0x1b01   :  { %4419 = vadd.xlane.f32.xlu0 %v4410_v46 }
0x1b37   :  { %v4354_v21 = vpop.f32.mrb[196].mxu0 }
0x1b38   :  { %v4365_v15 = vadd.f32 %v4354_v21, %v8667_v18  ;;  %v6512_v43 = vpop.f32.mrb[197].mxu0  ;;  %v6746_v21 = vld [vmem:[%s9062_s6 + $0x108] sm:$0xff]  }
0x1b39   :  { %v4357_v57 = vpop.f32.mrb[198].mxu0  ;;  %v6748_v43 = vld [vmem:[%s9062_s6 + $0x150] sm:$0xff]  }
0x1b3a   :  { %v4375_v58 = vadd.f32 %v8712_v32, %v4365_v15  ;;  %v4366_v54 = vadd.f32 %v4357_v57, %v8670_v20  ;;  %v6513_v48 = vpop.f32.mrb[199].mxu0  ;;  %v6747_v15 = vld [vmem:[%s9062_s6 + $0x188] sm:$0xff]   ;;  %v6749_v57 = vld [vmem:[%s9062_s6 + $0x1d0] sm:$0xff]  }
0x1b3b   :  { %v6752_v48 = vld [vmem:[%s9062_s6 + $0x158] sm:$0xff]  }
0x1b3c   :  { %v4376_v33 = vadd.f32 %v8712_v32, %v4366_v54  ;;  %v4381_v29 = vadd.f32 %v4375_v58, %v8248_v56  ;;  %v8849_v56 = vrot.slane %v8708_v42, %v1907_v17  ;;  %v6750_v58 = vld [vmem:[%s9062_s6 + $0x110] sm:$0xff]  }
0x1b3d   :  { %v6751_v54 = vld [vmem:[%s9062_s6 + $0x190] sm:$0xff]  }
0x1b3e   :  { %4391 = vadd.xlane.f32.xlu1 %v4381_v29  ;;  %v4382_v23 = vadd.f32 %v4376_v33, %v8250_v55  ;;  %v6753_v33 = vld [vmem:[%s9062_s6 + $0x1d8] sm:$0xff]  }
0x1b40   :  { %4393 = vadd.xlane.f32.xlu0 %v4382_v23 }
0x1b84   :  { %v4414_v52 = vpop.xlane.xlu1 %4413 }
0x1b85   :  { %v4425_v16 = vmul.f32 0.0078125, %v4414_v52  ;;  %v6756_v52 = vld [vmem:[%s9062_s6 + $0x160] sm:$0xff]  }
0x1b86   :  { %v4416_v39 = vpop.xlane.xlu0 %4415 }
0x1b87   :  { %v4431_v34 = vadd.f32 1e-05, %v4425_v16  ;;  %v4426_v18 = vmul.f32 0.0078125, %v4416_v39  ;;  %v6757_v16 = vld [vmem:[%s9062_s6 + $0x1e0] sm:$0xff]  }
0x1b88   :  { %v6758_v39 = vld [vmem:[%s9062_s6 + $0x120] sm:$0xff]  }
0x1b89   :  { %6988 = vrsqrt.f32 %v4431_v34  ;;  %v4432_v14 = vadd.f32 1e-05, %v4426_v18  ;;  %v6759_v34 = vld [vmem:[%s9062_s6 + $0x1a0] sm:$0xff]   ;;  %v6760_v18 = vld [vmem:[%s9062_s6 + $0x168] sm:$0xff]  }
0x1b8b   :  { %6990 = vrsqrt.f32 %v4432_v14  ;;  %v6761_v14 = vld [vmem:[%s9062_s6 + $0x1e8] sm:$0xff]  }
0x1b8c   :  { %v4418_v12 = vpop.xlane.xlu1 %4417 }
0x1b8d   :  { %v4427_v50 = vmul.f32 0.0078125, %v4418_v12  ;;  %v6762_v12 = vld [vmem:[%s9062_s6 + $0x128] sm:$0xff]  }
0x1b8e   :  { %v4420_v20 = vpop.xlane.xlu0 %4419 }
0x1b8f   :  { %v4433_v26 = vadd.f32 1e-05, %v4427_v50  ;;  %v4428_v47 = vmul.f32 0.0078125, %v4420_v20  ;;  %v6763_v50 = vld [vmem:[%s9062_s6 + $0x1a8] sm:$0xff]   ;;  %v6764_v20 = vld [vmem:[%s9062_s6 + $0x170] sm:$0xff]  }
0x1b91   :  { %6992 = vrsqrt.f32 %v4433_v26  ;;  %v4434_v32 = vadd.f32 1e-05, %v4428_v47  ;;  %v6765_v26 = vld [vmem:[%s9062_s6 + $0x1f0] sm:$0xff]  }
0x1b92   :  { %v6766_v47 = vld [vmem:[%s9062_s6 + $0x130] sm:$0xff]  }
0x1b93   :  { %v6989_v55 = vpop.eup %6988  ;;  %6994 = vrsqrt.f32 %v4434_v32  ;;  %v6767_v32 = vld [vmem:[%s9062_s6 + $0x1b0] sm:$0xff]  }
0x1b94   :  { %v4443_v46 = vmul.f32 %v6989_v55, %v8752_v59  ;;  %v6768_v55 = vld [vmem:[%s9062_s6 + $0x178] sm:$0xff]  }
0x1b95   :  { %v6991_v45 = vpop.eup %6990 }
0x1b96   :  { %v4453_v35 = vmul.f32 %v8849_v56, %v4443_v46  ;;  %v4444_v13 = vmul.f32 %v6991_v45, %v8754_v30  ;;  %v6769_v46 = vld [vmem:[%s9062_s6 + $0x1f8] sm:$0xff]  }
0x1b97   :  { %v6770_v45 = vld [vmem:[%s9062_s6 + $0x138] sm:$0xff]  }
0x1b98   :  { %v4454_v41 = vmul.f32 %v8849_v56, %v4444_v13  ;;  %v8861_v19 = vadd.f32 %v8857_v62, %v4453_v35  ;;  %v6771_v35 = vld [vmem:[%s9062_s6 + $0x1b8] sm:$0xff]  }
0x1b9a   :  { %v4464_v17 = vadd.f32 %v8857_v62, %v4454_v41 }
0x1b9b   :  { %v6993_v1 = vpop.eup %6992 }
0x1b9c   :  { %v4469_v59 = vpack.c.bf16 %v4464_v17, %v8861_v19  ;;  %v4445_v27 = vmul.f32 %v6993_v1, %v8760_v22 }
0x1b9d   :  { %v6995_v36 = vpop.eup %6994 }
0x1b9e   :  { %4721 = vmatmul.mubr.bf16.vlgmr.msra.gmra.mrb[196].mxu1 %v4469_v59  ;;  %4784 = vmatmul.mubr.bf16.vlgmr.msra.gmra.mrb[200].mxu0 %v4469_v59  ;;  %v4446_v30 = vmul.f32 %v6995_v36, %v8762_v31  ;;  %v4455_v25 = vmul.f32 %v8849_v56, %v4445_v27  ;;  %v5589_v36 = vld [vmem:[%s9064_s8 + $0x4] sm:$0xf] }
0x1b9f   :  { %4730 = vmatprep.mubr.bf16.mxu1 %v7035_v38  ;;  %4793 = vmatprep.mubr.bf16.mxu0 %v7035_v38 }
0x1ba0   :  { %v4456_v0 = vmul.f32 %v8849_v56, %v4446_v30  ;;  %v4465_v6 = vadd.f32 %v8857_v62, %v4455_v25  ;;  %5989 = vmatpush3.bf16.msra.mxu0 %v6743_v11  ;;  %v8986_v25 = vrot.slane %v5589_v36, %v7274_v5 }
0x1ba1   :  { %5990 = vmatprep.subr.bf16.mxu0 %v6745_v24 }
0x1ba2   :  { %v8873_v10 = vadd.f32 %v8857_v62, %v4456_v0  ;;  %v8989_v0 = vrot.slane %v5589_v36, %v7280_v7 }
0x1ba4   :  { %v4470_v22 = vpack.c.bf16 %v8873_v10, %v4465_v6  ;;  %5991 = vmatpush3.bf16.msra.mxu0 %v6747_v15  ;;  %v8992_v6 = vrot.slane %v5589_v36, %v7283_v8 }
0x1ba5   :  { %5992 = vmatprep.subr.bf16.mxu0 %v6749_v57 }
0x1ba6   :  { %4731 = vmatmul.mubr.bf16.gmra.mrb[200].mxu1 %v4470_v22  ;;  %4794 = vmatmul.mubr.bf16.gmra.mrb[204].mxu0 %v4470_v22  ;;  %v8995_v22 = vrot.slane %v5589_v36, %v7776_v3 }
0x1ba7   :  { %4740 = vmatprep.mubr.bf16.mxu1 %v7035_v38  ;;  %4803 = vmatprep.mubr.bf16.mxu0 %v7035_v38  ;;  %v6740_v38 = vld [vmem:[%s9062_s6 + $0x140] sm:$0xff]  }
0x1ba8   :  { %5954 = vmatprep.subr.bf16.mxu1 %v6740_v38  ;;  %5993 = vmatpush3.bf16.msra.mxu0 %v6751_v54 }
0x1ba9   :  { %5955 = vmatpush3.bf16.msra.mxu1 %v6742_v9  ;;  %5994 = vmatprep.subr.bf16.mxu0 %v6753_v33 }
0x1baa   :  { %5956 = vmatprep.subr.bf16.mxu1 %v6744_v37 }
0x1bad   :  { %5957 = vmatpush3.bf16.msra.mxu1 %v6746_v21 }
0x1bae   :  { %5958 = vmatprep.subr.bf16.mxu1 %v6748_v43 }
0x1bb1   :  { %5959 = vmatpush3.bf16.msra.mxu1 %v6750_v58 }
0x1bb2   :  { %5960 = vmatprep.subr.bf16.mxu1 %v6752_v48 }
0x1bcb   :  { %v4392_v31 = vpop.xlane.xlu1 %4391 }
0x1bcc   :  { %v4399_v49 = vmul.f32 0.0078125, %v4392_v31 }
0x1bcd   :  { %v4394_v40 = vpop.xlane.xlu0 %4393 }
0x1bce   :  { %v8878_v53 = vsub.f32 %v4381_v29, %v4399_v49  ;;  %v4400_v63 = vmul.f32 0.0078125, %v4394_v40  ;;  %v6754_v29 = vld [vmem:[%s9062_s6 + $0x118] sm:$0xff]  }
0x1bcf   :  { %5961 = vmatpush3.bf16.msra.mxu1 %v6754_v29 }
0x1bd0   :  { %v8880_v60 = vsub.f32 %v4382_v23, %v4400_v63  ;;  %v4411_v2 = vmul.f32 %v8878_v53, %v8878_v53  ;;  %v6755_v23 = vld [vmem:[%s9062_s6 + $0x198] sm:$0xff]   ;;  %5962 = vmatprep.subr.bf16.mxu1 %v6756_v52 }
0x1bd1   :  { %5995 = vmatpush3.bf16.msra.mxu0 %v6755_v23 }
0x1bd2   :  { %4421 = vadd.xlane.f32.xlu1 %v4411_v2  ;;  %v4412_v44 = vmul.f32 %v8880_v60, %v8880_v60  ;;  %5996 = vmatprep.subr.bf16.mxu0 %v6757_v16 }
0x1bd3   :  { %5963 = vmatpush3.bf16.msra.mxu1 %v6758_v39 }
0x1bd4   :  { %4423 = vadd.xlane.f32.xlu0 %v4412_v44  ;;  %5964 = vmatprep.subr.bf16.mxu1 %v6760_v18 }
0x1bd5   :  { %5997 = vmatpush3.bf16.msra.mxu0 %v6759_v34 }
0x1bd6   :  { %5998 = vmatprep.subr.bf16.mxu0 %v6761_v14 }
0x1bd7   :  { %5965 = vmatpush3.bf16.msra.mxu1 %v6762_v12 }
0x1bd8   :  { %5966 = vmatprep.subr.bf16.mxu1 %v6764_v20 }
0x1bd9   :  { %5999 = vmatpush3.bf16.msra.mxu0 %v6763_v50 }
0x1bda   :  { %6000 = vmatprep.subr.bf16.mxu0 %v6765_v26 }
0x1bdb   :  { %5967 = vmatpush3.bf16.msra.mxu1 %v6766_v47 }
0x1bdc   :  { %5968 = vmatprep.subr.bf16.mxu1 %v6768_v55 }
0x1bdd   :  { %6001 = vmatpush3.bf16.msra.mxu0 %v6767_v32 }
0x1bde   :  { %6002 = vmatprep.subr.bf16.mxu0 %v6769_v46 }
0x1bdf   :  { %5969 = vmatpush3.bf16.msra.mxu1 %v6770_v45 }
0x1be1   :  { %6003 = vmatpush3.bf16.msra.mxu0 %v6771_v35 }
0x1c5f   :  { %v4422_v13 = vpop.xlane.xlu1 %4421 }
0x1c60   :  { %v4429_v41 = vmul.f32 0.0078125, %v4422_v13 }
0x1c61   :  { %v4424_v17 = vpop.xlane.xlu0 %4423 }
0x1c62   :  { %v4435_v1 = vadd.f32 1e-05, %v4429_v41  ;;  %v4430_v59 = vmul.f32 0.0078125, %v4424_v17 }
0x1c64   :  { %6996 = vrsqrt.f32 %v4435_v1  ;;  %v4436_v27 = vadd.f32 1e-05, %v4430_v59 }
0x1c66   :  { %6998 = vrsqrt.f32 %v4436_v27 }
0x1c6e   :  { %v6997_v30 = vpop.eup %6996 }
0x1c6f   :  { %v4447_v31 = vmul.f32 %v6997_v30, %v8878_v53 }
0x1c70   :  { %v6999_v49 = vpop.eup %6998 }
0x1c71   :  { %v4722_v40 = vpop.f32.mrb[196].mxu1  ;;  %v4785_v63 = vpop.f32.mrb[200].mxu0  ;;  %v4448_v2 = vmul.f32 %v6999_v49, %v8880_v60  ;;  %v4457_v44 = vmul.f32 %v8849_v56, %v4447_v31 }
0x1c72   :  { %v4723_v5 = vadd.f32 %v4722_v40, %v8986_v25  ;;  %v4786_v7 = vadd.f32 %v4785_v63, %v8989_v0  ;;  %v4724_v38 = vpop.f32.mrb[197].mxu1  ;;  %v4787_v51 = vpop.f32.mrb[201].mxu0 }
0x1c73   :  { %v4725_v8 = vadd.f32 %v4724_v38, %v8992_v6  ;;  %v4788_v3 = vadd.f32 %v4787_v51, %v8995_v22  ;;  %v4726_v9 = vpop.f32.mrb[198].mxu1  ;;  %v4789_v11 = vpop.f32.mrb[202].mxu0  ;;  %v4458_v53 = vmul.f32 %v8849_v56, %v4448_v2  ;;  %v4467_v58 = vadd.f32 %v8857_v62, %v4457_v44 }
0x1c74   :  { %v4727_v37 = vadd.f32 %v4726_v9, %v8986_v25  ;;  %v4790_v60 = vadd.f32 %v4789_v11, %v8989_v0  ;;  %v4728_v24 = vpop.f32.mrb[199].mxu1  ;;  %v4791_v21 = vpop.f32.mrb[203].mxu0  ;;  %v4814_v15 = vmax.f32 %v4723_v5, 0.0  ;;  %v4816_v54 = vmax.f32 %v4786_v7, 0.0 }
0x1c75   :  { %v4729_v43 = vadd.f32 %v4728_v24, %v8992_v6  ;;  %v4792_v57 = vadd.f32 %v4791_v21, %v8995_v22  ;;  %v4468_v29 = vadd.f32 %v8857_v62, %v4458_v53  ;;  %v4815_v23 = vmax.f32 %v4725_v8, 0.0 }
0x1c76   :  { %v4818_v48 = vmax.f32 %v4727_v37, 0.0  ;;  %v4820_v33 = vmax.f32 %v4790_v60, 0.0  ;;  %v4817_v56 = vmax.f32 %v4788_v3, 0.0 }
0x1c77   :  { %v4819_v52 = vmax.f32 %v4729_v43, 0.0  ;;  %v4821_v16 = vmax.f32 %v4792_v57, 0.0  ;;  %v4471_v18 = vpack.c.bf16 %v4468_v29, %v4467_v58 }
0x1c78   :  { %v4838_v39 = vpack.c.bf16 %v4818_v48, %v4814_v15  ;;  %v4840_v34 = vpack.c.bf16 %v4820_v33, %v4816_v54 }
0x1c79   :  { %v4839_v14 = vpack.c.bf16 %v4819_v52, %v4815_v23  ;;  %v4841_v12 = vpack.c.bf16 %v4821_v16, %v4817_v56  ;;  %v4732_v50 = vpop.f32.mrb[200].mxu1  ;;  %v4795_v20 = vpop.f32.mrb[204].mxu0  ;;  %4741 = vmatmul.mubr.bf16.gmra.mrb[204].mxu1 %v4471_v18  ;;  %4804 = vmatmul.mubr.bf16.gmra.mrb[208].mxu0 %v4471_v18 }
0x1c7a   :  { %v4733_v26 = vadd.f32 %v4732_v50, %v8986_v25  ;;  %v4796_v47 = vadd.f32 %v4795_v20, %v8989_v0  ;;  %v4734_v32 = vpop.f32.mrb[201].mxu1  ;;  %v4797_v55 = vpop.f32.mrb[205].mxu0 }
0x1c7b   :  { %v4735_v62 = vadd.f32 %v4734_v32, %v8992_v6  ;;  %v4798_v46 = vadd.f32 %v4797_v55, %v8995_v22  ;;  %v4736_v45 = vpop.f32.mrb[202].mxu1  ;;  %v4799_v35 = vpop.f32.mrb[206].mxu0  ;;  %5143 = vmatprep.mubr.bf16.mxu1 %v4839_v14  ;;  %5196 = vmatprep.mubr.bf16.mxu0 %v4841_v12 }
0x1c7c   :  { %v4737_v13 = vadd.f32 %v4736_v45, %v8986_v25  ;;  %v4800_v41 = vadd.f32 %v4799_v35, %v8989_v0  ;;  %v4738_v17 = vpop.f32.mrb[203].mxu1  ;;  %v4801_v1 = vpop.f32.mrb[207].mxu0  ;;  %v4822_v36 = vmax.f32 %v4733_v26, 0.0  ;;  %v4824_v30 = vmax.f32 %v4796_v47, 0.0 }
0x1c7d   :  { %v4739_v59 = vadd.f32 %v4738_v17, %v8992_v6  ;;  %v4802_v27 = vadd.f32 %v4801_v1, %v8995_v22  ;;  %v4823_v40 = vmax.f32 %v4735_v62, 0.0  ;;  %v4825_v63 = vmax.f32 %v4798_v46, 0.0 }
0x1c7e   :  { %v4826_v31 = vmax.f32 %v4737_v13, 0.0  ;;  %v4828_v49 = vmax.f32 %v4800_v41, 0.0 }
0x1c7f   :  { %v4827_v2 = vmax.f32 %v4739_v59, 0.0  ;;  %v4829_v44 = vmax.f32 %v4802_v27, 0.0 }
0x1c80   :  { %v4842_v5 = vpack.c.bf16 %v4826_v31, %v4822_v36  ;;  %v4844_v7 = vpack.c.bf16 %v4828_v49, %v4824_v30 }
0x1c81   :  { %v4843_v38 = vpack.c.bf16 %v4827_v2, %v4823_v40  ;;  %v4845_v51 = vpack.c.bf16 %v4829_v44, %v4825_v63  ;;  %5144 = vmatmul.mubr.bf16.vlgmr.msra.gmra.mrb[208].mxu1 %v4838_v39  ;;  %5197 = vmatmul.mubr.bf16.vlgmr.msra.gmra.mrb[212].mxu0 %v4840_v34 }
0x1c83   :  { %5150 = vmatprep.mubr.bf16.mxu1 %v4843_v38  ;;  %5203 = vmatprep.mubr.bf16.mxu0 %v4845_v51 }
0x1c89   :  { %5151 = vmatmul.mubr.bf16.gmra.mrb[212].mxu1 %v4842_v5  ;;  %5204 = vmatmul.mubr.bf16.gmra.mrb[216].mxu0 %v4844_v7 }
0x1d4c   :  { %v4742_v8 = vpop.f32.mrb[204].mxu1  ;;  %v4805_v3 = vpop.f32.mrb[208].mxu0 }
0x1d4d   :  { %v4743_v9 = vadd.f32 %v4742_v8, %v8986_v25  ;;  %v4806_v11 = vadd.f32 %v4805_v3, %v8989_v0  ;;  %v4744_v53 = vpop.f32.mrb[205].mxu1  ;;  %v4807_v37 = vpop.f32.mrb[209].mxu0 }
0x1d4e   :  { %v4745_v60 = vadd.f32 %v4744_v53, %v8992_v6  ;;  %v4808_v24 = vadd.f32 %v4807_v37, %v8995_v22  ;;  %v4746_v21 = vpop.f32.mrb[206].mxu1  ;;  %v4809_v15 = vpop.f32.mrb[210].mxu0 }
0x1d4f   :  { %v4747_v43 = vadd.f32 %v4746_v21, %v8986_v25  ;;  %v4810_v57 = vadd.f32 %v4809_v15, %v8989_v0  ;;  %v4748_v58 = vpop.f32.mrb[207].mxu1  ;;  %v4811_v54 = vpop.f32.mrb[211].mxu0  ;;  %v4830_v29 = vmax.f32 %v4743_v9, 0.0  ;;  %v4832_v23 = vmax.f32 %v4806_v11, 0.0 }
0x1d50   :  { %v4749_v48 = vadd.f32 %v4748_v58, %v8992_v6  ;;  %v4812_v33 = vadd.f32 %v4811_v54, %v8995_v22  ;;  %v4831_v16 = vmax.f32 %v4745_v60, 0.0  ;;  %v4833_v39 = vmax.f32 %v4808_v24, 0.0 }
0x1d51   :  { %v4834_v56 = vmax.f32 %v4747_v43, 0.0  ;;  %v4836_v52 = vmax.f32 %v4810_v57, 0.0  ;;  %v4918_v6 = vrot.slane %v8708_v42, %v2370_v28 }
0x1d52   :  { %v4835_v34 = vmax.f32 %v4749_v48, 0.0  ;;  %v4837_v18 = vmax.f32 %v4812_v33, 0.0 }
0x1d53   :  { %v4846_v14 = vpack.c.bf16 %v4834_v56, %v4830_v29  ;;  %v4848_v12 = vpack.c.bf16 %v4836_v52, %v4832_v23  ;;  %v5244_v56 = vrot.slane %v8708_v42, %v2752_v61 }
0x1d54   :  { %v4847_v50 = vpack.c.bf16 %v4835_v34, %v4831_v16  ;;  %v4849_v25 = vpack.c.bf16 %v4837_v18, %v4833_v39  ;;  %v5970_v20 = vpop.f32.mrb[208].mxu1  ;;  %v6004_v0 = vpop.f32.mrb[212].mxu0  ;;  %v5718_v18 = vld [vmem:[%s9063_s7 + $0x18] ss:$0 sm:$0xff] }
0x1d55   :  { %v5971_v26 = vpop.f32.mrb[209].mxu1  ;;  %v6005_v22 = vpop.f32.mrb[213].mxu0 }
0x1d56   :  { %v5972_v47 = vadd.f32 %v5971_v26, %v5970_v20  ;;  %v6006_v32 = vadd.f32 %v6005_v22, %v6004_v0  ;;  %v5973_v55 = vpop.f32.mrb[210].mxu1  ;;  %5157 = vmatprep.mubr.bf16.mxu1 %v4847_v50  ;;  %v6007_v62 = vpop.f32.mrb[214].mxu0  ;;  %5210 = vmatprep.mubr.bf16.mxu0 %v4849_v25 }
0x1d57   :  { %v5974_v46 = vpop.f32.mrb[211].mxu1  ;;  %5158 = vmatmul.mubr.bf16.gmra.mrb[216].mxu1 %v4846_v14  ;;  %v6008_v45 = vpop.f32.mrb[215].mxu0  ;;  %5211 = vmatmul.mubr.bf16.gmra.mrb[220].mxu0 %v4848_v12  ;;  %v5719_v55 = vld [vmem:[%s9065_s9] ss:$0 sm:$0xff] }
0x1d58   :  { %v5146_v35 = vadd.f32 %v5972_v47, %v4918_v6  ;;  %v5720_v46 = vld [vmem:[%s9065_s9 + $0x1] ss:$0 sm:$0xff] }
0x1d5a   :  { %v5199_v13 = vadd.f32 %v6006_v32, %v5146_v35 }
0x1d5c   :  { %v5976_v41 = vpop.f32.mrb[212].mxu1  ;;  %v6010_v17 = vpop.f32.mrb[216].mxu0  ;;  %v5217_v1 = vadd.f32 %v5199_v13, %v8861_v19 }
0x1d5d   :  { %v5977_v59 = vpop.f32.mrb[213].mxu1  ;;  %v6011_v28 = vpop.f32.mrb[217].mxu0 }
0x1d5e   :  { %v5979_v27 = vpop.f32.mrb[214].mxu1  ;;  %v6013_v36 = vpop.f32.mrb[218].mxu0  ;;  %5219 = vadd.xlane.f32.xlu0 %v5217_v1 }
0x1d5f   :  { %v5980_v30 = vpop.f32.mrb[215].mxu1  ;;  %v6014_v31 = vpop.f32.mrb[219].mxu0 }
0x1d60   :  { %v5981_v49 = vadd.f32 %v5980_v30, %v5979_v27  ;;  %v6015_v40 = vadd.f32 %v6014_v31, %v6013_v36 }
0x1d62   :  { %v5155_v63 = vadd.f32 %v5981_v49, %v4918_v6 }
0x1d64   :  { %v5208_v2 = vadd.f32 %v6015_v40, %v5155_v63 }
0x1d66   :  { %v5218_v44 = vadd.f32 %v5208_v2, %v8873_v10 }
0x1d68   :  { %5221 = vadd.xlane.f32.xlu1 %v5218_v44 }
0x1deb   :  { %v5220_v5 = vpop.xlane.xlu0 %5219 }
0x1dec   :  { %v5223_v7 = vmul.f32 0.0078125, %v5220_v5 }
0x1dee   :  { %v5225_v38 = vsub.f32 %v5217_v1, %v5223_v7 }
0x1df0   :  { %v5227_v51 = vmul.f32 %v5225_v38, %v5225_v38 }
0x1df2   :  { %5229 = vadd.xlane.f32.xlu0 %v5227_v51 }
0x1df5   :  { %v5222_v19 = vpop.xlane.xlu1 %5221 }
0x1df6   :  { %v5224_v8 = vmul.f32 0.0078125, %v5222_v19 }
0x1df8   :  { %v5226_v3 = vsub.f32 %v5218_v44, %v5224_v8 }
0x1dfa   :  { %v5228_v9 = vmul.f32 %v5226_v3, %v5226_v3 }
0x1dfc   :  { %5231 = vadd.xlane.f32.xlu1 %v5228_v9 }
0x1e2a   :  { %v5982_v11 = vpop.f32.mrb[216].mxu1  ;;  %v6016_v53 = vpop.f32.mrb[220].mxu0 }
0x1e2b   :  { %v5983_v37 = vpop.f32.mrb[217].mxu1  ;;  %v6017_v60 = vpop.f32.mrb[221].mxu0 }
0x1e2c   :  { %v5985_v24 = vpop.f32.mrb[218].mxu1  ;;  %v6019_v21 = vpop.f32.mrb[222].mxu0 }
0x1e2d   :  { %v5986_v15 = vpop.f32.mrb[219].mxu1  ;;  %v6020_v43 = vpop.f32.mrb[223].mxu0 }
0x1e7f   :  { %v5230_v10 = vpop.xlane.xlu0 %5229 }
0x1e80   :  { %v5233_v57 = vmul.f32 0.0078125, %v5230_v10 }
0x1e82   :  { %v5235_v58 = vadd.f32 1e-05, %v5233_v57 }
0x1e84   :  { %7000 = vrsqrt.f32 %v5235_v58 }
0x1e89   :  { %v5232_v54 = vpop.xlane.xlu1 %5231 }
0x1e8a   :  { %v5234_v48 = vmul.f32 0.0078125, %v5232_v54 }
0x1e8c   :  { %v5236_v33 = vadd.f32 1e-05, %v5234_v48 }
0x1e8e   :  { %7002 = vrsqrt.f32 %v5236_v33  ;;  %v7001_v29 = vpop.eup %7000 }
0x1e8f   :  { %v5239_v23 = vmul.f32 %v7001_v29, %v5225_v38 }
0x1e91   :  { %v5245_v39 = vmul.f32 %v5244_v56, %v5239_v23 }
0x1e93   :  { %v5251_v12 = vadd.f32 %v5718_v18, %v5245_v39 }
0x1e98   :  { %v7003_v52 = vpop.eup %7002 }
0x1e99   :  { %v5240_v16 = vmul.f32 %v7003_v52, %v5226_v3 }
0x1e9b   :  { %v5246_v34 = vmul.f32 %v5244_v56, %v5240_v16 }
0x1e9d   :  { %v5252_v14 = vadd.f32 %v5718_v18, %v5246_v34 }
0x1e9f   :  { %v5254_v50 = vrot.slane %v5252_v14, 7 }
0x1ea1   :  { %v5257_v25 = vsel %vm5256_vm8, %v5251_v12, %v5254_v50 }
0x1ea2   :  { %v5261_v20 = vsel %vm5260_vm9, %v5257_v25, 0.0 }
0x1ea3   :  { %5262 = vadd.xlane.f32.xlu1 %v5261_v20 }
0x1f30   :  { %v5263_v0 = vpop.xlane.xlu1 %5262 }
0x1f31   :  { %v5264_v4 = vmul.f32 0.0078125, %v5263_v0 }
0x1f33   :  { %v5265_v6 = vsub.f32 %v5257_v25, %v5264_v4 }
0x1f35   :  { %v5266_v61 = vmul.f32 %v5265_v6, %v5265_v6 }
0x1f37   :  { %v5267_v42 = vsel %vm5260_vm9, %v5266_v61, 0.0 }
0x1f38   :  { %5268 = vadd.xlane.f32.xlu0 %v5267_v42 }
0x1fc5   :  { %v5269_v26 = vpop.xlane.xlu0 %5268 }
0x1fc6   :  { %v5270_v22 = vmul.f32 0.0078125, %v5269_v26 }
0x1fc8   :  { %v5271_v47 = vadd.f32 1e-05, %v5270_v22 }
0x1fca   :  { %7004 = vrsqrt.f32 %v5271_v47 }
0x1fd4   :  { %v7005_v32 = vpop.eup %7004 }
0x1fd5   :  { %v5273_v62 = vmul.f32 %v7005_v32, %v5265_v6 }
0x1fd7   :  { %v5278_v45 = vmul.f32 %v5719_v55, %v5273_v62 }
0x1fd9   :  { %v5283_v35 = vadd.f32 %v5720_v46, %v5278_v45 }
0x1fdb   :  { %5284 = vst [vmem:[#allocation2] sm:$0x3] %v5283_v35 }
0x1fdc   :  { %7020 = shalt.err (!%p7017_p4)
}
0x1fdd   :  { %s7021_s14 = scalar_lea.hbm %s9066_s10, 32 }
0x1fde   :  { %p7022_p5 = scmp.ne.s32.totalorder %s9066_s10, %s7021_s14  ;;  %p7025_p6 = scmp.lt.u32.totalorder %s7021_s14, %s9066_s10 }
0x1fe0   :  { %p7027_p7 = pnand %p7025_p6, %p7022_p5 }
0x1fe2   :  { %7030 = shalt.err (!%p7027_p7)
}
0x1fe3   :  { %5294 = dma.vmem_to_hbm [thread:$0]  %s5292_s11, 32, %s9066_s10, [#allocation3]  }
0x1fe4   :  { %7031 = dma.done.wait [#allocation3], 32  }
0x1fe5   :  { %7032 = vsyncadd [#allocation3], 4294967264 }
0x1fe6   :  { %5298 = vsyncpa [#allocation3], 1 }

</bundles_post_ra>
